<compile_context>
chip_gen: v7x
topology: tpu7x:2x2x1
jax: 0.10.0
libtpu: 0.0.40
codegen_flags: <defaults>
</compile_context>

<pallas_src>
import math

import numpy as np
import jax
import jax.numpy as jnp
from jax import lax
from jax.experimental import pallas as pl
from jax.experimental.pallas import tpu as pltpu

F32 = jnp.float32


# ----------------------------- in-kernel helpers -----------------------------

def _gelu(x):
    # RE2's GeLU (tanh approximation), matching the custom torch GeLU module.
    return 0.5 * x * (1.0 + jnp.tanh(x * 0.7978845608 * (1.0 + 0.044715 * x * x)))


def _softmax(x, axis):
    m = jnp.max(x, axis=axis, keepdims=True)
    e = jnp.exp(x - m)
    return e / jnp.sum(e, axis=axis, keepdims=True)


# ------------------------------ parameter packing -----------------------------

def _pack_params(params, H):
    """Pack every weight matrix into one (rows, H) slab and every bias into one
    (n_bias, H) slab. Returns slabs + static offset tables."""
    blocks = params["blocks"]
    w_mats, b_rows = [], []
    w_off, b_idx = {}, {}
    off = 0

    def addw(name, mat):
        nonlocal off
        mat = jnp.asarray(mat, F32)
        r, c = mat.shape
        if c < H:
            mat = jnp.pad(mat, ((0, 0), (0, H - c)))
        w_off[name] = (off, r)
        rpad = (-r) % 8                       # keep every slab offset sublane-aligned
        if rpad:
            mat = jnp.pad(mat, ((0, rpad), (0, 0)))
        w_mats.append(mat)
        off += r + rpad

    def addb(name, vec):
        vec = jnp.asarray(vec, F32).reshape(1, -1)
        c = vec.shape[1]
        if c < H:
            vec = jnp.pad(vec, ((0, 0), (0, H - c)))
        b_idx[name] = len(b_rows)
        b_rows.append(vec)

    for i, blk in enumerate(blocks):
        for j, (cw, cb) in enumerate(blk["encoder"]):
            Kk, cin, hh = cw.shape
            # fused-tap conv weight: (K, Cin, H) -> (K*Cin, H), taps outermost
            addw(("conv", i, j), jnp.asarray(cw, F32).reshape(Kk * cin, hh))
            addb(("conv", i, j), cb)
        al = blk["alignment"]
        addw(("proj", i), al["proj_w"])
        addb(("proj", i), al["proj_b"])
        fu = blk["fusion"]
        addw(("w1", i), fu["w1"]); addb(("b1", i), fu["b1"])
        addw(("w2", i), fu["w2"]); addb(("b2", i), fu["b2"])
        addw(("w3", i), fu["w3"]); addb(("b3", i), fu["b3"])
        addw(("fw", i), fu["w"]);  addb(("fb", i), fu["b"])
    pr = params["prediction"]
    addw(("pw1",), pr["w1"]); addb(("pb1",), pr["b1"])
    addw(("pw2",), pr["w2"]); addb(("pb2",), pr["b2"])

    return (jnp.concatenate(w_mats, axis=0),
            jnp.concatenate(b_rows, axis=0),
            w_off, b_idx)


# ------------------------------- fused kernel --------------------------------

def _make_re2_kernel(B, L, H, K, n_blocks, enc_layers, num_classes, w_off, b_idx):
    M = B * L              # rows per stream (a or b)
    M2 = 2 * M             # stacked a + b rows
    pad = (K - 1) // 2
    sqrt_half = math.sqrt(0.5)

    def kernel(emb_ref, mask_ref, amask_ref, tapm_ref, temps_ref, w_ref, b_ref, out_ref):
        def getw(name):
            o, r = w_off[name]
            return w_ref[o:o + r, :]

        def getb(name):
            j = b_idx[name]
            return b_ref[j:j + 1, :]

        emb = emb_ref[...]                       # (M2, E)
        mask = mask_ref[...]                     # (M2, 1)
        attn_mask = amask_ref[...]               # (M, M)  same-batch & non-pad
        tap_masks = [tapm_ref[k] for k in range(K)]   # (M2, 1) each

        x_in = emb
        prev_lo = None
        fus_out = None

        for i in range(n_blocks):
            # ---- augmented-residual connection ----
            if i == 1:
                prev_lo = fus_out
                x_in = jnp.concatenate([fus_out, emb], axis=1)
            elif i >= 2:
                x_new = (prev_lo + fus_out) * sqrt_half
                prev_lo = x_new
                x_in = jnp.concatenate([x_new, emb], axis=1)

            # ---- encoder: masked conv1d ('same' padding via roll) + GeLU ----
            h = x_in
            for j in range(enc_layers):
                hm = h * mask                    # masked_fill(~mask, 0)
                taps = []
                for k in range(K):
                    s = k - pad                  # want tap[t] = hm[t + s]
                    if s == 0:
                        taps.append(hm)
                    else:
                        rolled = pltpu.roll(hm, shift=(-s) % M2, axis=0)
                        taps.append(rolled * tap_masks[k])
                xk = jnp.concatenate(taps, axis=1) if K > 1 else taps[0]   # (M2, K*Cin)
                h = _gelu(jnp.dot(xk, getw(("conv", i, j)),
                                  preferred_element_type=F32) + getb(("conv", i, j)))
            x_enc = h                            # (M2, H)

            x_cat = jnp.concatenate([x_in, x_enc], axis=1)                 # (M2, af)

            # ---- alignment (projected dot-product attention, fully batched) ----
            proj = _gelu(jnp.dot(x_cat, getw(("proj", i)),
                                 preferred_element_type=F32) + getb(("proj", i)))
            pa = proj[:M]                        # a-stream queries (M, H)
            pb = proj[M:]                        # b-stream keys    (M, H)
            attn = lax.dot_general(pa, pb, (((1,), (1,)), ((), ())),
                                   preferred_element_type=F32) * temps_ref[i]
            attn = jnp.where(attn_mask > 0.0, attn, jnp.float32(-1e7))
            attn_a = _softmax(attn, axis=0)      # torch softmax(dim=1)
            attn_b = _softmax(attn, axis=1)      # torch softmax(dim=2)
            xa = x_cat[:M]
            xb = x_cat[M:]
            feat_a = jnp.dot(attn_b, xb, preferred_element_type=F32)       # (M, af)
            feat_b = lax.dot_general(attn_a, xa, (((0,), (0,)), ((), ())),
                                     preferred_element_type=F32)           # (M, af)
            align = jnp.concatenate([feat_a, feat_b], axis=0)              # (M2, af)

            # ---- fusion: concatenated operands -> single long-contraction GEMMs ----
            x1 = _gelu(jnp.dot(jnp.concatenate([x_cat, align], axis=1),
                               getw(("w1", i)), preferred_element_type=F32)
                       + getb(("b1", i)))
            x2 = _gelu(jnp.dot(jnp.concatenate([x_cat, x_cat - align], axis=1),
                               getw(("w2", i)), preferred_element_type=F32)
                       + getb(("b2", i)))
            x3 = _gelu(jnp.dot(jnp.concatenate([x_cat, x_cat * align], axis=1),
                               getw(("w3", i)), preferred_element_type=F32)
                       + getb(("b3", i)))
            fus_out = _gelu(jnp.dot(jnp.concatenate([x1, x2, x3], axis=1),
                                    getw(("fw", i)), preferred_element_type=F32)
                            + getb(("fb", i)))

        # ---- masked max pooling over the sequence per (stream, batch) chunk ----
        xm = jnp.where(mask > 0.0, fus_out, jnp.float32(-1e30))
        chunks = [xm[c * L:(c + 1) * L] for c in range(2 * B)]             # aligned slices
        pooled = jnp.max(jnp.stack(chunks, axis=0), axis=1)                # (2B, H)
        a_pool = pooled[:B]
        b_pool = pooled[B:]

        # ---- prediction head ("full" features: [a, b, a-b, a*b]) ----
        feat = jnp.concatenate([a_pool, b_pool, a_pool - b_pool, a_pool * b_pool], axis=1)
        hp = _gelu(jnp.dot(feat, getw(("pw1",)), preferred_element_type=F32)
                   + getb(("pb1",)))
        logits = jnp.dot(hp, getw(("pw2",)), preferred_element_type=F32) + getb(("pb2",))
        out_ref[...] = logits[:, :num_classes]

    return kernel


# ------------------------------ model wrapper ---------------------------------

def model_forward(params, a_ids, b_ids):
    B, L = a_ids.shape
    blocks = params["blocks"]
    n_blocks = len(blocks)
    enc_layers = len(blocks[0]["encoder"])
    K = blocks[0]["encoder"][0][0].shape[0]
    H = blocks[0]["encoder"][0][0].shape[2]
    E = params["embedding"].shape[1]
    num_classes = params["prediction"]["w2"].shape[1]
    M = B * L
    M2 = 2 * M

    # Embedding gather + mask construction are XLA glue; everything else is fused.
    mask_a = (a_ids != 0).astype(F32)                       # (B, L)
    mask_b = (b_ids != 0).astype(F32)
    emb_a = params["embedding"][a_ids].astype(F32).reshape(M, E)
    emb_b = params["embedding"][b_ids].astype(F32).reshape(M, E)
    emb = jnp.concatenate([emb_a, emb_b], axis=0)                          # (M2, E)
    mask_rows = jnp.concatenate([mask_a.reshape(M, 1), mask_b.reshape(M, 1)], axis=0)

    # (M, M) attention mask: same batch AND both positions non-pad.
    bid = np.repeat(np.arange(B), L)
    same_batch = jnp.asarray((bid[:, None] == bid[None, :]).astype(np.float32))
    attn_mask = same_batch * mask_a.reshape(M, 1) * mask_b.reshape(1, M)

    # Per-tap boundary masks for the roll-based 'same' conv padding.
    padk = (K - 1) // 2
    t_in = np.arange(M2) % L
    tapm_np = np.zeros((K, M2, 1), np.float32)
    for k in range(K):
        s = k - padk
        tapm_np[k, :, 0] = ((t_in + s >= 0) & (t_in + s < L)).astype(np.float32)
    tapm = jnp.asarray(tapm_np)

    temps = jnp.stack([blk["alignment"]["temperature"] for blk in blocks]).astype(F32)

    wslab, bslab, w_off, b_idx = _pack_params(params, H)

    inputs = [emb, mask_rows, attn_mask, tapm, temps, wslab, bslab]

    def vspec(x):
        nd = x.ndim
        return pl.BlockSpec(x.shape, lambda i, _nd=nd: (0,) * _nd)

    in_specs = [vspec(emb), vspec(mask_rows), vspec(attn_mask), vspec(tapm),
                pl.BlockSpec(memory_space=pltpu.MemorySpace.SMEM),   # temperatures
                vspec(wslab), vspec(bslab)]

    kernel = _make_re2_kernel(B, L, H, K, n_blocks, enc_layers, num_classes,
                              w_off, b_idx)

    logits = pl.pallas_call(
        kernel,
        grid=(1,),
        out_shape=jax.ShapeDtypeStruct((B, num_classes), F32),
        in_specs=in_specs,
        out_specs=pl.BlockSpec((B, num_classes), lambda i: (0, 0)),
        compiler_params=pltpu.CompilerParams(dimension_semantics=("arbitrary",)),
    )(*inputs)

    # tiny (B, 2) softmax is free in XLA; saves one kernel output DMA.
    probs = jax.nn.softmax(logits, axis=-1)
    return logits, probs


# ------------------------------ parameters ------------------------------------

def init_params(key, V, E, H, n_blocks, enc_layers, K, num_classes):
    keys = iter(jax.random.split(key, 256))

    def nrm(shape, scale):
        return jax.random.normal(next(keys), shape, jnp.float32) * scale

    params = {"embedding": nrm((V, E), 1.0), "blocks": []}
    for i in range(n_blocks):
        enc_in = E if i == 0 else E + H
        af_in = E + H if i == 0 else E + 2 * H
        convs = []
        cin = enc_in
        for _ in range(enc_layers):
            convs.append((nrm((K, cin, H), math.sqrt(2.0 / (cin * K))),
                          jnp.zeros((H,), jnp.float32)))
            cin = H
        align = {"proj_w": nrm((af_in, H), 1.0 / math.sqrt(af_in)),
                 "proj_b": nrm((H,), 0.01),
                 "temperature": jnp.float32(1.0 / math.sqrt(H))}
        fus = {"w1": nrm((2 * af_in, H), 1.0 / math.sqrt(2 * af_in)), "b1": nrm((H,), 0.01),
               "w2": nrm((2 * af_in, H), 1.0 / math.sqrt(2 * af_in)), "b2": nrm((H,), 0.01),
               "w3": nrm((2 * af_in, H), 1.0 / math.sqrt(2 * af_in)), "b3": nrm((H,), 0.01),
               "w": nrm((3 * H, H), 1.0 / math.sqrt(3 * H)), "b": nrm((H,), 0.01)}
        params["blocks"].append({"encoder": convs, "alignment": align, "fusion": fus})
    params["prediction"] = {
        "w1": nrm((4 * H, H), 1.0 / math.sqrt(4 * H)), "b1": nrm((H,), 0.01),
        "w2": nrm((H, num_classes), 1.0 / math.sqrt(H)), "b2": nrm((num_classes,), 0.01),
    }
    return params


# --------------------------------- main ----------------------------------------

if __name__ == "__main__":
    V, E, H = 20, 32, 32
    n_blocks, enc_layers, K, num_classes = 3, 2, 3, 2
    B, L = 2, 8

    key = jax.random.PRNGKey(0)
    kp, ka, kb = jax.random.split(key, 3)
    params = init_params(kp, V, E, H, n_blocks, enc_layers, K, num_classes)

    a_ids = jax.random.randint(ka, (B, L), 1, V)
    b_ids = jax.random.randint(kb, (B, L), 1, V)
    a_ids = a_ids.at[:, 6:].set(0)   # trailing padding to exercise masks
    b_ids = b_ids.at[:, 5:].set(0)

    logits, probs = jax.jit(model_forward)(params, a_ids, b_ids)
    jax.block_until_ready((logits, probs))
    print("KERNEL_OK")
</pallas_src>

<mosaic_0001>
module attributes {stable_mosaic.version = 11 : i64} {
  func.func @kernel(%arg0: i32, %arg1: memref<32x32xf32, #tpu.memory_space<vmem>>, %arg2: memref<32x1xf32, #tpu.memory_space<vmem>>, %arg3: memref<16x16xf32, #tpu.memory_space<vmem>>, %arg4: memref<3x32x1xf32, #tpu.memory_space<vmem>>, %arg5: memref<3xf32, #tpu.memory_space<smem>>, %arg6: memref<3008x32xf32, #tpu.memory_space<vmem>>, %arg7: memref<23x32xf32, #tpu.memory_space<vmem>>, %arg8: memref<2x2xf32, #tpu.memory_space<vmem>>) attributes {dimension_semantics = [#tpu.dimension_semantics<arbitrary>], iteration_bounds = array<i64: 1>, scalar_prefetch = 0 : i64, scratch_operands = 0 : i64, tpu.core_type = #tpu.core_type<tc>, window_params = [{pipeline_mode = #tpu.pipeline_mode<synchronous>, transform_indices = @transform_0, window_bounds = array<i64: 32, 32>}, {pipeline_mode = #tpu.pipeline_mode<synchronous>, transform_indices = @transform_1, window_bounds = array<i64: 32, 1>}, {pipeline_mode = #tpu.pipeline_mode<synchronous>, transform_indices = @transform_2, window_bounds = array<i64: 16, 16>}, {pipeline_mode = #tpu.pipeline_mode<synchronous>, transform_indices = @transform_3, window_bounds = array<i64: 3, 32, 1>}, {transform_indices = @transform_4, window_bounds = array<i64: 3>}, {pipeline_mode = #tpu.pipeline_mode<synchronous>, transform_indices = @transform_5, window_bounds = array<i64: 3008, 32>}, {pipeline_mode = #tpu.pipeline_mode<synchronous>, transform_indices = @transform_6, window_bounds = array<i64: 23, 32>}, {pipeline_mode = #tpu.pipeline_mode<synchronous>, transform_indices = @transform_7, window_bounds = array<i64: 2, 2>}]} {
    %c0 = arith.constant 0 : index
    %c0_0 = arith.constant 0 : index
    %0 = vector.load %arg1[%c0, %c0_0] : memref<32x32xf32, #tpu.memory_space<vmem>>, vector<32x32xf32>
    %c0_1 = arith.constant 0 : index
    %c0_2 = arith.constant 0 : index
    %1 = vector.load %arg2[%c0_1, %c0_2] : memref<32x1xf32, #tpu.memory_space<vmem>>, vector<32x1xf32>
    %c0_3 = arith.constant 0 : index
    %c0_4 = arith.constant 0 : index
    %2 = vector.load %arg3[%c0_3, %c0_4] : memref<16x16xf32, #tpu.memory_space<vmem>>, vector<16x16xf32>
    %c0_5 = arith.constant 0 : index
    %c0_6 = arith.constant 0 : index
    %c0_7 = arith.constant 0 : index
    %3 = vector.load %arg4[%c0_5, %c0_6, %c0_7] : memref<3x32x1xf32, #tpu.memory_space<vmem>>, vector<1x32x1xf32>
    %4 = vector.shape_cast %3 : vector<1x32x1xf32> to vector<32x1xf32>
    %c2 = arith.constant 2 : index
    %c0_8 = arith.constant 0 : index
    %c0_9 = arith.constant 0 : index
    %5 = vector.load %arg4[%c2, %c0_8, %c0_9] : memref<3x32x1xf32, #tpu.memory_space<vmem>>, vector<1x32x1xf32>
    %6 = vector.shape_cast %5 : vector<1x32x1xf32> to vector<32x1xf32>
    %7 = vector.broadcast %1 : vector<32x1xf32> to vector<32x32xf32>
    %8 = arith.mulf %0, %7 : vector<32x32xf32>
    %c1_i32 = arith.constant 1 : i32
    %9 = tpu.dynamic_rotate %8 by %c1_i32 dim 0 : vector<32x32xf32>, i32 -> vector<32x32xf32>
    %10 = vector.broadcast %4 : vector<32x1xf32> to vector<32x32xf32>
    %11 = arith.mulf %9, %10 : vector<32x32xf32>
    %c31_i32 = arith.constant 31 : i32
    %12 = tpu.dynamic_rotate %8 by %c31_i32 dim 0 : vector<32x32xf32>, i32 -> vector<32x32xf32>
    %13 = vector.broadcast %6 : vector<32x1xf32> to vector<32x32xf32>
    %14 = arith.mulf %12, %13 : vector<32x32xf32>
    %15 = tpu.concatenate %11, %8, %14 in 1 : vector<32x32xf32>, vector<32x32xf32>, vector<32x32xf32> -> vector<32x96xf32>
    %c0_10 = arith.constant 0 : index
    %c0_11 = arith.constant 0 : index
    %16 = vector.load %arg6[%c0_10, %c0_11] : memref<3008x32xf32, #tpu.memory_space<vmem>>, vector<96x32xf32>
    %cst = arith.constant dense<0.000000e+00> : vector<32x32xf32>
    %17 = tpu.matmul %15, %16, %cst {dimension_numbers = #tpu.dot_dimension_numbers<[1], [0], [0], [1], [0, 0, 1, 1], [], []>} : vector<32x96xf32>, vector<96x32xf32>, vector<32x32xf32> -> vector<32x32xf32>
    %c0_12 = arith.constant 0 : index
    %c0_13 = arith.constant 0 : index
    %18 = vector.load %arg7[%c0_12, %c0_13] : memref<23x32xf32, #tpu.memory_space<vmem>>, vector<1x32xf32>
    %19 = vector.broadcast %18 : vector<1x32xf32> to vector<32x32xf32>
    %20 = arith.addf %17, %19 : vector<32x32xf32>
    %cst_14 = arith.constant 5.000000e-01 : f32
    %21 = vector.broadcast %cst_14 : f32 to vector<32x32xf32>
    %22 = arith.mulf %21, %20 : vector<32x32xf32>
    %cst_15 = arith.constant 0.797884583 : f32
    %23 = vector.broadcast %cst_15 : f32 to vector<32x32xf32>
    %24 = arith.mulf %20, %23 : vector<32x32xf32>
    %cst_16 = arith.constant 4.471500e-02 : f32
    %25 = vector.broadcast %cst_16 : f32 to vector<32x32xf32>
    %26 = arith.mulf %25, %20 : vector<32x32xf32>
    %27 = arith.mulf %26, %20 : vector<32x32xf32>
    %cst_17 = arith.constant 1.000000e+00 : f32
    %28 = vector.broadcast %cst_17 : f32 to vector<32x32xf32>
    %29 = arith.addf %28, %27 : vector<32x32xf32>
    %30 = arith.mulf %24, %29 : vector<32x32xf32>
    %31 = math.tanh %30 : vector<32x32xf32>
    %cst_18 = arith.constant 1.000000e+00 : f32
    %32 = vector.broadcast %cst_18 : f32 to vector<32x32xf32>
    %33 = arith.addf %32, %31 : vector<32x32xf32>
    %34 = arith.mulf %22, %33 : vector<32x32xf32>
    %35 = vector.broadcast %1 : vector<32x1xf32> to vector<32x32xf32>
    %36 = arith.mulf %34, %35 : vector<32x32xf32>
    %c1_i32_19 = arith.constant 1 : i32
    %37 = tpu.dynamic_rotate %36 by %c1_i32_19 dim 0 : vector<32x32xf32>, i32 -> vector<32x32xf32>
    %38 = vector.broadcast %4 : vector<32x1xf32> to vector<32x32xf32>
    %39 = arith.mulf %37, %38 : vector<32x32xf32>
    %c31_i32_20 = arith.constant 31 : i32
    %40 = tpu.dynamic_rotate %36 by %c31_i32_20 dim 0 : vector<32x32xf32>, i32 -> vector<32x32xf32>
    %41 = vector.broadcast %6 : vector<32x1xf32> to vector<32x32xf32>
    %42 = arith.mulf %40, %41 : vector<32x32xf32>
    %43 = tpu.concatenate %39, %36, %42 in 1 : vector<32x32xf32>, vector<32x32xf32>, vector<32x32xf32> -> vector<32x96xf32>
    %c96 = arith.constant 96 : index
    %c0_21 = arith.constant 0 : index
    %44 = vector.load %arg6[%c96, %c0_21] : memref<3008x32xf32, #tpu.memory_space<vmem>>, vector<96x32xf32>
    %cst_22 = arith.constant dense<0.000000e+00> : vector<32x32xf32>
    %45 = tpu.matmul %43, %44, %cst_22 {dimension_numbers = #tpu.dot_dimension_numbers<[1], [0], [0], [1], [0, 0, 1, 1], [], []>} : vector<32x96xf32>, vector<96x32xf32>, vector<32x32xf32> -> vector<32x32xf32>
    %c1 = arith.constant 1 : index
    %c0_23 = arith.constant 0 : index
    %46 = vector.load %arg7[%c1, %c0_23] : memref<23x32xf32, #tpu.memory_space<vmem>>, vector<1x32xf32>
    %47 = vector.broadcast %46 : vector<1x32xf32> to vector<32x32xf32>
    %48 = arith.addf %45, %47 : vector<32x32xf32>
    %cst_24 = arith.constant 5.000000e-01 : f32
    %49 = vector.broadcast %cst_24 : f32 to vector<32x32xf32>
    %50 = arith.mulf %49, %48 : vector<32x32xf32>
    %cst_25 = arith.constant 0.797884583 : f32
    %51 = vector.broadcast %cst_25 : f32 to vector<32x32xf32>
    %52 = arith.mulf %48, %51 : vector<32x32xf32>
    %cst_26 = arith.constant 4.471500e-02 : f32
    %53 = vector.broadcast %cst_26 : f32 to vector<32x32xf32>
    %54 = arith.mulf %53, %48 : vector<32x32xf32>
    %55 = arith.mulf %54, %48 : vector<32x32xf32>
    %cst_27 = arith.constant 1.000000e+00 : f32
    %56 = vector.broadcast %cst_27 : f32 to vector<32x32xf32>
    %57 = arith.addf %56, %55 : vector<32x32xf32>
    %58 = arith.mulf %52, %57 : vector<32x32xf32>
    %59 = math.tanh %58 : vector<32x32xf32>
    %cst_28 = arith.constant 1.000000e+00 : f32
    %60 = vector.broadcast %cst_28 : f32 to vector<32x32xf32>
    %61 = arith.addf %60, %59 : vector<32x32xf32>
    %62 = arith.mulf %50, %61 : vector<32x32xf32>
    %63 = tpu.concatenate %0, %62 in 1 : vector<32x32xf32>, vector<32x32xf32> -> vector<32x64xf32>
    %c192 = arith.constant 192 : index
    %c0_29 = arith.constant 0 : index
    %64 = vector.load %arg6[%c192, %c0_29] : memref<3008x32xf32, #tpu.memory_space<vmem>>, vector<64x32xf32>
    %cst_30 = arith.constant dense<0.000000e+00> : vector<32x32xf32>
    %65 = tpu.matmul %63, %64, %cst_30 {dimension_numbers = #tpu.dot_dimension_numbers<[1], [0], [0], [1], [0, 0, 1, 1], [], []>} : vector<32x64xf32>, vector<64x32xf32>, vector<32x32xf32> -> vector<32x32xf32>
    %c2_31 = arith.constant 2 : index
    %c0_32 = arith.constant 0 : index
    %66 = vector.load %arg7[%c2_31, %c0_32] : memref<23x32xf32, #tpu.memory_space<vmem>>, vector<1x32xf32>
    %67 = vector.broadcast %66 : vector<1x32xf32> to vector<32x32xf32>
    %68 = arith.addf %65, %67 : vector<32x32xf32>
    %cst_33 = arith.constant 5.000000e-01 : f32
    %69 = vector.broadcast %cst_33 : f32 to vector<32x32xf32>
    %70 = arith.mulf %69, %68 : vector<32x32xf32>
    %cst_34 = arith.constant 0.797884583 : f32
    %71 = vector.broadcast %cst_34 : f32 to vector<32x32xf32>
    %72 = arith.mulf %68, %71 : vector<32x32xf32>
    %cst_35 = arith.constant 4.471500e-02 : f32
    %73 = vector.broadcast %cst_35 : f32 to vector<32x32xf32>
    %74 = arith.mulf %73, %68 : vector<32x32xf32>
    %75 = arith.mulf %74, %68 : vector<32x32xf32>
    %cst_36 = arith.constant 1.000000e+00 : f32
    %76 = vector.broadcast %cst_36 : f32 to vector<32x32xf32>
    %77 = arith.addf %76, %75 : vector<32x32xf32>
    %78 = arith.mulf %72, %77 : vector<32x32xf32>
    %79 = math.tanh %78 : vector<32x32xf32>
    %cst_37 = arith.constant 1.000000e+00 : f32
    %80 = vector.broadcast %cst_37 : f32 to vector<32x32xf32>
    %81 = arith.addf %80, %79 : vector<32x32xf32>
    %82 = arith.mulf %70, %81 : vector<32x32xf32>
    %83 = vector.extract_strided_slice %82 {offsets = [0, 0], sizes = [16, 32], strides = [1, 1]} : vector<32x32xf32> to vector<16x32xf32>
    %84 = vector.extract_strided_slice %82 {offsets = [16, 0], sizes = [16, 32], strides = [1, 1]} : vector<32x32xf32> to vector<16x32xf32>
    %cst_38 = arith.constant dense<0.000000e+00> : vector<16x16xf32>
    %85 = tpu.matmul %83, %84, %cst_38 {dimension_numbers = #tpu.dot_dimension_numbers<[1], [1], [0], [0], [0, 0, 1, 0], [], []>} : vector<16x32xf32>, vector<16x32xf32>, vector<16x16xf32> -> vector<16x16xf32>
    %c0_39 = arith.constant 0 : index
    %86 = memref.load %arg5[%c0_39] : memref<3xf32, #tpu.memory_space<smem>>
    %87 = vector.broadcast %86 : f32 to vector<16x16xf32>
    %88 = arith.mulf %85, %87 : vector<16x16xf32>
    %cst_40 = arith.constant 0.000000e+00 : f32
    %89 = vector.broadcast %cst_40 : f32 to vector<16x16xf32>
    %90 = arith.cmpf ogt, %2, %89 : vector<16x16xf32>
    %cst_41 = arith.constant -1.000000e+07 : f32
    %91 = vector.broadcast %cst_41 : f32 to vector<16x16xf32>
    %92 = arith.select %90, %88, %91 : vector<16x16xi1>, vector<16x16xf32>
    %cst_42 = arith.constant dense<0xFF800000> : vector<16xf32>
    %93 = vector.multi_reduction <maximumf>, %92, %cst_42 [0] : vector<16x16xf32> to vector<16xf32>
    %94 = vector.shape_cast %93 : vector<16xf32> to vector<1x16xf32>
    %95 = vector.broadcast %94 : vector<1x16xf32> to vector<16x16xf32>
    %96 = arith.subf %92, %95 : vector<16x16xf32>
    %97 = math.exp %96 : vector<16x16xf32>
    %cst_43 = arith.constant dense<0.000000e+00> : vector<16xf32>
    %98 = vector.multi_reduction <add>, %97, %cst_43 [0] : vector<16x16xf32> to vector<16xf32>
    %99 = vector.shape_cast %98 : vector<16xf32> to vector<1x16xf32>
    %100 = vector.broadcast %99 : vector<1x16xf32> to vector<16x16xf32>
    %101 = arith.divf %97, %100 : vector<16x16xf32>
    %cst_44 = arith.constant dense<0xFF800000> : vector<16xf32>
    %102 = vector.multi_reduction <maximumf>, %92, %cst_44 [1] : vector<16x16xf32> to vector<16xf32>
    %103 = vector.shape_cast %102 : vector<16xf32> to vector<16x1xf32>
    %104 = vector.broadcast %103 : vector<16x1xf32> to vector<16x16xf32>
    %105 = arith.subf %92, %104 : vector<16x16xf32>
    %106 = math.exp %105 : vector<16x16xf32>
    %cst_45 = arith.constant dense<0.000000e+00> : vector<16xf32>
    %107 = vector.multi_reduction <add>, %106, %cst_45 [1] : vector<16x16xf32> to vector<16xf32>
    %108 = vector.shape_cast %107 : vector<16xf32> to vector<16x1xf32>
    %109 = vector.broadcast %108 : vector<16x1xf32> to vector<16x16xf32>
    %110 = arith.divf %106, %109 : vector<16x16xf32>
    %111 = vector.extract_strided_slice %63 {offsets = [0, 0], sizes = [16, 64], strides = [1, 1]} : vector<32x64xf32> to vector<16x64xf32>
    %112 = vector.extract_strided_slice %63 {offsets = [16, 0], sizes = [16, 64], strides = [1, 1]} : vector<32x64xf32> to vector<16x64xf32>
    %cst_46 = arith.constant dense<0.000000e+00> : vector<16x64xf32>
    %113 = tpu.matmul %110, %112, %cst_46 {dimension_numbers = #tpu.dot_dimension_numbers<[1], [0], [0], [1], [0, 0, 1, 1], [], []>} : vector<16x16xf32>, vector<16x64xf32>, vector<16x64xf32> -> vector<16x64xf32>
    %cst_47 = arith.constant dense<0.000000e+00> : vector<16x64xf32>
    %114 = tpu.matmul %101, %111, %cst_47 {dimension_numbers = #tpu.dot_dimension_numbers<[0], [0], [1], [1], [0, 1, 1, 1], [], []>} : vector<16x16xf32>, vector<16x64xf32>, vector<16x64xf32> -> vector<16x64xf32>
    %115 = tpu.concatenate %113, %114 in 0 : vector<16x64xf32>, vector<16x64xf32> -> vector<32x64xf32>
    %116 = tpu.concatenate %63, %115 in 1 : vector<32x64xf32>, vector<32x64xf32> -> vector<32x128xf32>
    %c256 = arith.constant 256 : index
    %c0_48 = arith.constant 0 : index
    %117 = vector.load %arg6[%c256, %c0_48] : memref<3008x32xf32, #tpu.memory_space<vmem>>, vector<128x32xf32>
    %cst_49 = arith.constant dense<0.000000e+00> : vector<32x32xf32>
    %118 = tpu.matmul %116, %117, %cst_49 {dimension_numbers = #tpu.dot_dimension_numbers<[1], [0], [0], [1], [0, 0, 1, 1], [], []>} : vector<32x128xf32>, vector<128x32xf32>, vector<32x32xf32> -> vector<32x32xf32>
    %c3 = arith.constant 3 : index
    %c0_50 = arith.constant 0 : index
    %119 = vector.load %arg7[%c3, %c0_50] : memref<23x32xf32, #tpu.memory_space<vmem>>, vector<1x32xf32>
    %120 = vector.broadcast %119 : vector<1x32xf32> to vector<32x32xf32>
    %121 = arith.addf %118, %120 : vector<32x32xf32>
    %cst_51 = arith.constant 5.000000e-01 : f32
    %122 = vector.broadcast %cst_51 : f32 to vector<32x32xf32>
    %123 = arith.mulf %122, %121 : vector<32x32xf32>
    %cst_52 = arith.constant 0.797884583 : f32
    %124 = vector.broadcast %cst_52 : f32 to vector<32x32xf32>
    %125 = arith.mulf %121, %124 : vector<32x32xf32>
    %cst_53 = arith.constant 4.471500e-02 : f32
    %126 = vector.broadcast %cst_53 : f32 to vector<32x32xf32>
    %127 = arith.mulf %126, %121 : vector<32x32xf32>
    %128 = arith.mulf %127, %121 : vector<32x32xf32>
    %cst_54 = arith.constant 1.000000e+00 : f32
    %129 = vector.broadcast %cst_54 : f32 to vector<32x32xf32>
    %130 = arith.addf %129, %128 : vector<32x32xf32>
    %131 = arith.mulf %125, %130 : vector<32x32xf32>
    %132 = math.tanh %131 : vector<32x32xf32>
    %cst_55 = arith.constant 1.000000e+00 : f32
    %133 = vector.broadcast %cst_55 : f32 to vector<32x32xf32>
    %134 = arith.addf %133, %132 : vector<32x32xf32>
    %135 = arith.mulf %123, %134 : vector<32x32xf32>
    %136 = arith.subf %63, %115 : vector<32x64xf32>
    %137 = tpu.concatenate %63, %136 in 1 : vector<32x64xf32>, vector<32x64xf32> -> vector<32x128xf32>
    %c384 = arith.constant 384 : index
    %c0_56 = arith.constant 0 : index
    %138 = vector.load %arg6[%c384, %c0_56] : memref<3008x32xf32, #tpu.memory_space<vmem>>, vector<128x32xf32>
    %cst_57 = arith.constant dense<0.000000e+00> : vector<32x32xf32>
    %139 = tpu.matmul %137, %138, %cst_57 {dimension_numbers = #tpu.dot_dimension_numbers<[1], [0], [0], [1], [0, 0, 1, 1], [], []>} : vector<32x128xf32>, vector<128x32xf32>, vector<32x32xf32> -> vector<32x32xf32>
    %c4 = arith.constant 4 : index
    %c0_58 = arith.constant 0 : index
    %140 = vector.load %arg7[%c4, %c0_58] : memref<23x32xf32, #tpu.memory_space<vmem>>, vector<1x32xf32>
    %141 = vector.broadcast %140 : vector<1x32xf32> to vector<32x32xf32>
    %142 = arith.addf %139, %141 : vector<32x32xf32>
    %cst_59 = arith.constant 5.000000e-01 : f32
    %143 = vector.broadcast %cst_59 : f32 to vector<32x32xf32>
    %144 = arith.mulf %143, %142 : vector<32x32xf32>
    %cst_60 = arith.constant 0.797884583 : f32
    %145 = vector.broadcast %cst_60 : f32 to vector<32x32xf32>
    %146 = arith.mulf %142, %145 : vector<32x32xf32>
    %cst_61 = arith.constant 4.471500e-02 : f32
    %147 = vector.broadcast %cst_61 : f32 to vector<32x32xf32>
    %148 = arith.mulf %147, %142 : vector<32x32xf32>
    %149 = arith.mulf %148, %142 : vector<32x32xf32>
    %cst_62 = arith.constant 1.000000e+00 : f32
    %150 = vector.broadcast %cst_62 : f32 to vector<32x32xf32>
    %151 = arith.addf %150, %149 : vector<32x32xf32>
    %152 = arith.mulf %146, %151 : vector<32x32xf32>
    %153 = math.tanh %152 : vector<32x32xf32>
    %cst_63 = arith.constant 1.000000e+00 : f32
    %154 = vector.broadcast %cst_63 : f32 to vector<32x32xf32>
    %155 = arith.addf %154, %153 : vector<32x32xf32>
    %156 = arith.mulf %144, %155 : vector<32x32xf32>
    %157 = arith.mulf %63, %115 : vector<32x64xf32>
    %158 = tpu.concatenate %63, %157 in 1 : vector<32x64xf32>, vector<32x64xf32> -> vector<32x128xf32>
    %c512 = arith.constant 512 : index
    %c0_64 = arith.constant 0 : index
    %159 = vector.load %arg6[%c512, %c0_64] : memref<3008x32xf32, #tpu.memory_space<vmem>>, vector<128x32xf32>
    %cst_65 = arith.constant dense<0.000000e+00> : vector<32x32xf32>
    %160 = tpu.matmul %158, %159, %cst_65 {dimension_numbers = #tpu.dot_dimension_numbers<[1], [0], [0], [1], [0, 0, 1, 1], [], []>} : vector<32x128xf32>, vector<128x32xf32>, vector<32x32xf32> -> vector<32x32xf32>
    %c5 = arith.constant 5 : index
    %c0_66 = arith.constant 0 : index
    %161 = vector.load %arg7[%c5, %c0_66] : memref<23x32xf32, #tpu.memory_space<vmem>>, vector<1x32xf32>
    %162 = vector.broadcast %161 : vector<1x32xf32> to vector<32x32xf32>
    %163 = arith.addf %160, %162 : vector<32x32xf32>
    %cst_67 = arith.constant 5.000000e-01 : f32
    %164 = vector.broadcast %cst_67 : f32 to vector<32x32xf32>
    %165 = arith.mulf %164, %163 : vector<32x32xf32>
    %cst_68 = arith.constant 0.797884583 : f32
    %166 = vector.broadcast %cst_68 : f32 to vector<32x32xf32>
    %167 = arith.mulf %163, %166 : vector<32x32xf32>
    %cst_69 = arith.constant 4.471500e-02 : f32
    %168 = vector.broadcast %cst_69 : f32 to vector<32x32xf32>
    %169 = arith.mulf %168, %163 : vector<32x32xf32>
    %170 = arith.mulf %169, %163 : vector<32x32xf32>
    %cst_70 = arith.constant 1.000000e+00 : f32
    %171 = vector.broadcast %cst_70 : f32 to vector<32x32xf32>
    %172 = arith.addf %171, %170 : vector<32x32xf32>
    %173 = arith.mulf %167, %172 : vector<32x32xf32>
    %174 = math.tanh %173 : vector<32x32xf32>
    %cst_71 = arith.constant 1.000000e+00 : f32
    %175 = vector.broadcast %cst_71 : f32 to vector<32x32xf32>
    %176 = arith.addf %175, %174 : vector<32x32xf32>
    %177 = arith.mulf %165, %176 : vector<32x32xf32>
    %178 = tpu.concatenate %135, %156, %177 in 1 : vector<32x32xf32>, vector<32x32xf32>, vector<32x32xf32> -> vector<32x96xf32>
    %c640 = arith.constant 640 : index
    %c0_72 = arith.constant 0 : index
    %179 = vector.load %arg6[%c640, %c0_72] : memref<3008x32xf32, #tpu.memory_space<vmem>>, vector<96x32xf32>
    %cst_73 = arith.constant dense<0.000000e+00> : vector<32x32xf32>
    %180 = tpu.matmul %178, %179, %cst_73 {dimension_numbers = #tpu.dot_dimension_numbers<[1], [0], [0], [1], [0, 0, 1, 1], [], []>} : vector<32x96xf32>, vector<96x32xf32>, vector<32x32xf32> -> vector<32x32xf32>
    %c6 = arith.constant 6 : index
    %c0_74 = arith.constant 0 : index
    %181 = vector.load %arg7[%c6, %c0_74] : memref<23x32xf32, #tpu.memory_space<vmem>>, vector<1x32xf32>
    %182 = vector.broadcast %181 : vector<1x32xf32> to vector<32x32xf32>
    %183 = arith.addf %180, %182 : vector<32x32xf32>
    %cst_75 = arith.constant 5.000000e-01 : f32
    %184 = vector.broadcast %cst_75 : f32 to vector<32x32xf32>
    %185 = arith.mulf %184, %183 : vector<32x32xf32>
    %cst_76 = arith.constant 0.797884583 : f32
    %186 = vector.broadcast %cst_76 : f32 to vector<32x32xf32>
    %187 = arith.mulf %183, %186 : vector<32x32xf32>
    %cst_77 = arith.constant 4.471500e-02 : f32
    %188 = vector.broadcast %cst_77 : f32 to vector<32x32xf32>
    %189 = arith.mulf %188, %183 : vector<32x32xf32>
    %190 = arith.mulf %189, %183 : vector<32x32xf32>
    %cst_78 = arith.constant 1.000000e+00 : f32
    %191 = vector.broadcast %cst_78 : f32 to vector<32x32xf32>
    %192 = arith.addf %191, %190 : vector<32x32xf32>
    %193 = arith.mulf %187, %192 : vector<32x32xf32>
    %194 = math.tanh %193 : vector<32x32xf32>
    %cst_79 = arith.constant 1.000000e+00 : f32
    %195 = vector.broadcast %cst_79 : f32 to vector<32x32xf32>
    %196 = arith.addf %195, %194 : vector<32x32xf32>
    %197 = arith.mulf %185, %196 : vector<32x32xf32>
    %198 = tpu.concatenate %197, %0 in 1 : vector<32x32xf32>, vector<32x32xf32> -> vector<32x64xf32>
    %199 = vector.broadcast %1 : vector<32x1xf32> to vector<32x64xf32>
    %200 = arith.mulf %198, %199 : vector<32x64xf32>
    %c1_i32_80 = arith.constant 1 : i32
    %201 = tpu.dynamic_rotate %200 by %c1_i32_80 dim 0 : vector<32x64xf32>, i32 -> vector<32x64xf32>
    %202 = vector.broadcast %4 : vector<32x1xf32> to vector<32x64xf32>
    %203 = arith.mulf %201, %202 : vector<32x64xf32>
    %c31_i32_81 = arith.constant 31 : i32
    %204 = tpu.dynamic_rotate %200 by %c31_i32_81 dim 0 : vector<32x64xf32>, i32 -> vector<32x64xf32>
    %205 = vector.broadcast %6 : vector<32x1xf32> to vector<32x64xf32>
    %206 = arith.mulf %204, %205 : vector<32x64xf32>
    %207 = tpu.concatenate %203, %200, %206 in 1 : vector<32x64xf32>, vector<32x64xf32>, vector<32x64xf32> -> vector<32x192xf32>
    %c736 = arith.constant 736 : index
    %c0_82 = arith.constant 0 : index
    %208 = vector.load %arg6[%c736, %c0_82] : memref<3008x32xf32, #tpu.memory_space<vmem>>, vector<192x32xf32>
    %cst_83 = arith.constant dense<0.000000e+00> : vector<32x32xf32>
    %209 = tpu.matmul %207, %208, %cst_83 {dimension_numbers = #tpu.dot_dimension_numbers<[1], [0], [0], [1], [0, 0, 1, 1], [], []>} : vector<32x192xf32>, vector<192x32xf32>, vector<32x32xf32> -> vector<32x32xf32>
    %c7 = arith.constant 7 : index
    %c0_84 = arith.constant 0 : index
    %210 = vector.load %arg7[%c7, %c0_84] : memref<23x32xf32, #tpu.memory_space<vmem>>, vector<1x32xf32>
    %211 = vector.broadcast %210 : vector<1x32xf32> to vector<32x32xf32>
    %212 = arith.addf %209, %211 : vector<32x32xf32>
    %cst_85 = arith.constant 5.000000e-01 : f32
    %213 = vector.broadcast %cst_85 : f32 to vector<32x32xf32>
    %214 = arith.mulf %213, %212 : vector<32x32xf32>
    %cst_86 = arith.constant 0.797884583 : f32
    %215 = vector.broadcast %cst_86 : f32 to vector<32x32xf32>
    %216 = arith.mulf %212, %215 : vector<32x32xf32>
    %cst_87 = arith.constant 4.471500e-02 : f32
    %217 = vector.broadcast %cst_87 : f32 to vector<32x32xf32>
    %218 = arith.mulf %217, %212 : vector<32x32xf32>
    %219 = arith.mulf %218, %212 : vector<32x32xf32>
    %cst_88 = arith.constant 1.000000e+00 : f32
    %220 = vector.broadcast %cst_88 : f32 to vector<32x32xf32>
    %221 = arith.addf %220, %219 : vector<32x32xf32>
    %222 = arith.mulf %216, %221 : vector<32x32xf32>
    %223 = math.tanh %222 : vector<32x32xf32>
    %cst_89 = arith.constant 1.000000e+00 : f32
    %224 = vector.broadcast %cst_89 : f32 to vector<32x32xf32>
    %225 = arith.addf %224, %223 : vector<32x32xf32>
    %226 = arith.mulf %214, %225 : vector<32x32xf32>
    %227 = vector.broadcast %1 : vector<32x1xf32> to vector<32x32xf32>
    %228 = arith.mulf %226, %227 : vector<32x32xf32>
    %c1_i32_90 = arith.constant 1 : i32
    %229 = tpu.dynamic_rotate %228 by %c1_i32_90 dim 0 : vector<32x32xf32>, i32 -> vector<32x32xf32>
    %230 = vector.broadcast %4 : vector<32x1xf32> to vector<32x32xf32>
    %231 = arith.mulf %229, %230 : vector<32x32xf32>
    %c31_i32_91 = arith.constant 31 : i32
    %232 = tpu.dynamic_rotate %228 by %c31_i32_91 dim 0 : vector<32x32xf32>, i32 -> vector<32x32xf32>
    %233 = vector.broadcast %6 : vector<32x1xf32> to vector<32x32xf32>
    %234 = arith.mulf %232, %233 : vector<32x32xf32>
    %235 = tpu.concatenate %231, %228, %234 in 1 : vector<32x32xf32>, vector<32x32xf32>, vector<32x32xf32> -> vector<32x96xf32>
    %c928 = arith.constant 928 : index
    %c0_92 = arith.constant 0 : index
    %236 = vector.load %arg6[%c928, %c0_92] : memref<3008x32xf32, #tpu.memory_space<vmem>>, vector<96x32xf32>
    %cst_93 = arith.constant dense<0.000000e+00> : vector<32x32xf32>
    %237 = tpu.matmul %235, %236, %cst_93 {dimension_numbers = #tpu.dot_dimension_numbers<[1], [0], [0], [1], [0, 0, 1, 1], [], []>} : vector<32x96xf32>, vector<96x32xf32>, vector<32x32xf32> -> vector<32x32xf32>
    %c8 = arith.constant 8 : index
    %c0_94 = arith.constant 0 : index
    %238 = vector.load %arg7[%c8, %c0_94] : memref<23x32xf32, #tpu.memory_space<vmem>>, vector<1x32xf32>
    %239 = vector.broadcast %238 : vector<1x32xf32> to vector<32x32xf32>
    %240 = arith.addf %237, %239 : vector<32x32xf32>
    %cst_95 = arith.constant 5.000000e-01 : f32
    %241 = vector.broadcast %cst_95 : f32 to vector<32x32xf32>
    %242 = arith.mulf %241, %240 : vector<32x32xf32>
    %cst_96 = arith.constant 0.797884583 : f32
    %243 = vector.broadcast %cst_96 : f32 to vector<32x32xf32>
    %244 = arith.mulf %240, %243 : vector<32x32xf32>
    %cst_97 = arith.constant 4.471500e-02 : f32
    %245 = vector.broadcast %cst_97 : f32 to vector<32x32xf32>
    %246 = arith.mulf %245, %240 : vector<32x32xf32>
    %247 = arith.mulf %246, %240 : vector<32x32xf32>
    %cst_98 = arith.constant 1.000000e+00 : f32
    %248 = vector.broadcast %cst_98 : f32 to vector<32x32xf32>
    %249 = arith.addf %248, %247 : vector<32x32xf32>
    %250 = arith.mulf %244, %249 : vector<32x32xf32>
    %251 = math.tanh %250 : vector<32x32xf32>
    %cst_99 = arith.constant 1.000000e+00 : f32
    %252 = vector.broadcast %cst_99 : f32 to vector<32x32xf32>
    %253 = arith.addf %252, %251 : vector<32x32xf32>
    %254 = arith.mulf %242, %253 : vector<32x32xf32>
    %255 = tpu.concatenate %198, %254 in 1 : vector<32x64xf32>, vector<32x32xf32> -> vector<32x96xf32>
    %c1024 = arith.constant 1024 : index
    %c0_100 = arith.constant 0 : index
    %256 = vector.load %arg6[%c1024, %c0_100] : memref<3008x32xf32, #tpu.memory_space<vmem>>, vector<96x32xf32>
    %cst_101 = arith.constant dense<0.000000e+00> : vector<32x32xf32>
    %257 = tpu.matmul %255, %256, %cst_101 {dimension_numbers = #tpu.dot_dimension_numbers<[1], [0], [0], [1], [0, 0, 1, 1], [], []>} : vector<32x96xf32>, vector<96x32xf32>, vector<32x32xf32> -> vector<32x32xf32>
    %c9 = arith.constant 9 : index
    %c0_102 = arith.constant 0 : index
    %258 = vector.load %arg7[%c9, %c0_102] : memref<23x32xf32, #tpu.memory_space<vmem>>, vector<1x32xf32>
    %259 = vector.broadcast %258 : vector<1x32xf32> to vector<32x32xf32>
    %260 = arith.addf %257, %259 : vector<32x32xf32>
    %cst_103 = arith.constant 5.000000e-01 : f32
    %261 = vector.broadcast %cst_103 : f32 to vector<32x32xf32>
    %262 = arith.mulf %261, %260 : vector<32x32xf32>
    %cst_104 = arith.constant 0.797884583 : f32
    %263 = vector.broadcast %cst_104 : f32 to vector<32x32xf32>
    %264 = arith.mulf %260, %263 : vector<32x32xf32>
    %cst_105 = arith.constant 4.471500e-02 : f32
    %265 = vector.broadcast %cst_105 : f32 to vector<32x32xf32>
    %266 = arith.mulf %265, %260 : vector<32x32xf32>
    %267 = arith.mulf %266, %260 : vector<32x32xf32>
    %cst_106 = arith.constant 1.000000e+00 : f32
    %268 = vector.broadcast %cst_106 : f32 to vector<32x32xf32>
    %269 = arith.addf %268, %267 : vector<32x32xf32>
    %270 = arith.mulf %264, %269 : vector<32x32xf32>
    %271 = math.tanh %270 : vector<32x32xf32>
    %cst_107 = arith.constant 1.000000e+00 : f32
    %272 = vector.broadcast %cst_107 : f32 to vector<32x32xf32>
    %273 = arith.addf %272, %271 : vector<32x32xf32>
    %274 = arith.mulf %262, %273 : vector<32x32xf32>
    %275 = vector.extract_strided_slice %274 {offsets = [0, 0], sizes = [16, 32], strides = [1, 1]} : vector<32x32xf32> to vector<16x32xf32>
    %276 = vector.extract_strided_slice %274 {offsets = [16, 0], sizes = [16, 32], strides = [1, 1]} : vector<32x32xf32> to vector<16x32xf32>
    %cst_108 = arith.constant dense<0.000000e+00> : vector<16x16xf32>
    %277 = tpu.matmul %275, %276, %cst_108 {dimension_numbers = #tpu.dot_dimension_numbers<[1], [1], [0], [0], [0, 0, 1, 0], [], []>} : vector<16x32xf32>, vector<16x32xf32>, vector<16x16xf32> -> vector<16x16xf32>
    %c1_109 = arith.constant 1 : index
    %278 = memref.load %arg5[%c1_109] : memref<3xf32, #tpu.memory_space<smem>>
    %279 = vector.broadcast %278 : f32 to vector<16x16xf32>
    %280 = arith.mulf %277, %279 : vector<16x16xf32>
    %cst_110 = arith.constant 0.000000e+00 : f32
    %281 = vector.broadcast %cst_110 : f32 to vector<16x16xf32>
    %282 = arith.cmpf ogt, %2, %281 : vector<16x16xf32>
    %cst_111 = arith.constant -1.000000e+07 : f32
    %283 = vector.broadcast %cst_111 : f32 to vector<16x16xf32>
    %284 = arith.select %282, %280, %283 : vector<16x16xi1>, vector<16x16xf32>
    %cst_112 = arith.constant dense<0xFF800000> : vector<16xf32>
    %285 = vector.multi_reduction <maximumf>, %284, %cst_112 [0] : vector<16x16xf32> to vector<16xf32>
    %286 = vector.shape_cast %285 : vector<16xf32> to vector<1x16xf32>
    %287 = vector.broadcast %286 : vector<1x16xf32> to vector<16x16xf32>
    %288 = arith.subf %284, %287 : vector<16x16xf32>
    %289 = math.exp %288 : vector<16x16xf32>
    %cst_113 = arith.constant dense<0.000000e+00> : vector<16xf32>
    %290 = vector.multi_reduction <add>, %289, %cst_113 [0] : vector<16x16xf32> to vector<16xf32>
    %291 = vector.shape_cast %290 : vector<16xf32> to vector<1x16xf32>
    %292 = vector.broadcast %291 : vector<1x16xf32> to vector<16x16xf32>
    %293 = arith.divf %289, %292 : vector<16x16xf32>
    %cst_114 = arith.constant dense<0xFF800000> : vector<16xf32>
    %294 = vector.multi_reduction <maximumf>, %284, %cst_114 [1] : vector<16x16xf32> to vector<16xf32>
    %295 = vector.shape_cast %294 : vector<16xf32> to vector<16x1xf32>
    %296 = vector.broadcast %295 : vector<16x1xf32> to vector<16x16xf32>
    %297 = arith.subf %284, %296 : vector<16x16xf32>
    %298 = math.exp %297 : vector<16x16xf32>
    %cst_115 = arith.constant dense<0.000000e+00> : vector<16xf32>
    %299 = vector.multi_reduction <add>, %298, %cst_115 [1] : vector<16x16xf32> to vector<16xf32>
    %300 = vector.shape_cast %299 : vector<16xf32> to vector<16x1xf32>
    %301 = vector.broadcast %300 : vector<16x1xf32> to vector<16x16xf32>
    %302 = arith.divf %298, %301 : vector<16x16xf32>
    %303 = vector.extract_strided_slice %255 {offsets = [0, 0], sizes = [16, 96], strides = [1, 1]} : vector<32x96xf32> to vector<16x96xf32>
    %304 = vector.extract_strided_slice %255 {offsets = [16, 0], sizes = [16, 96], strides = [1, 1]} : vector<32x96xf32> to vector<16x96xf32>
    %cst_116 = arith.constant dense<0.000000e+00> : vector<16x96xf32>
    %305 = tpu.matmul %302, %304, %cst_116 {dimension_numbers = #tpu.dot_dimension_numbers<[1], [0], [0], [1], [0, 0, 1, 1], [], []>} : vector<16x16xf32>, vector<16x96xf32>, vector<16x96xf32> -> vector<16x96xf32>
    %cst_117 = arith.constant dense<0.000000e+00> : vector<16x96xf32>
    %306 = tpu.matmul %293, %303, %cst_117 {dimension_numbers = #tpu.dot_dimension_numbers<[0], [0], [1], [1], [0, 1, 1, 1], [], []>} : vector<16x16xf32>, vector<16x96xf32>, vector<16x96xf32> -> vector<16x96xf32>
    %307 = tpu.concatenate %305, %306 in 0 : vector<16x96xf32>, vector<16x96xf32> -> vector<32x96xf32>
    %308 = tpu.concatenate %255, %307 in 1 : vector<32x96xf32>, vector<32x96xf32> -> vector<32x192xf32>
    %c1120 = arith.constant 1120 : index
    %c0_118 = arith.constant 0 : index
    %309 = vector.load %arg6[%c1120, %c0_118] : memref<3008x32xf32, #tpu.memory_space<vmem>>, vector<192x32xf32>
    %cst_119 = arith.constant dense<0.000000e+00> : vector<32x32xf32>
    %310 = tpu.matmul %308, %309, %cst_119 {dimension_numbers = #tpu.dot_dimension_numbers<[1], [0], [0], [1], [0, 0, 1, 1], [], []>} : vector<32x192xf32>, vector<192x32xf32>, vector<32x32xf32> -> vector<32x32xf32>
    %c10 = arith.constant 10 : index
    %c0_120 = arith.constant 0 : index
    %311 = vector.load %arg7[%c10, %c0_120] : memref<23x32xf32, #tpu.memory_space<vmem>>, vector<1x32xf32>
    %312 = vector.broadcast %311 : vector<1x32xf32> to vector<32x32xf32>
    %313 = arith.addf %310, %312 : vector<32x32xf32>
    %cst_121 = arith.constant 5.000000e-01 : f32
    %314 = vector.broadcast %cst_121 : f32 to vector<32x32xf32>
    %315 = arith.mulf %314, %313 : vector<32x32xf32>
    %cst_122 = arith.constant 0.797884583 : f32
    %316 = vector.broadcast %cst_122 : f32 to vector<32x32xf32>
    %317 = arith.mulf %313, %316 : vector<32x32xf32>
    %cst_123 = arith.constant 4.471500e-02 : f32
    %318 = vector.broadcast %cst_123 : f32 to vector<32x32xf32>
    %319 = arith.mulf %318, %313 : vector<32x32xf32>
    %320 = arith.mulf %319, %313 : vector<32x32xf32>
    %cst_124 = arith.constant 1.000000e+00 : f32
    %321 = vector.broadcast %cst_124 : f32 to vector<32x32xf32>
    %322 = arith.addf %321, %320 : vector<32x32xf32>
    %323 = arith.mulf %317, %322 : vector<32x32xf32>
    %324 = math.tanh %323 : vector<32x32xf32>
    %cst_125 = arith.constant 1.000000e+00 : f32
    %325 = vector.broadcast %cst_125 : f32 to vector<32x32xf32>
    %326 = arith.addf %325, %324 : vector<32x32xf32>
    %327 = arith.mulf %315, %326 : vector<32x32xf32>
    %328 = arith.subf %255, %307 : vector<32x96xf32>
    %329 = tpu.concatenate %255, %328 in 1 : vector<32x96xf32>, vector<32x96xf32> -> vector<32x192xf32>
    %c1312 = arith.constant 1312 : index
    %c0_126 = arith.constant 0 : index
    %330 = vector.load %arg6[%c1312, %c0_126] : memref<3008x32xf32, #tpu.memory_space<vmem>>, vector<192x32xf32>
    %cst_127 = arith.constant dense<0.000000e+00> : vector<32x32xf32>
    %331 = tpu.matmul %329, %330, %cst_127 {dimension_numbers = #tpu.dot_dimension_numbers<[1], [0], [0], [1], [0, 0, 1, 1], [], []>} : vector<32x192xf32>, vector<192x32xf32>, vector<32x32xf32> -> vector<32x32xf32>
    %c11 = arith.constant 11 : index
    %c0_128 = arith.constant 0 : index
    %332 = vector.load %arg7[%c11, %c0_128] : memref<23x32xf32, #tpu.memory_space<vmem>>, vector<1x32xf32>
    %333 = vector.broadcast %332 : vector<1x32xf32> to vector<32x32xf32>
    %334 = arith.addf %331, %333 : vector<32x32xf32>
    %cst_129 = arith.constant 5.000000e-01 : f32
    %335 = vector.broadcast %cst_129 : f32 to vector<32x32xf32>
    %336 = arith.mulf %335, %334 : vector<32x32xf32>
    %cst_130 = arith.constant 0.797884583 : f32
    %337 = vector.broadcast %cst_130 : f32 to vector<32x32xf32>
    %338 = arith.mulf %334, %337 : vector<32x32xf32>
    %cst_131 = arith.constant 4.471500e-02 : f32
    %339 = vector.broadcast %cst_131 : f32 to vector<32x32xf32>
    %340 = arith.mulf %339, %334 : vector<32x32xf32>
    %341 = arith.mulf %340, %334 : vector<32x32xf32>
    %cst_132 = arith.constant 1.000000e+00 : f32
    %342 = vector.broadcast %cst_132 : f32 to vector<32x32xf32>
    %343 = arith.addf %342, %341 : vector<32x32xf32>
    %344 = arith.mulf %338, %343 : vector<32x32xf32>
    %345 = math.tanh %344 : vector<32x32xf32>
    %cst_133 = arith.constant 1.000000e+00 : f32
    %346 = vector.broadcast %cst_133 : f32 to vector<32x32xf32>
    %347 = arith.addf %346, %345 : vector<32x32xf32>
    %348 = arith.mulf %336, %347 : vector<32x32xf32>
    %349 = arith.mulf %255, %307 : vector<32x96xf32>
    %350 = tpu.concatenate %255, %349 in 1 : vector<32x96xf32>, vector<32x96xf32> -> vector<32x192xf32>
    %c1504 = arith.constant 1504 : index
    %c0_134 = arith.constant 0 : index
    %351 = vector.load %arg6[%c1504, %c0_134] : memref<3008x32xf32, #tpu.memory_space<vmem>>, vector<192x32xf32>
    %cst_135 = arith.constant dense<0.000000e+00> : vector<32x32xf32>
    %352 = tpu.matmul %350, %351, %cst_135 {dimension_numbers = #tpu.dot_dimension_numbers<[1], [0], [0], [1], [0, 0, 1, 1], [], []>} : vector<32x192xf32>, vector<192x32xf32>, vector<32x32xf32> -> vector<32x32xf32>
    %c12 = arith.constant 12 : index
    %c0_136 = arith.constant 0 : index
    %353 = vector.load %arg7[%c12, %c0_136] : memref<23x32xf32, #tpu.memory_space<vmem>>, vector<1x32xf32>
    %354 = vector.broadcast %353 : vector<1x32xf32> to vector<32x32xf32>
    %355 = arith.addf %352, %354 : vector<32x32xf32>
    %cst_137 = arith.constant 5.000000e-01 : f32
    %356 = vector.broadcast %cst_137 : f32 to vector<32x32xf32>
    %357 = arith.mulf %356, %355 : vector<32x32xf32>
    %cst_138 = arith.constant 0.797884583 : f32
    %358 = vector.broadcast %cst_138 : f32 to vector<32x32xf32>
    %359 = arith.mulf %355, %358 : vector<32x32xf32>
    %cst_139 = arith.constant 4.471500e-02 : f32
    %360 = vector.broadcast %cst_139 : f32 to vector<32x32xf32>
    %361 = arith.mulf %360, %355 : vector<32x32xf32>
    %362 = arith.mulf %361, %355 : vector<32x32xf32>
    %cst_140 = arith.constant 1.000000e+00 : f32
    %363 = vector.broadcast %cst_140 : f32 to vector<32x32xf32>
    %364 = arith.addf %363, %362 : vector<32x32xf32>
    %365 = arith.mulf %359, %364 : vector<32x32xf32>
    %366 = math.tanh %365 : vector<32x32xf32>
    %cst_141 = arith.constant 1.000000e+00 : f32
    %367 = vector.broadcast %cst_141 : f32 to vector<32x32xf32>
    %368 = arith.addf %367, %366 : vector<32x32xf32>
    %369 = arith.mulf %357, %368 : vector<32x32xf32>
    %370 = tpu.concatenate %327, %348, %369 in 1 : vector<32x32xf32>, vector<32x32xf32>, vector<32x32xf32> -> vector<32x96xf32>
    %c1696 = arith.constant 1696 : index
    %c0_142 = arith.constant 0 : index
    %371 = vector.load %arg6[%c1696, %c0_142] : memref<3008x32xf32, #tpu.memory_space<vmem>>, vector<96x32xf32>
    %cst_143 = arith.constant dense<0.000000e+00> : vector<32x32xf32>
    %372 = tpu.matmul %370, %371, %cst_143 {dimension_numbers = #tpu.dot_dimension_numbers<[1], [0], [0], [1], [0, 0, 1, 1], [], []>} : vector<32x96xf32>, vector<96x32xf32>, vector<32x32xf32> -> vector<32x32xf32>
    %c13 = arith.constant 13 : index
    %c0_144 = arith.constant 0 : index
    %373 = vector.load %arg7[%c13, %c0_144] : memref<23x32xf32, #tpu.memory_space<vmem>>, vector<1x32xf32>
    %374 = vector.broadcast %373 : vector<1x32xf32> to vector<32x32xf32>
    %375 = arith.addf %372, %374 : vector<32x32xf32>
    %cst_145 = arith.constant 5.000000e-01 : f32
    %376 = vector.broadcast %cst_145 : f32 to vector<32x32xf32>
    %377 = arith.mulf %376, %375 : vector<32x32xf32>
    %cst_146 = arith.constant 0.797884583 : f32
    %378 = vector.broadcast %cst_146 : f32 to vector<32x32xf32>
    %379 = arith.mulf %375, %378 : vector<32x32xf32>
    %cst_147 = arith.constant 4.471500e-02 : f32
    %380 = vector.broadcast %cst_147 : f32 to vector<32x32xf32>
    %381 = arith.mulf %380, %375 : vector<32x32xf32>
    %382 = arith.mulf %381, %375 : vector<32x32xf32>
    %cst_148 = arith.constant 1.000000e+00 : f32
    %383 = vector.broadcast %cst_148 : f32 to vector<32x32xf32>
    %384 = arith.addf %383, %382 : vector<32x32xf32>
    %385 = arith.mulf %379, %384 : vector<32x32xf32>
    %386 = math.tanh %385 : vector<32x32xf32>
    %cst_149 = arith.constant 1.000000e+00 : f32
    %387 = vector.broadcast %cst_149 : f32 to vector<32x32xf32>
    %388 = arith.addf %387, %386 : vector<32x32xf32>
    %389 = arith.mulf %377, %388 : vector<32x32xf32>
    %390 = arith.addf %197, %389 : vector<32x32xf32>
    %cst_150 = arith.constant 0.707106769 : f32
    %391 = vector.broadcast %cst_150 : f32 to vector<32x32xf32>
    %392 = arith.mulf %390, %391 : vector<32x32xf32>
    %393 = tpu.concatenate %392, %0 in 1 : vector<32x32xf32>, vector<32x32xf32> -> vector<32x64xf32>
    %394 = vector.broadcast %1 : vector<32x1xf32> to vector<32x64xf32>
    %395 = arith.mulf %393, %394 : vector<32x64xf32>
    %c1_i32_151 = arith.constant 1 : i32
    %396 = tpu.dynamic_rotate %395 by %c1_i32_151 dim 0 : vector<32x64xf32>, i32 -> vector<32x64xf32>
    %397 = vector.broadcast %4 : vector<32x1xf32> to vector<32x64xf32>
    %398 = arith.mulf %396, %397 : vector<32x64xf32>
    %c31_i32_152 = arith.constant 31 : i32
    %399 = tpu.dynamic_rotate %395 by %c31_i32_152 dim 0 : vector<32x64xf32>, i32 -> vector<32x64xf32>
    %400 = vector.broadcast %6 : vector<32x1xf32> to vector<32x64xf32>
    %401 = arith.mulf %399, %400 : vector<32x64xf32>
    %402 = tpu.concatenate %398, %395, %401 in 1 : vector<32x64xf32>, vector<32x64xf32>, vector<32x64xf32> -> vector<32x192xf32>
    %c1792 = arith.constant 1792 : index
    %c0_153 = arith.constant 0 : index
    %403 = vector.load %arg6[%c1792, %c0_153] : memref<3008x32xf32, #tpu.memory_space<vmem>>, vector<192x32xf32>
    %cst_154 = arith.constant dense<0.000000e+00> : vector<32x32xf32>
    %404 = tpu.matmul %402, %403, %cst_154 {dimension_numbers = #tpu.dot_dimension_numbers<[1], [0], [0], [1], [0, 0, 1, 1], [], []>} : vector<32x192xf32>, vector<192x32xf32>, vector<32x32xf32> -> vector<32x32xf32>
    %c14 = arith.constant 14 : index
    %c0_155 = arith.constant 0 : index
    %405 = vector.load %arg7[%c14, %c0_155] : memref<23x32xf32, #tpu.memory_space<vmem>>, vector<1x32xf32>
    %406 = vector.broadcast %405 : vector<1x32xf32> to vector<32x32xf32>
    %407 = arith.addf %404, %406 : vector<32x32xf32>
    %cst_156 = arith.constant 5.000000e-01 : f32
    %408 = vector.broadcast %cst_156 : f32 to vector<32x32xf32>
    %409 = arith.mulf %408, %407 : vector<32x32xf32>
    %cst_157 = arith.constant 0.797884583 : f32
    %410 = vector.broadcast %cst_157 : f32 to vector<32x32xf32>
    %411 = arith.mulf %407, %410 : vector<32x32xf32>
    %cst_158 = arith.constant 4.471500e-02 : f32
    %412 = vector.broadcast %cst_158 : f32 to vector<32x32xf32>
    %413 = arith.mulf %412, %407 : vector<32x32xf32>
    %414 = arith.mulf %413, %407 : vector<32x32xf32>
    %cst_159 = arith.constant 1.000000e+00 : f32
    %415 = vector.broadcast %cst_159 : f32 to vector<32x32xf32>
    %416 = arith.addf %415, %414 : vector<32x32xf32>
    %417 = arith.mulf %411, %416 : vector<32x32xf32>
    %418 = math.tanh %417 : vector<32x32xf32>
    %cst_160 = arith.constant 1.000000e+00 : f32
    %419 = vector.broadcast %cst_160 : f32 to vector<32x32xf32>
    %420 = arith.addf %419, %418 : vector<32x32xf32>
    %421 = arith.mulf %409, %420 : vector<32x32xf32>
    %422 = vector.broadcast %1 : vector<32x1xf32> to vector<32x32xf32>
    %423 = arith.mulf %421, %422 : vector<32x32xf32>
    %c1_i32_161 = arith.constant 1 : i32
    %424 = tpu.dynamic_rotate %423 by %c1_i32_161 dim 0 : vector<32x32xf32>, i32 -> vector<32x32xf32>
    %425 = vector.broadcast %4 : vector<32x1xf32> to vector<32x32xf32>
    %426 = arith.mulf %424, %425 : vector<32x32xf32>
    %c31_i32_162 = arith.constant 31 : i32
    %427 = tpu.dynamic_rotate %423 by %c31_i32_162 dim 0 : vector<32x32xf32>, i32 -> vector<32x32xf32>
    %428 = vector.broadcast %6 : vector<32x1xf32> to vector<32x32xf32>
    %429 = arith.mulf %427, %428 : vector<32x32xf32>
    %430 = tpu.concatenate %426, %423, %429 in 1 : vector<32x32xf32>, vector<32x32xf32>, vector<32x32xf32> -> vector<32x96xf32>
    %c1984 = arith.constant 1984 : index
    %c0_163 = arith.constant 0 : index
    %431 = vector.load %arg6[%c1984, %c0_163] : memref<3008x32xf32, #tpu.memory_space<vmem>>, vector<96x32xf32>
    %cst_164 = arith.constant dense<0.000000e+00> : vector<32x32xf32>
    %432 = tpu.matmul %430, %431, %cst_164 {dimension_numbers = #tpu.dot_dimension_numbers<[1], [0], [0], [1], [0, 0, 1, 1], [], []>} : vector<32x96xf32>, vector<96x32xf32>, vector<32x32xf32> -> vector<32x32xf32>
    %c15 = arith.constant 15 : index
    %c0_165 = arith.constant 0 : index
    %433 = vector.load %arg7[%c15, %c0_165] : memref<23x32xf32, #tpu.memory_space<vmem>>, vector<1x32xf32>
    %434 = vector.broadcast %433 : vector<1x32xf32> to vector<32x32xf32>
    %435 = arith.addf %432, %434 : vector<32x32xf32>
    %cst_166 = arith.constant 5.000000e-01 : f32
    %436 = vector.broadcast %cst_166 : f32 to vector<32x32xf32>
    %437 = arith.mulf %436, %435 : vector<32x32xf32>
    %cst_167 = arith.constant 0.797884583 : f32
    %438 = vector.broadcast %cst_167 : f32 to vector<32x32xf32>
    %439 = arith.mulf %435, %438 : vector<32x32xf32>
    %cst_168 = arith.constant 4.471500e-02 : f32
    %440 = vector.broadcast %cst_168 : f32 to vector<32x32xf32>
    %441 = arith.mulf %440, %435 : vector<32x32xf32>
    %442 = arith.mulf %441, %435 : vector<32x32xf32>
    %cst_169 = arith.constant 1.000000e+00 : f32
    %443 = vector.broadcast %cst_169 : f32 to vector<32x32xf32>
    %444 = arith.addf %443, %442 : vector<32x32xf32>
    %445 = arith.mulf %439, %444 : vector<32x32xf32>
    %446 = math.tanh %445 : vector<32x32xf32>
    %cst_170 = arith.constant 1.000000e+00 : f32
    %447 = vector.broadcast %cst_170 : f32 to vector<32x32xf32>
    %448 = arith.addf %447, %446 : vector<32x32xf32>
    %449 = arith.mulf %437, %448 : vector<32x32xf32>
    %450 = tpu.concatenate %393, %449 in 1 : vector<32x64xf32>, vector<32x32xf32> -> vector<32x96xf32>
    %c2080 = arith.constant 2080 : index
    %c0_171 = arith.constant 0 : index
    %451 = vector.load %arg6[%c2080, %c0_171] : memref<3008x32xf32, #tpu.memory_space<vmem>>, vector<96x32xf32>
    %cst_172 = arith.constant dense<0.000000e+00> : vector<32x32xf32>
    %452 = tpu.matmul %450, %451, %cst_172 {dimension_numbers = #tpu.dot_dimension_numbers<[1], [0], [0], [1], [0, 0, 1, 1], [], []>} : vector<32x96xf32>, vector<96x32xf32>, vector<32x32xf32> -> vector<32x32xf32>
    %c16 = arith.constant 16 : index
    %c0_173 = arith.constant 0 : index
    %453 = vector.load %arg7[%c16, %c0_173] : memref<23x32xf32, #tpu.memory_space<vmem>>, vector<1x32xf32>
    %454 = vector.broadcast %453 : vector<1x32xf32> to vector<32x32xf32>
    %455 = arith.addf %452, %454 : vector<32x32xf32>
    %cst_174 = arith.constant 5.000000e-01 : f32
    %456 = vector.broadcast %cst_174 : f32 to vector<32x32xf32>
    %457 = arith.mulf %456, %455 : vector<32x32xf32>
    %cst_175 = arith.constant 0.797884583 : f32
    %458 = vector.broadcast %cst_175 : f32 to vector<32x32xf32>
    %459 = arith.mulf %455, %458 : vector<32x32xf32>
    %cst_176 = arith.constant 4.471500e-02 : f32
    %460 = vector.broadcast %cst_176 : f32 to vector<32x32xf32>
    %461 = arith.mulf %460, %455 : vector<32x32xf32>
    %462 = arith.mulf %461, %455 : vector<32x32xf32>
    %cst_177 = arith.constant 1.000000e+00 : f32
    %463 = vector.broadcast %cst_177 : f32 to vector<32x32xf32>
    %464 = arith.addf %463, %462 : vector<32x32xf32>
    %465 = arith.mulf %459, %464 : vector<32x32xf32>
    %466 = math.tanh %465 : vector<32x32xf32>
    %cst_178 = arith.constant 1.000000e+00 : f32
    %467 = vector.broadcast %cst_178 : f32 to vector<32x32xf32>
    %468 = arith.addf %467, %466 : vector<32x32xf32>
    %469 = arith.mulf %457, %468 : vector<32x32xf32>
    %470 = vector.extract_strided_slice %469 {offsets = [0, 0], sizes = [16, 32], strides = [1, 1]} : vector<32x32xf32> to vector<16x32xf32>
    %471 = vector.extract_strided_slice %469 {offsets = [16, 0], sizes = [16, 32], strides = [1, 1]} : vector<32x32xf32> to vector<16x32xf32>
    %cst_179 = arith.constant dense<0.000000e+00> : vector<16x16xf32>
    %472 = tpu.matmul %470, %471, %cst_179 {dimension_numbers = #tpu.dot_dimension_numbers<[1], [1], [0], [0], [0, 0, 1, 0], [], []>} : vector<16x32xf32>, vector<16x32xf32>, vector<16x16xf32> -> vector<16x16xf32>
    %c2_180 = arith.constant 2 : index
    %473 = memref.load %arg5[%c2_180] : memref<3xf32, #tpu.memory_space<smem>>
    %474 = vector.broadcast %473 : f32 to vector<16x16xf32>
    %475 = arith.mulf %472, %474 : vector<16x16xf32>
    %cst_181 = arith.constant 0.000000e+00 : f32
    %476 = vector.broadcast %cst_181 : f32 to vector<16x16xf32>
    %477 = arith.cmpf ogt, %2, %476 : vector<16x16xf32>
    %cst_182 = arith.constant -1.000000e+07 : f32
    %478 = vector.broadcast %cst_182 : f32 to vector<16x16xf32>
    %479 = arith.select %477, %475, %478 : vector<16x16xi1>, vector<16x16xf32>
    %cst_183 = arith.constant dense<0xFF800000> : vector<16xf32>
    %480 = vector.multi_reduction <maximumf>, %479, %cst_183 [0] : vector<16x16xf32> to vector<16xf32>
    %481 = vector.shape_cast %480 : vector<16xf32> to vector<1x16xf32>
    %482 = vector.broadcast %481 : vector<1x16xf32> to vector<16x16xf32>
    %483 = arith.subf %479, %482 : vector<16x16xf32>
    %484 = math.exp %483 : vector<16x16xf32>
    %cst_184 = arith.constant dense<0.000000e+00> : vector<16xf32>
    %485 = vector.multi_reduction <add>, %484, %cst_184 [0] : vector<16x16xf32> to vector<16xf32>
    %486 = vector.shape_cast %485 : vector<16xf32> to vector<1x16xf32>
    %487 = vector.broadcast %486 : vector<1x16xf32> to vector<16x16xf32>
    %488 = arith.divf %484, %487 : vector<16x16xf32>
    %cst_185 = arith.constant dense<0xFF800000> : vector<16xf32>
    %489 = vector.multi_reduction <maximumf>, %479, %cst_185 [1] : vector<16x16xf32> to vector<16xf32>
    %490 = vector.shape_cast %489 : vector<16xf32> to vector<16x1xf32>
    %491 = vector.broadcast %490 : vector<16x1xf32> to vector<16x16xf32>
    %492 = arith.subf %479, %491 : vector<16x16xf32>
    %493 = math.exp %492 : vector<16x16xf32>
    %cst_186 = arith.constant dense<0.000000e+00> : vector<16xf32>
    %494 = vector.multi_reduction <add>, %493, %cst_186 [1] : vector<16x16xf32> to vector<16xf32>
    %495 = vector.shape_cast %494 : vector<16xf32> to vector<16x1xf32>
    %496 = vector.broadcast %495 : vector<16x1xf32> to vector<16x16xf32>
    %497 = arith.divf %493, %496 : vector<16x16xf32>
    %498 = vector.extract_strided_slice %450 {offsets = [0, 0], sizes = [16, 96], strides = [1, 1]} : vector<32x96xf32> to vector<16x96xf32>
    %499 = vector.extract_strided_slice %450 {offsets = [16, 0], sizes = [16, 96], strides = [1, 1]} : vector<32x96xf32> to vector<16x96xf32>
    %cst_187 = arith.constant dense<0.000000e+00> : vector<16x96xf32>
    %500 = tpu.matmul %497, %499, %cst_187 {dimension_numbers = #tpu.dot_dimension_numbers<[1], [0], [0], [1], [0, 0, 1, 1], [], []>} : vector<16x16xf32>, vector<16x96xf32>, vector<16x96xf32> -> vector<16x96xf32>
    %cst_188 = arith.constant dense<0.000000e+00> : vector<16x96xf32>
    %501 = tpu.matmul %488, %498, %cst_188 {dimension_numbers = #tpu.dot_dimension_numbers<[0], [0], [1], [1], [0, 1, 1, 1], [], []>} : vector<16x16xf32>, vector<16x96xf32>, vector<16x96xf32> -> vector<16x96xf32>
    %502 = tpu.concatenate %500, %501 in 0 : vector<16x96xf32>, vector<16x96xf32> -> vector<32x96xf32>
    %503 = tpu.concatenate %450, %502 in 1 : vector<32x96xf32>, vector<32x96xf32> -> vector<32x192xf32>
    %c2176 = arith.constant 2176 : index
    %c0_189 = arith.constant 0 : index
    %504 = vector.load %arg6[%c2176, %c0_189] : memref<3008x32xf32, #tpu.memory_space<vmem>>, vector<192x32xf32>
    %cst_190 = arith.constant dense<0.000000e+00> : vector<32x32xf32>
    %505 = tpu.matmul %503, %504, %cst_190 {dimension_numbers = #tpu.dot_dimension_numbers<[1], [0], [0], [1], [0, 0, 1, 1], [], []>} : vector<32x192xf32>, vector<192x32xf32>, vector<32x32xf32> -> vector<32x32xf32>
    %c17 = arith.constant 17 : index
    %c0_191 = arith.constant 0 : index
    %506 = vector.load %arg7[%c17, %c0_191] : memref<23x32xf32, #tpu.memory_space<vmem>>, vector<1x32xf32>
    %507 = vector.broadcast %506 : vector<1x32xf32> to vector<32x32xf32>
    %508 = arith.addf %505, %507 : vector<32x32xf32>
    %cst_192 = arith.constant 5.000000e-01 : f32
    %509 = vector.broadcast %cst_192 : f32 to vector<32x32xf32>
    %510 = arith.mulf %509, %508 : vector<32x32xf32>
    %cst_193 = arith.constant 0.797884583 : f32
    %511 = vector.broadcast %cst_193 : f32 to vector<32x32xf32>
    %512 = arith.mulf %508, %511 : vector<32x32xf32>
    %cst_194 = arith.constant 4.471500e-02 : f32
    %513 = vector.broadcast %cst_194 : f32 to vector<32x32xf32>
    %514 = arith.mulf %513, %508 : vector<32x32xf32>
    %515 = arith.mulf %514, %508 : vector<32x32xf32>
    %cst_195 = arith.constant 1.000000e+00 : f32
    %516 = vector.broadcast %cst_195 : f32 to vector<32x32xf32>
    %517 = arith.addf %516, %515 : vector<32x32xf32>
    %518 = arith.mulf %512, %517 : vector<32x32xf32>
    %519 = math.tanh %518 : vector<32x32xf32>
    %cst_196 = arith.constant 1.000000e+00 : f32
    %520 = vector.broadcast %cst_196 : f32 to vector<32x32xf32>
    %521 = arith.addf %520, %519 : vector<32x32xf32>
    %522 = arith.mulf %510, %521 : vector<32x32xf32>
    %523 = arith.subf %450, %502 : vector<32x96xf32>
    %524 = tpu.concatenate %450, %523 in 1 : vector<32x96xf32>, vector<32x96xf32> -> vector<32x192xf32>
    %c2368 = arith.constant 2368 : index
    %c0_197 = arith.constant 0 : index
    %525 = vector.load %arg6[%c2368, %c0_197] : memref<3008x32xf32, #tpu.memory_space<vmem>>, vector<192x32xf32>
    %cst_198 = arith.constant dense<0.000000e+00> : vector<32x32xf32>
    %526 = tpu.matmul %524, %525, %cst_198 {dimension_numbers = #tpu.dot_dimension_numbers<[1], [0], [0], [1], [0, 0, 1, 1], [], []>} : vector<32x192xf32>, vector<192x32xf32>, vector<32x32xf32> -> vector<32x32xf32>
    %c18 = arith.constant 18 : index
    %c0_199 = arith.constant 0 : index
    %527 = vector.load %arg7[%c18, %c0_199] : memref<23x32xf32, #tpu.memory_space<vmem>>, vector<1x32xf32>
    %528 = vector.broadcast %527 : vector<1x32xf32> to vector<32x32xf32>
    %529 = arith.addf %526, %528 : vector<32x32xf32>
    %cst_200 = arith.constant 5.000000e-01 : f32
    %530 = vector.broadcast %cst_200 : f32 to vector<32x32xf32>
    %531 = arith.mulf %530, %529 : vector<32x32xf32>
    %cst_201 = arith.constant 0.797884583 : f32
    %532 = vector.broadcast %cst_201 : f32 to vector<32x32xf32>
    %533 = arith.mulf %529, %532 : vector<32x32xf32>
    %cst_202 = arith.constant 4.471500e-02 : f32
    %534 = vector.broadcast %cst_202 : f32 to vector<32x32xf32>
    %535 = arith.mulf %534, %529 : vector<32x32xf32>
    %536 = arith.mulf %535, %529 : vector<32x32xf32>
    %cst_203 = arith.constant 1.000000e+00 : f32
    %537 = vector.broadcast %cst_203 : f32 to vector<32x32xf32>
    %538 = arith.addf %537, %536 : vector<32x32xf32>
    %539 = arith.mulf %533, %538 : vector<32x32xf32>
    %540 = math.tanh %539 : vector<32x32xf32>
    %cst_204 = arith.constant 1.000000e+00 : f32
    %541 = vector.broadcast %cst_204 : f32 to vector<32x32xf32>
    %542 = arith.addf %541, %540 : vector<32x32xf32>
    %543 = arith.mulf %531, %542 : vector<32x32xf32>
    %544 = arith.mulf %450, %502 : vector<32x96xf32>
    %545 = tpu.concatenate %450, %544 in 1 : vector<32x96xf32>, vector<32x96xf32> -> vector<32x192xf32>
    %c2560 = arith.constant 2560 : index
    %c0_205 = arith.constant 0 : index
    %546 = vector.load %arg6[%c2560, %c0_205] : memref<3008x32xf32, #tpu.memory_space<vmem>>, vector<192x32xf32>
    %cst_206 = arith.constant dense<0.000000e+00> : vector<32x32xf32>
    %547 = tpu.matmul %545, %546, %cst_206 {dimension_numbers = #tpu.dot_dimension_numbers<[1], [0], [0], [1], [0, 0, 1, 1], [], []>} : vector<32x192xf32>, vector<192x32xf32>, vector<32x32xf32> -> vector<32x32xf32>
    %c19 = arith.constant 19 : index
    %c0_207 = arith.constant 0 : index
    %548 = vector.load %arg7[%c19, %c0_207] : memref<23x32xf32, #tpu.memory_space<vmem>>, vector<1x32xf32>
    %549 = vector.broadcast %548 : vector<1x32xf32> to vector<32x32xf32>
    %550 = arith.addf %547, %549 : vector<32x32xf32>
    %cst_208 = arith.constant 5.000000e-01 : f32
    %551 = vector.broadcast %cst_208 : f32 to vector<32x32xf32>
    %552 = arith.mulf %551, %550 : vector<32x32xf32>
    %cst_209 = arith.constant 0.797884583 : f32
    %553 = vector.broadcast %cst_209 : f32 to vector<32x32xf32>
    %554 = arith.mulf %550, %553 : vector<32x32xf32>
    %cst_210 = arith.constant 4.471500e-02 : f32
    %555 = vector.broadcast %cst_210 : f32 to vector<32x32xf32>
    %556 = arith.mulf %555, %550 : vector<32x32xf32>
    %557 = arith.mulf %556, %550 : vector<32x32xf32>
    %cst_211 = arith.constant 1.000000e+00 : f32
    %558 = vector.broadcast %cst_211 : f32 to vector<32x32xf32>
    %559 = arith.addf %558, %557 : vector<32x32xf32>
    %560 = arith.mulf %554, %559 : vector<32x32xf32>
    %561 = math.tanh %560 : vector<32x32xf32>
    %cst_212 = arith.constant 1.000000e+00 : f32
    %562 = vector.broadcast %cst_212 : f32 to vector<32x32xf32>
    %563 = arith.addf %562, %561 : vector<32x32xf32>
    %564 = arith.mulf %552, %563 : vector<32x32xf32>
    %565 = tpu.concatenate %522, %543, %564 in 1 : vector<32x32xf32>, vector<32x32xf32>, vector<32x32xf32> -> vector<32x96xf32>
    %c2752 = arith.constant 2752 : index
    %c0_213 = arith.constant 0 : index
    %566 = vector.load %arg6[%c2752, %c0_213] : memref<3008x32xf32, #tpu.memory_space<vmem>>, vector<96x32xf32>
    %cst_214 = arith.constant dense<0.000000e+00> : vector<32x32xf32>
    %567 = tpu.matmul %565, %566, %cst_214 {dimension_numbers = #tpu.dot_dimension_numbers<[1], [0], [0], [1], [0, 0, 1, 1], [], []>} : vector<32x96xf32>, vector<96x32xf32>, vector<32x32xf32> -> vector<32x32xf32>
    %c20 = arith.constant 20 : index
    %c0_215 = arith.constant 0 : index
    %568 = vector.load %arg7[%c20, %c0_215] : memref<23x32xf32, #tpu.memory_space<vmem>>, vector<1x32xf32>
    %569 = vector.broadcast %568 : vector<1x32xf32> to vector<32x32xf32>
    %570 = arith.addf %567, %569 : vector<32x32xf32>
    %cst_216 = arith.constant 5.000000e-01 : f32
    %571 = vector.broadcast %cst_216 : f32 to vector<32x32xf32>
    %572 = arith.mulf %571, %570 : vector<32x32xf32>
    %cst_217 = arith.constant 0.797884583 : f32
    %573 = vector.broadcast %cst_217 : f32 to vector<32x32xf32>
    %574 = arith.mulf %570, %573 : vector<32x32xf32>
    %cst_218 = arith.constant 4.471500e-02 : f32
    %575 = vector.broadcast %cst_218 : f32 to vector<32x32xf32>
    %576 = arith.mulf %575, %570 : vector<32x32xf32>
    %577 = arith.mulf %576, %570 : vector<32x32xf32>
    %cst_219 = arith.constant 1.000000e+00 : f32
    %578 = vector.broadcast %cst_219 : f32 to vector<32x32xf32>
    %579 = arith.addf %578, %577 : vector<32x32xf32>
    %580 = arith.mulf %574, %579 : vector<32x32xf32>
    %581 = math.tanh %580 : vector<32x32xf32>
    %cst_220 = arith.constant 1.000000e+00 : f32
    %582 = vector.broadcast %cst_220 : f32 to vector<32x32xf32>
    %583 = arith.addf %582, %581 : vector<32x32xf32>
    %584 = arith.mulf %572, %583 : vector<32x32xf32>
    %cst_221 = arith.constant 0.000000e+00 : f32
    %585 = vector.broadcast %cst_221 : f32 to vector<32x1xf32>
    %586 = arith.cmpf ogt, %1, %585 : vector<32x1xf32>
    %cst_222 = arith.constant -1.000000e+30 : f32
    %587 = vector.shape_cast %586 : vector<32x1xi1> to vector<32x1xi1>
    %588 = vector.broadcast %587 : vector<32x1xi1> to vector<32x32xi1>
    %589 = vector.broadcast %cst_222 : f32 to vector<32x32xf32>
    %590 = arith.select %588, %584, %589 : vector<32x32xi1>, vector<32x32xf32>
    %591 = vector.extract_strided_slice %590 {offsets = [0, 0], sizes = [8, 32], strides = [1, 1]} : vector<32x32xf32> to vector<8x32xf32>
    %592 = vector.extract_strided_slice %590 {offsets = [8, 0], sizes = [8, 32], strides = [1, 1]} : vector<32x32xf32> to vector<8x32xf32>
    %593 = vector.extract_strided_slice %590 {offsets = [16, 0], sizes = [8, 32], strides = [1, 1]} : vector<32x32xf32> to vector<8x32xf32>
    %594 = vector.extract_strided_slice %590 {offsets = [24, 0], sizes = [8, 32], strides = [1, 1]} : vector<32x32xf32> to vector<8x32xf32>
    %595 = vector.shape_cast %591 : vector<8x32xf32> to vector<1x8x32xf32>
    %596 = vector.shape_cast %592 : vector<8x32xf32> to vector<1x8x32xf32>
    %597 = vector.shape_cast %593 : vector<8x32xf32> to vector<1x8x32xf32>
    %598 = vector.shape_cast %594 : vector<8x32xf32> to vector<1x8x32xf32>
    %599 = tpu.concatenate %595, %596, %597, %598 in 0 : vector<1x8x32xf32>, vector<1x8x32xf32>, vector<1x8x32xf32>, vector<1x8x32xf32> -> vector<4x8x32xf32>
    %cst_223 = arith.constant dense<0xFF800000> : vector<4x32xf32>
    %600 = vector.multi_reduction <maximumf>, %599, %cst_223 [1] : vector<4x8x32xf32> to vector<4x32xf32>
    %601 = vector.extract_strided_slice %600 {offsets = [0, 0], sizes = [2, 32], strides = [1, 1]} : vector<4x32xf32> to vector<2x32xf32>
    %602 = vector.extract_strided_slice %600 {offsets = [2, 0], sizes = [2, 32], strides = [1, 1]} : vector<4x32xf32> to vector<2x32xf32>
    %603 = arith.subf %601, %602 : vector<2x32xf32>
    %604 = arith.mulf %601, %602 : vector<2x32xf32>
    %605 = tpu.concatenate %601, %602, %603, %604 in 1 : vector<2x32xf32>, vector<2x32xf32>, vector<2x32xf32>, vector<2x32xf32> -> vector<2x128xf32>
    %c2848 = arith.constant 2848 : index
    %c0_224 = arith.constant 0 : index
    %606 = vector.load %arg6[%c2848, %c0_224] : memref<3008x32xf32, #tpu.memory_space<vmem>>, vector<128x32xf32>
    %cst_225 = arith.constant dense<0.000000e+00> : vector<2x32xf32>
    %607 = tpu.matmul %605, %606, %cst_225 {dimension_numbers = #tpu.dot_dimension_numbers<[1], [0], [0], [1], [0, 0, 1, 1], [], []>} : vector<2x128xf32>, vector<128x32xf32>, vector<2x32xf32> -> vector<2x32xf32>
    %c21 = arith.constant 21 : index
    %c0_226 = arith.constant 0 : index
    %608 = vector.load %arg7[%c21, %c0_226] : memref<23x32xf32, #tpu.memory_space<vmem>>, vector<1x32xf32>
    %609 = vector.broadcast %608 : vector<1x32xf32> to vector<2x32xf32>
    %610 = arith.addf %607, %609 : vector<2x32xf32>
    %cst_227 = arith.constant 5.000000e-01 : f32
    %611 = vector.broadcast %cst_227 : f32 to vector<2x32xf32>
    %612 = arith.mulf %611, %610 : vector<2x32xf32>
    %cst_228 = arith.constant 0.797884583 : f32
    %613 = vector.broadcast %cst_228 : f32 to vector<2x32xf32>
    %614 = arith.mulf %610, %613 : vector<2x32xf32>
    %cst_229 = arith.constant 4.471500e-02 : f32
    %615 = vector.broadcast %cst_229 : f32 to vector<2x32xf32>
    %616 = arith.mulf %615, %610 : vector<2x32xf32>
    %617 = arith.mulf %616, %610 : vector<2x32xf32>
    %cst_230 = arith.constant 1.000000e+00 : f32
    %618 = vector.broadcast %cst_230 : f32 to vector<2x32xf32>
    %619 = arith.addf %618, %617 : vector<2x32xf32>
    %620 = arith.mulf %614, %619 : vector<2x32xf32>
    %621 = math.tanh %620 : vector<2x32xf32>
    %cst_231 = arith.constant 1.000000e+00 : f32
    %622 = vector.broadcast %cst_231 : f32 to vector<2x32xf32>
    %623 = arith.addf %622, %621 : vector<2x32xf32>
    %624 = arith.mulf %612, %623 : vector<2x32xf32>
    %c2976 = arith.constant 2976 : index
    %c0_232 = arith.constant 0 : index
    %625 = vector.load %arg6[%c2976, %c0_232] : memref<3008x32xf32, #tpu.memory_space<vmem>>, vector<32x32xf32>
    %cst_233 = arith.constant dense<0.000000e+00> : vector<2x32xf32>
    %626 = tpu.matmul %624, %625, %cst_233 {dimension_numbers = #tpu.dot_dimension_numbers<[1], [0], [0], [1], [0, 0, 1, 1], [], []>} : vector<2x32xf32>, vector<32x32xf32>, vector<2x32xf32> -> vector<2x32xf32>
    %c22 = arith.constant 22 : index
    %c0_234 = arith.constant 0 : index
    %627 = vector.load %arg7[%c22, %c0_234] : memref<23x32xf32, #tpu.memory_space<vmem>>, vector<1x32xf32>
    %628 = vector.broadcast %627 : vector<1x32xf32> to vector<2x32xf32>
    %629 = arith.addf %626, %628 : vector<2x32xf32>
    %630 = vector.extract_strided_slice %629 {offsets = [0, 0], sizes = [2, 2], strides = [1, 1]} : vector<2x32xf32> to vector<2x2xf32>
    %c0_235 = arith.constant 0 : index
    %c0_236 = arith.constant 0 : index
    %631 = vector.load %arg8[%c0_235, %c0_236] : memref<2x2xf32, #tpu.memory_space<vmem>>, vector<2x2xf32>
    tpu.vector_store %arg8[%c0_235, %c0_236], %630 {strides = array<i32>} : memref<2x2xf32, #tpu.memory_space<vmem>>, vector<2x2xf32>,
    return
  }
  func.func @transform_0(%arg0: i32) -> (i32, i32) {
    %c0_i32 = arith.constant 0 : i32
    %c0_i32_0 = arith.constant 0 : i32
    %c0_i32_1 = arith.constant 0 : i32
    return %c0_i32, %c0_i32_0 : i32, i32
  }
  func.func @transform_1(%arg0: i32) -> (i32, i32) {
    %c0_i32 = arith.constant 0 : i32
    %c0_i32_0 = arith.constant 0 : i32
    %c0_i32_1 = arith.constant 0 : i32
    return %c0_i32, %c0_i32_0 : i32, i32
  }
  func.func @transform_2(%arg0: i32) -> (i32, i32) {
    %c0_i32 = arith.constant 0 : i32
    %c0_i32_0 = arith.constant 0 : i32
    %c0_i32_1 = arith.constant 0 : i32
    return %c0_i32, %c0_i32_0 : i32, i32
  }
  func.func @transform_3(%arg0: i32) -> (i32, i32, i32) {
    %c0_i32 = arith.constant 0 : i32
    %c0_i32_0 = arith.constant 0 : i32
    %c0_i32_1 = arith.constant 0 : i32
    %c0_i32_2 = arith.constant 0 : i32
    return %c0_i32, %c0_i32_0, %c0_i32_1 : i32, i32, i32
  }
  func.func @transform_4(%arg0: i32) -> i32 {
    %c0_i32 = arith.constant 0 : i32
    %c0_i32_0 = arith.constant 0 : i32
    return %c0_i32 : i32
  }
  func.func @transform_5(%arg0: i32) -> (i32, i32) {
    %c0_i32 = arith.constant 0 : i32
    %c0_i32_0 = arith.constant 0 : i32
    %c0_i32_1 = arith.constant 0 : i32
    return %c0_i32, %c0_i32_0 : i32, i32
  }
  func.func @transform_6(%arg0: i32) -> (i32, i32) {
    %c0_i32 = arith.constant 0 : i32
    %c0_i32_0 = arith.constant 0 : i32
    %c0_i32_1 = arith.constant 0 : i32
    return %c0_i32, %c0_i32_0 : i32, i32
  }
  func.func @transform_7(%arg0: i32) -> (i32, i32) {
    %c0_i32 = arith.constant 0 : i32
    %c0_i32_0 = arith.constant 0 : i32
    %c0_i32_1 = arith.constant 0 : i32
    return %c0_i32, %c0_i32_0 : i32, i32
  }
}

</mosaic_0001>

<bundles_post_ra>
// kernel: mul.13
= control target key start
LH: loop header
LB: loop body
LE: loop exit
PB: predicated region body
PF: predicated region fallthrough
CT: control target
= control target key end

     0   :  { %vm7_vm0 = vcmask 64512   ;;  %vm13_vm1 = vcmask 130112   ;;  %s39_s0 = inlined_call_operand.vmem [shape: f32[2,8], index: 0, kind: input, shape index: {}]   ;;  %s40_s1 = inlined_call_operand.vmem [shape: f32[16], index: 1, kind: output, shape index: {}]  }
   0x1   :  { %v4_v0 = vld [vmem:[%s39_s0] sm:$0x3]  ;;  %s22_s0 = smov 8  }
   0x2   :  { %5 = vst [vmem:[#allocation1] sm:$0x3] %v4_v0 }
   0x9   :  { %v10_v1 = vld [vmem:[#allocation1 + $0x1] sm:$0x1]   ;;  %v6_v2 = vld [vmem:[#allocation1] sm:$0x1]  }
   0xa   :  { %11 = vrot.lane.b32.xlu0 %v10_v1, %s22_s0  ;;  %8 = vst.msk [vmem:[#allocation0] sm:$0x1] %vm7_vm0, %v6_v2  }
  0x7c   :  { %v12_v3 = vpop.permute.xlu0 %11  }
  0x7d   :  { %14 = vst.msk [vmem:[#allocation0] sm:$0x1] %vm13_vm1, %v12_v3  }
  0x84   :  { %v18_v4 = vld [vmem:[#allocation0] sm:$0x1] }
  0x85   :  { %20 = vst [vmem:[%s40_s1] sm:$0x1] %v18_v4 }

// kernel: model_forward.1
= control target key start
LH: loop header
LB: loop body
LE: loop exit
PB: predicated region body
PF: predicated region fallthrough
CT: control target
= control target key end

     0   :  { %12 = vsyncpa [#allocation3], 0  ;;  %s9576_s0 = inlined_call_operand.vmem [shape: f32[32,32], index: 0, kind: input, shape index: {}]   ;;  %s9577_s1 = inlined_call_operand.vmem [shape: f32[32,1], index: 1, kind: input, shape index: {}]   ;;  %s9578_s2 = inlined_call_operand.vmem [shape: f32[16,16], index: 2, kind: input, shape index: {}]   ;;  %s9579_s3 = inlined_call_operand.vmem [shape: f32[3,32,1], index: 3, kind: input, shape index: {}]   ;;  %s9580_s4 = inlined_call_operand.vmem [shape: f32[3], index: 4, kind: input, shape index: {}]   ;;  %s9581_s5 = inlined_call_operand.vmem [shape: f32[3008,32], index: 5, kind: input, shape index: {}]   ;;  %s9582_s6 = inlined_call_operand.vmem [shape: f32[23,32], index: 6, kind: input, shape index: {}]   ;;  %s9583_s7 = inlined_call_operand.vmem [shape: f32[2,2], index: 7, kind: output, shape index: {}]  }
   0x1   :  { %s27_s26 = sshll.u32 %s9580_s4, 4  ;;  %s28_s26 = int_to_ptr.vmem [resolvable:$true] %s27_s26 }
   0x2   :  { %s7246_s27 = scalar_lea.vmem %s28_s26, 16  ;;  %p7251_p1 = scmp.lt.s32.totalorder %s28_s26, %s28_s26 }
   0x3   :  { %p7247_p0 = scmp.ne.s32.totalorder %s28_s26, %s7246_s27  ;;  %p7252_p2 = scmp.lt.s32.totalorder %s7246_s27, %s7246_s27 }
   0x5   :  { %p7253_p3 = por %p7252_p2, %p7251_p1 }
   0x7   :  { %p7254_p4 = pnand %p7253_p3, %p7247_p0 }
   0x9   :  { %7257 = shalt.err (!%p7254_p4)
}
   0xa   :  { %s7260_s28 = smov [#allocation2]  }
   0xb   :  { %30 = dma.vmem_to_smem %s28_s26, 16, %s7260_s28, [#allocation3]  }
   0xc   :  { %7258 = dma.done.wait [#allocation3], 16  }
   0xd   :  { %7259 = vsyncadd [#allocation3], 4294967280 }
   0xe   :  { %38 = sfence }
   0xf   :  { %v45_v0 = vld [vmem:[%s9577_s1 + $0x10] sm:$0xff]  ;;  %v43_v1 = vld [vmem:[%s9577_s1] sm:$0xff]  ;;  %v7261_v2 = vmov 0   ;;  %v46_v3 = vld [vmem:[%s9577_s1 + $0x18] sm:$0xff]  ;;  %v86_v29 = vlaneseq  ;;  %s7262_s12 = smov 32   ;;  %vm182_vm2 = vcmask 261120  }
  0x10   :  { %6995 = vset.pattern.permute.xlu1 %v7261_v2  ;;  %6994 = vset.pattern.permute.xlu0 %v7261_v2  ;;  %v44_v4 = vld [vmem:[%s9577_s1 + $0x8] sm:$0xff]  ;;  %v5383_v6 = vld [vmem:[%s9579_s3 + $0x40] sm:$0xff]  ;;  %v5386_v7 = vld [vmem:[%s9579_s3 + $0x58] sm:$0xff]  ;;  %vm187_vm3 = vcmask 523264   ;;  %vm209_vm4 = vcmask 785408   ;;  %s814_s13 = sld [smem:[#allocation2]] }
  0x11   :  { %70 = vperm.xlu1 %6995, %v45_v0   ;;  %60 = vperm.xlu0 %6994, %v43_v1   ;;  %v5384_v5 = vld [vmem:[%s9579_s3 + $0x48] sm:$0xff]  ;;  %v5385_v8 = vld [vmem:[%s9579_s3 + $0x50] sm:$0xff]  ;;  %v49_v10 = vld [vmem:[%s9579_s3] sm:$0xff]  ;;  %v7413_v40 = vshrl.u32 %v86_v29, 7  ;;  %vm822_vm8 = vcmask 130048   ;;  %s5437_s10 = sld [smem:[#allocation2 + $0x1]] }
  0x12   :  { %v50_v9 = vld [vmem:[%s9579_s3 + $0x8] sm:$0xff]  ;;  %v52_v11 = vld [vmem:[%s9579_s3 + $0x18] sm:$0xff]  ;;  %v51_v12 = vld [vmem:[%s9579_s3 + $0x10] sm:$0xff]  ;;  %s7263_s3 = smov 64   ;;  %s7265_s9 = smov 96  }
  0x13   :  { %v192_v13 = vld [vmem:[%s9581_s5] sm:$0xff]  ;;  %v193_v14 = vld [vmem:[%s9581_s5 + $0x8] sm:$0xff]  ;;  %v194_v15 = vld [vmem:[%s9581_s5 + $0x10] sm:$0xff]  ;;  %vm121_vm0 = vcmp.lt.s32.totalorder %v7413_v40, 7  ;;  %vm88_vm1 = vcmp.lt.s32.totalorder %v7413_v40, 1  ;;  %s5481_s23 = sld [smem:[#allocation2 + $0x2]] }
  0x14   :  { %v6298_v16 = vpack.c.bf16 %v193_v14, %v192_v13  ;;  %v195_v17 = vld [vmem:[%s9581_s5 + $0x18] sm:$0xff]  ;;  %v196_v19 = vld [vmem:[%s9581_s5 + $0x20] sm:$0xff]  ;;  %v197_v20 = vld [vmem:[%s9581_s5 + $0x28] sm:$0xff] }
  0x15   :  { %75 = vperm.xlu1 %6995, %v46_v3   ;;  %65 = vperm.xlu0 %6994, %v44_v4   ;;  %v6302_v18 = vpack.c.bf16 %v195_v17, %v194_v15  ;;  %v6306_v21 = vpack.c.bf16 %v197_v20, %v196_v19  ;;  %v198_v22 = vld [vmem:[%s9581_s5 + $0x30] sm:$0xff]  ;;  %v199_v23 = vld [vmem:[%s9581_s5 + $0x38] sm:$0xff]  ;;  %v200_v25 = vld [vmem:[%s9581_s5 + $0x40] sm:$0xff] }
  0x16   :  { %6299 = vmatprep.subr.bf16.mxu0 %v6298_v16  ;;  %v6310_v24 = vpack.c.bf16 %v199_v23, %v198_v22  ;;  %v201_v26 = vld [vmem:[%s9581_s5 + $0x48] sm:$0xff]  ;;  %v7382_v28 = vld [vmem:[%s9576_s0] sm:$0xff]  ;;  %v202_v30 = vld [vmem:[%s9581_s5 + $0x50] sm:$0xff] }
  0x17   :  { %6301 = vmatpush3.bf16.msra.mxu0 %v6298_v16  ;;  %v6314_v27 = vpack.c.bf16 %v201_v26, %v200_v25  ;;  %v203_v31 = vld [vmem:[%s9581_s5 + $0x58] sm:$0xff]  ;;  %v7393_v32 = vld [vmem:[%s9576_s0 + $0x10] sm:$0xff]  ;;  %v7404_v37 = vld [vmem:[%s9576_s0 + $0x8] sm:$0xff] }
  0x18   :  { %6303 = vmatprep.subr.bf16.mxu0 %v6302_v18  ;;  %v6318_v33 = vpack.c.bf16 %v203_v31, %v202_v30  ;;  %v7411_v39 = vld [vmem:[%s9576_s0 + $0x18] sm:$0xff]  ;;  %v411_v31 = vld [vmem:[%s9581_s5 + $0x60] sm:$0xff]  ;;  %vm7633_vm5 = vmpackc.low %vm182_vm2, %vm182_vm2 }
  0x19   :  { %133 = vperm.xlu1 %6995, %v5384_v5   ;;  %128 = vperm.xlu0 %6994, %v5383_v6  }
  0x1b   :  { %6305 = vmatpush3.bf16.msra.mxu0 %v6302_v18 }
  0x1c   :  { %6307 = vmatprep.subr.bf16.mxu0 %v6306_v21 }
  0x1d   :  { %143 = vperm.xlu1 %6995, %v5386_v7   ;;  %138 = vperm.xlu0 %6994, %v5385_v8  }
  0x1f   :  { %6309 = vmatpush3.bf16.msra.mxu0 %v6306_v21 }
  0x20   :  { %6311 = vmatprep.subr.bf16.mxu0 %v6310_v24 }
  0x21   :  { %100 = vperm.xlu1 %6995, %v50_v9   ;;  %95 = vperm.xlu0 %6994, %v49_v10  }
  0x23   :  { %6313 = vmatpush3.bf16.msra.mxu0 %v6310_v24 }
  0x24   :  { %6315 = vmatprep.subr.bf16.mxu0 %v6314_v27 }
  0x25   :  { %110 = vperm.xlu1 %6995, %v52_v11   ;;  %105 = vperm.xlu0 %6994, %v51_v12  }
  0x27   :  { %6317 = vmatpush3.bf16.msra.mxu0 %v6314_v27 }
  0x28   :  { %6319 = vmatprep.subr.bf16.mxu0 %v6318_v33 }
  0x2b   :  { %6321 = vmatpush3.bf16.msra.mxu0 %v6318_v33  ;;  %v412_v33 = vld [vmem:[%s9581_s5 + $0x68] sm:$0xff] }
  0x90   :  { %v7395_v34 = vpop.permute.xlu1 %70  ;;  %v7397_v35 = vpop.permute.xlu0 %60 }
  0x91   :  { %v78_v36 = vmul.f32 %v7397_v35, %v7382_v28  ;;  %v80_v38 = vmul.f32 %v7395_v34, %v7393_v32 }
  0x93   :  { %154 = vrot.lane.b32.xlu0 %v78_v36, %s7262_s12  ;;  %v117_v45 = vrot.slane %v78_v36, 1  ;;  %v119_v46 = vrot.slane %v80_v38, 1  ;;  %v84_v49 = vrot.slane %v80_v38, 7  ;;  %v82_v51 = vrot.slane %v78_v36, 7  ;;  %v413_v36 = vld [vmem:[%s9581_s5 + $0x70] sm:$0xff] }
  0x94   :  { %v7416_v41 = vpop.permute.xlu1 %75  ;;  %v7418_v42 = vpop.permute.xlu0 %65 }
  0x95   :  { %v79_v43 = vmul.f32 %v7418_v42, %v7404_v37  ;;  %v81_v44 = vmul.f32 %v7416_v41, %v7411_v39 }
  0x97   :  { %156 = vrot.lane.b32.xlu1 %v79_v43, %s7262_s12  ;;  %v83_v47 = vrot.slane %v79_v43, 7  ;;  %v118_v48 = vrot.slane %v79_v43, 1  ;;  %158 = vrot.lane.b32.xlu0 %v80_v38, %s7262_s12  ;;  %v85_v50 = vrot.slane %v81_v44, 7  ;;  %v120_v54 = vrot.slane %v81_v44, 1  ;;  %v414_v43 = vld [vmem:[%s9581_s5 + $0x78] sm:$0xff] }
  0x98   :  { %v7428_v52 = vpop.permute.xlu1 %133  ;;  %v7430_v53 = vpop.permute.xlu0 %128  ;;  %v6322_v38 = vpack.c.bf16 %v412_v33, %v411_v31 }
  0x99   :  { %v124_v55 = vsel %vm121_vm0, %v117_v45, %v118_v48  ;;  %v123_v57 = vsel %vm121_vm0, %v118_v48, %v119_v46  ;;  %v92_v58 = vsel %vm88_vm1, %v85_v50, %v82_v51  ;;  %v91_v59 = vsel %vm88_vm1, %v82_v51, %v83_v47  ;;  %v417_v48 = vld [vmem:[%s9581_s5 + $0x90] sm:$0xff]  ;;  %v5387_v51 = vld [vmem:[%s9582_s6] ss:$0 sm:$0xff] }
  0x9a   :  { %v146_v56 = vmul.f32 %v7430_v53, %v124_v55  ;;  %v90_v60 = vsel %vm88_vm1, %v83_v47, %v84_v49  ;;  %v89_v61 = vsel %vm88_vm1, %v84_v49, %v85_v50  ;;  %v122_v63 = vsel %vm121_vm0, %v119_v46, %v120_v54  ;;  %v416_v46 = vld [vmem:[%s9581_s5 + $0x88] sm:$0xff]  ;;  %6323 = vmatprep.subr.bf16.mxu1 %v6322_v38  ;;  %v418_v49 = vld [vmem:[%s9581_s5 + $0x98] sm:$0xff] }
  0x9b   :  { %160 = vrot.lane.b32.xlu1 %v81_v44, %s7262_s12  ;;  %v147_v0 = vmul.f32 %v7428_v52, %v123_v57  ;;  %v125_v4 = vsel %vm121_vm0, %v120_v54, %v117_v45  ;;  %v6326_v44 = vpack.c.bf16 %v414_v43, %v413_v36  ;;  %v415_v45 = vld [vmem:[%s9581_s5 + $0x80] sm:$0xff]  ;;  %6325 = vmatpush3.bf16.msra.mxu1 %v6322_v38 }
  0x9c   :  { %v7446_v62 = vpop.permute.xlu0 %138  ;;  %170 = vrot.lane.b32.xlu0 %v146_v56, %s7263_s3  ;;  %v7453_v3 = vpop.permute.xlu1 %143  ;;  %v6330_v47 = vpack.c.bf16 %v416_v46, %v415_v45  ;;  %v6334_v50 = vpack.c.bf16 %v418_v49, %v417_v48 }
  0x9d   :  { %v148_v1 = vmul.f32 %v7446_v62, %v122_v63  ;;  %v149_v5 = vmul.f32 %v7453_v3, %v125_v4  ;;  %6327 = vmatprep.subr.bf16.mxu1 %v6326_v44 }
  0x9f   :  { %172 = vrot.lane.b32.xlu1 %v147_v0, %s7263_s3  ;;  %6329 = vmatpush3.bf16.msra.mxu1 %v6326_v44 }
  0xa0   :  { %174 = vrot.lane.b32.xlu0 %v148_v1, %s7263_s3  ;;  %v7461_v6 = vpop.permute.xlu0 %95  ;;  %v7463_v7 = vpop.permute.xlu1 %100  ;;  %6331 = vmatprep.subr.bf16.mxu1 %v6330_v47 }
  0xa1   :  { %v113_v13 = vmul.f32 %v7461_v6, %v92_v58  ;;  %v114_v17 = vmul.f32 %v7463_v7, %v91_v59 }
  0xa3   :  { %176 = vrot.lane.b32.xlu1 %v149_v5, %s7263_s3  ;;  %6333 = vmatpush3.bf16.msra.mxu1 %v6330_v47 }
  0xa4   :  { %v7465_v8 = vpop.permute.xlu0 %105  ;;  %v7467_v9 = vpop.permute.xlu1 %110  ;;  %6335 = vmatprep.subr.bf16.mxu1 %v6334_v50 }
  0xa5   :  { %v115_v19 = vmul.f32 %v7465_v8, %v90_v60  ;;  %v116_v25 = vmul.f32 %v7467_v9, %v89_v61 }
  0xa7   :  { %6337 = vmatpush3.bf16.msra.mxu1 %v6334_v50 }
 0x105   :  { %v155_v10 = vpop.permute.xlu0 %154 }
 0x106   :  { %v183_v15 = vsel %vm182_vm2, %v113_v13, %v155_v10 }
 0x109   :  { %v157_v11 = vpop.permute.xlu1 %156  ;;  %v159_v12 = vpop.permute.xlu0 %158 }
 0x10a   :  { %v184_v20 = vsel %vm182_vm2, %v114_v17, %v157_v11  ;;  %v185_v22 = vsel %vm182_vm2, %v115_v19, %v159_v12 }
 0x10d   :  { %v161_v14 = vpop.permute.xlu1 %160 }
 0x10e   :  { %v171_v16 = vpop.permute.xlu0 %170  ;;  %v186_v27 = vsel %vm182_vm2, %v116_v25, %v161_v14  ;;  %v419_v25 = vld [vmem:[%s9581_s5 + $0xa0] sm:$0xff] }
 0x10f   :  { %v188_v18 = vsel %vm187_vm3, %v183_v15, %v171_v16 }
 0x110   :  { %5807 = vmatprep.mubr.msk.f32.mxu0 %vm209_vm4, %v188_v18 }
 0x111   :  { %v173_v21 = vpop.permute.xlu1 %172 }
 0x112   :  { %v189_v23 = vsel %vm187_vm3, %v184_v20, %v173_v21  ;;  %v175_v24 = vpop.permute.xlu0 %174 }
 0x113   :  { %v190_v26 = vsel %vm187_vm3, %v185_v22, %v175_v24  ;;  %5808 = vmatmul.mubr.msk.f32.vlgmr.msra.gmra.mrb[0].mxu0 %vm209_vm4, %v189_v23 }
 0x114   :  { %5810 = vmatprep.mubr.msk.f32.mxu0 %vm209_vm4, %v190_v26  ;;  %v420_v26 = vld [vmem:[%s9581_s5 + $0xa8] sm:$0xff] }
 0x115   :  { %v177_v29 = vpop.permute.xlu1 %176 }
 0x116   :  { %v191_v30 = vsel %vm187_vm3, %v186_v27, %v177_v29  ;;  %v6338_v27 = vpack.c.bf16 %v420_v26, %v419_v25  ;;  %v421_v29 = vld [vmem:[%s9581_s5 + $0xb0] sm:$0xff] }
 0x117   :  { %5811 = vmatmul.mubr.msk.f32.gmra.mrb[2].mxu0 %vm209_vm4, %v191_v30  ;;  %v422_v30 = vld [vmem:[%s9581_s5 + $0xb8] sm:$0xff] }
 0x118   :  { %6339 = vmatprep.subr.bf16.mxu1 %v6338_v27  ;;  %v6342_v33 = vpack.c.bf16 %v422_v30, %v421_v29 }
 0x119   :  { %6341 = vmatpush3.bf16.msra.mxu1 %v6338_v27 }
 0x11a   :  { %6343 = vmatprep.subr.bf16.mxu1 %v6342_v33 }
 0x11d   :  { %6345 = vmatpush3.bf16.msra.mxu1 %v6342_v33 }
 0x1e6   :  { %v5809_v54 = vpop.f32.mrb[0].mxu0 }
 0x1e7   :  { %v294_v55 = vadd.f32 %v5809_v54, %v5387_v51  ;;  %v288_v56 = vpop.f32.mrb[1].mxu0 }
 0x1e8   :  { %v289_v57 = vadd.f32 %v5387_v51, %v288_v56 }
 0x1e9   :  { %v316_v58 = vmul.f32 0.044715, %v294_v55  ;;  %v312_v5 = vmul.f32 0.7978846, %v294_v55  ;;  %v308_v38 = vmul.f32 0.5, %v294_v55 }
 0x1ea   :  { %v315_v59 = vmul.f32 0.044715, %v289_v57  ;;  %v5812_v60 = vpop.f32.mrb[2].mxu0  ;;  %v311_v12 = vmul.f32 0.7978846, %v289_v57  ;;  %v307_v44 = vmul.f32 0.5, %v289_v57 }
 0x1eb   :  { %v320_v61 = vmul.f32 %v316_v58, %v294_v55  ;;  %v304_v63 = vadd.f32 %v5812_v60, %v5387_v51  ;;  %v298_v0 = vpop.f32.mrb[3].mxu0 }
 0x1ec   :  { %v319_v1 = vmul.f32 %v315_v59, %v289_v57  ;;  %v299_v4 = vadd.f32 %v5387_v51, %v298_v0 }
 0x1ed   :  { %v324_v10 = vadd.f32 1.0, %v320_v61  ;;  %v318_v11 = vmul.f32 0.044715, %v304_v63  ;;  %v314_v19 = vmul.f32 0.7978846, %v304_v63  ;;  %v310_v51 = vmul.f32 0.5, %v304_v63 }
 0x1ee   :  { %v323_v13 = vadd.f32 1.0, %v319_v1  ;;  %v317_v14 = vmul.f32 0.044715, %v299_v4  ;;  %v313_v21 = vmul.f32 0.7978846, %v299_v4  ;;  %v309_v58 = vmul.f32 0.5, %v299_v4 }
 0x1ef   :  { %v328_v15 = vmul.f32 %v324_v10, %v312_v5  ;;  %v322_v16 = vmul.f32 %v318_v11, %v304_v63 }
 0x1f0   :  { %v327_v17 = vmul.f32 %v323_v13, %v311_v12  ;;  %v321_v18 = vmul.f32 %v317_v14, %v299_v4 }
 0x1f1   :  { %v326_v20 = vadd.f32 1.0, %v322_v16  ;;  %7026 = vtanh.f32 %v328_v15 }
 0x1f2   :  { %v325_v22 = vadd.f32 1.0, %v321_v18  ;;  %7028 = vtanh.f32 %v327_v17 }
 0x1f3   :  { %v330_v23 = vmul.f32 %v326_v20, %v314_v19 }
 0x1f4   :  { %v329_v24 = vmul.f32 %v325_v22, %v313_v21 }
 0x1f5   :  { %7030 = vtanh.f32 %v330_v23 }
 0x1f6   :  { %7032 = vtanh.f32 %v329_v24 }
 0x1fb   :  { %v7027_v31 = vpop.eup %7026 }
 0x1fc   :  { %v7029_v36 = vpop.eup %7028  ;;  %v336_v43 = vadd.f32 1.0, %v7027_v31 }
 0x1fd   :  { %v335_v45 = vadd.f32 1.0, %v7029_v36 }
 0x1fe   :  { %v340_v46 = vmul.f32 %v336_v43, %v308_v38 }
 0x1ff   :  { %v7031_v47 = vpop.eup %7030  ;;  %v339_v48 = vmul.f32 %v335_v45, %v307_v44 }
 0x200   :  { %v7033_v49 = vpop.eup %7032  ;;  %v344_v50 = vmul.f32 %v340_v46, %v7418_v42  ;;  %v338_v54 = vadd.f32 1.0, %v7031_v47 }
 0x201   :  { %v343_v56 = vmul.f32 %v339_v48, %v7397_v35  ;;  %v337_v59 = vadd.f32 1.0, %v7033_v49 }
 0x202   :  { %377 = vrot.lane.b32.xlu1 %v344_v50, %s7262_s12  ;;  %v348_v55 = vrot.slane %v344_v50, 7  ;;  %v360_v60 = vrot.slane %v344_v50, 1  ;;  %v342_v57 = vmul.f32 %v338_v54, %v310_v51 }
 0x203   :  { %375 = vrot.lane.b32.xlu0 %v343_v56, %s7262_s12  ;;  %v347_v61 = vrot.slane %v343_v56, 7  ;;  %v359_v0 = vrot.slane %v343_v56, 1  ;;  %v341_v1 = vmul.f32 %v337_v59, %v309_v58  ;;  %v581_v58 = vld [vmem:[%s9581_s5 + $0xc0] sm:$0xff]  ;;  %v582_v59 = vld [vmem:[%s9581_s5 + $0xc8] sm:$0xff] }
 0x204   :  { %v346_v5 = vmul.f32 %v342_v57, %v7416_v41  ;;  %v584_v57 = vld [vmem:[%s9581_s5 + $0xd8] sm:$0xff] }
 0x205   :  { %v345_v10 = vmul.f32 %v341_v1, %v7395_v34  ;;  %v365_v63 = vsel %vm121_vm0, %v359_v0, %v360_v60  ;;  %v353_v4 = vsel %vm88_vm1, %v347_v61, %v348_v55  ;;  %v586_v1 = vld [vmem:[%s9581_s5 + $0xe8] sm:$0xff] }
 0x206   :  { %381 = vrot.lane.b32.xlu1 %v346_v5, %s7262_s12  ;;  %v350_v11 = vrot.slane %v346_v5, 7  ;;  %v362_v12 = vrot.slane %v346_v5, 1  ;;  %v367_v17 = vmul.f32 %v365_v63, %v7430_v53  ;;  %v356_v31 = vmul.f32 %v353_v4, %v7463_v7  ;;  %v588_v63 = vld [vmem:[%s9581_s5 + $0xf8] sm:$0xff] }
 0x207   :  { %v349_v13 = vrot.slane %v345_v10, 7  ;;  %v361_v14 = vrot.slane %v345_v10, 1  ;;  %379 = vrot.lane.b32.xlu0 %v345_v10, %s7262_s12  ;;  %v587_v10 = vld [vmem:[%s9581_s5 + $0xf0] sm:$0xff] }
 0x208   :  { %v366_v15 = vsel %vm121_vm0, %v362_v12, %v359_v0  ;;  %v354_v16 = vsel %vm88_vm1, %v350_v11, %v347_v61  ;;  %v585_v0 = vld [vmem:[%s9581_s5 + $0xe0] sm:$0xff]  ;;  %v6358_v4 = vpack.c.bf16 %v588_v63, %v587_v10 }
 0x209   :  { %v364_v18 = vsel %vm121_vm0, %v360_v60, %v361_v14  ;;  %v363_v19 = vsel %vm121_vm0, %v361_v14, %v362_v12  ;;  %v351_v21 = vsel %vm88_vm1, %v349_v13, %v350_v11  ;;  %v352_v22 = vsel %vm88_vm1, %v348_v55, %v349_v13  ;;  %v583_v55 = vld [vmem:[%s9581_s5 + $0xd0] sm:$0xff]  ;;  %v5392_v11 = vld [vmem:[%s9582_s6 + $0x1] ss:$0 sm:$0xff] }
 0x20a   :  { %v368_v20 = vmul.f32 %v364_v18, %v7428_v52  ;;  %v369_v23 = vmul.f32 %v363_v19, %v7446_v62  ;;  %v370_v24 = vmul.f32 %v366_v15, %v7453_v3  ;;  %v355_v30 = vmul.f32 %v354_v16, %v7461_v6 }
 0x20b   :  { %391 = vrot.lane.b32.xlu0 %v367_v17, %s7263_s3  ;;  %v357_v45 = vmul.f32 %v352_v22, %v7465_v8  ;;  %v358_v47 = vmul.f32 %v351_v21, %v7467_v9  ;;  %v6346_v60 = vpack.c.bf16 %v582_v59, %v581_v58  ;;  %v6350_v61 = vpack.c.bf16 %v584_v57, %v583_v55 }
 0x20c   :  { %393 = vrot.lane.b32.xlu1 %v368_v20, %s7263_s3  ;;  %v6354_v5 = vpack.c.bf16 %v586_v1, %v585_v0 }
 0x20d   :  { %6347 = vmatprep.subr.bf16.mxu0 %v6346_v60 }
 0x20e   :  { %6349 = vmatpush3.bf16.msra.mxu0 %v6346_v60 }
 0x20f   :  { %395 = vrot.lane.b32.xlu0 %v369_v23, %s7263_s3  ;;  %6351 = vmatprep.subr.bf16.mxu0 %v6350_v61 }
 0x210   :  { %397 = vrot.lane.b32.xlu1 %v370_v24, %s7263_s3 }
 0x212   :  { %6353 = vmatpush3.bf16.msra.mxu0 %v6350_v61 }
 0x213   :  { %6355 = vmatprep.subr.bf16.mxu0 %v6354_v5 }
 0x216   :  { %6357 = vmatpush3.bf16.msra.mxu0 %v6354_v5 }
 0x217   :  { %6359 = vmatprep.subr.bf16.mxu0 %v6358_v4 }
 0x21a   :  { %6361 = vmatpush3.bf16.msra.mxu0 %v6358_v4 }
 0x274   :  { %v378_v25 = vpop.permute.xlu1 %377 }
 0x275   :  { %v376_v26 = vpop.permute.xlu0 %375  ;;  %v404_v38 = vsel %vm182_vm2, %v356_v31, %v378_v25 }
 0x276   :  { %v403_v33 = vsel %vm182_vm2, %v355_v30, %v376_v26 }
 0x278   :  { %v382_v29 = vpop.permute.xlu1 %381 }
 0x279   :  { %v380_v27 = vpop.permute.xlu0 %379  ;;  %v406_v50 = vsel %vm182_vm2, %v358_v47, %v382_v29 }
 0x27a   :  { %v405_v48 = vsel %vm182_vm2, %v357_v45, %v380_v27 }
 0x27d   :  { %v392_v36 = vpop.permute.xlu0 %391 }
 0x27e   :  { %v394_v43 = vpop.permute.xlu1 %393  ;;  %v407_v44 = vsel %vm187_vm3, %v403_v33, %v392_v36 }
 0x27f   :  { %v408_v46 = vsel %vm187_vm3, %v404_v38, %v394_v43  ;;  %5837 = vmatprep.mubr.msk.f32.mxu1 %vm209_vm4, %v407_v44 }
 0x280   :  { %5838 = vmatmul.mubr.msk.f32.vlgmr.msra.gmra.mrb[0].mxu1 %vm209_vm4, %v408_v46 }
 0x281   :  { %v396_v49 = vpop.permute.xlu0 %395 }
 0x282   :  { %v409_v51 = vsel %vm187_vm3, %v405_v48, %v396_v49  ;;  %v398_v54 = vpop.permute.xlu1 %397 }
 0x283   :  { %v410_v56 = vsel %vm187_vm3, %v406_v50, %v398_v54  ;;  %5840 = vmatprep.mubr.msk.f32.mxu1 %vm209_vm4, %v409_v51 }
 0x284   :  { %5841 = vmatmul.mubr.msk.f32.gmra.mrb[2].mxu1 %vm209_vm4, %v410_v56 }
 0x353   :  { %v5839_v12 = vpop.f32.mrb[0].mxu1 }
 0x354   :  { %v512_v13 = vadd.f32 %v5839_v12, %v5392_v11  ;;  %v506_v14 = vpop.f32.mrb[1].mxu1 }
 0x355   :  { %v507_v15 = vadd.f32 %v5392_v11, %v506_v14 }
 0x356   :  { %v534_v16 = vmul.f32 0.044715, %v512_v13  ;;  %v530_v24 = vmul.f32 0.7978846, %v512_v13  ;;  %v526_v51 = vmul.f32 0.5, %v512_v13 }
 0x357   :  { %v533_v17 = vmul.f32 0.044715, %v507_v15  ;;  %v5842_v18 = vpop.f32.mrb[2].mxu1  ;;  %v529_v27 = vmul.f32 0.7978846, %v507_v15  ;;  %v525_v56 = vmul.f32 0.5, %v507_v15 }
 0x358   :  { %v538_v19 = vmul.f32 %v534_v16, %v512_v13  ;;  %v522_v20 = vadd.f32 %v5842_v18, %v5392_v11  ;;  %v516_v21 = vpop.f32.mrb[3].mxu1 }
 0x359   :  { %v537_v22 = vmul.f32 %v533_v17, %v507_v15  ;;  %v517_v23 = vadd.f32 %v5392_v11, %v516_v21 }
 0x35a   :  { %v542_v25 = vadd.f32 1.0, %v538_v19  ;;  %v536_v26 = vmul.f32 0.044715, %v522_v20  ;;  %v532_v43 = vmul.f32 0.7978846, %v522_v20  ;;  %v528_v61 = vmul.f32 0.5, %v522_v20 }
 0x35b   :  { %v541_v29 = vadd.f32 1.0, %v537_v22  ;;  %v535_v30 = vmul.f32 0.044715, %v517_v23  ;;  %v531_v45 = vmul.f32 0.7978846, %v517_v23  ;;  %v527_v1 = vmul.f32 0.5, %v517_v23 }
 0x35c   :  { %v540_v31 = vmul.f32 %v536_v26, %v522_v20  ;;  %v546_v33 = vmul.f32 %v542_v25, %v530_v24 }
 0x35d   :  { %v539_v36 = vmul.f32 %v535_v30, %v517_v23  ;;  %v545_v38 = vmul.f32 %v541_v29, %v529_v27 }
 0x35e   :  { %v544_v44 = vadd.f32 1.0, %v540_v31  ;;  %7034 = vtanh.f32 %v546_v33 }
 0x35f   :  { %v543_v46 = vadd.f32 1.0, %v539_v36  ;;  %7036 = vtanh.f32 %v545_v38 }
 0x360   :  { %v548_v47 = vmul.f32 %v544_v44, %v532_v43 }
 0x361   :  { %v547_v48 = vmul.f32 %v543_v46, %v531_v45 }
 0x362   :  { %7038 = vtanh.f32 %v548_v47 }
 0x363   :  { %7040 = vtanh.f32 %v547_v48 }
 0x368   :  { %v7035_v49 = vpop.eup %7034 }
 0x369   :  { %v7037_v50 = vpop.eup %7036  ;;  %v554_v54 = vadd.f32 1.0, %v7035_v49 }
 0x36a   :  { %v553_v58 = vadd.f32 1.0, %v7037_v50 }
 0x36b   :  { %v558_v59 = vmul.f32 %v554_v54, %v526_v51 }
 0x36c   :  { %v7039_v55 = vpop.eup %7038  ;;  %v557_v60 = vmul.f32 %v553_v58, %v525_v56 }
 0x36d   :  { %v7041_v57 = vpop.eup %7040  ;;  %567 = vrot.lane.b32.xlu1 %v558_v59, %s7262_s12  ;;  %v556_v0 = vadd.f32 1.0, %v7039_v55 }
 0x36e   :  { %565 = vrot.lane.b32.xlu0 %v557_v60, %s7262_s12  ;;  %v555_v5 = vadd.f32 1.0, %v7041_v57 }
 0x36f   :  { %v560_v10 = vmul.f32 %v556_v0, %v528_v61 }
 0x370   :  { %v559_v63 = vmul.f32 %v555_v5, %v527_v1 }
 0x371   :  { %571 = vrot.lane.b32.xlu1 %v560_v10, %s7262_s12 }
 0x372   :  { %569 = vrot.lane.b32.xlu0 %v559_v63, %s7262_s12 }
 0x3df   :  { %v568_v4 = vpop.permute.xlu1 %567 }
 0x3e0   :  { %v566_v11 = vpop.permute.xlu0 %565  ;;  %v7609_v13 = vsel %vm182_vm2, %v7404_v37, %v568_v4  ;;  %v5397_v37 = vld [vmem:[%s9582_s6 + $0x2] ss:$0 sm:$0xff] }
 0x3e1   :  { %v7605_v12 = vsel %vm182_vm2, %v7382_v28, %v566_v11 }
 0x3e2   :  { %5859 = vmatprep.mubr.msk.f32.mxu0 %vm187_vm3, %v7605_v12 }
 0x3e3   :  { %v572_v14 = vpop.permute.xlu1 %571  ;;  %5860 = vmatmul.mubr.msk.f32.vlgmr.msra.gmra.mrb[4].mxu0 %vm187_vm3, %v7609_v13 }
 0x3e4   :  { %v570_v15 = vpop.permute.xlu0 %569  ;;  %v7621_v28 = vsel %vm182_vm2, %v7411_v39, %v572_v14 }
 0x3e5   :  { %v7617_v16 = vsel %vm182_vm2, %v7393_v32, %v570_v15 }
 0x3e6   :  { %5862 = vmatprep.mubr.msk.f32.mxu0 %vm187_vm3, %v7617_v16  ;;  %v6368_v14 = vpack.c.bf16 %v7621_v28, %v7617_v16 }
 0x3e7   :  { %5863 = vmatmul.mubr.msk.f32.gmra.mrb[6].mxu0 %vm187_vm3, %v7621_v28 }
 0x4b6   :  { %v5861_v17 = vpop.f32.mrb[4].mxu0 }
 0x4b7   :  { %v672_v18 = vpop.f32.mrb[5].mxu0  ;;  %v678_v19 = vadd.f32 %v5861_v17, %v5397_v37 }
 0x4b8   :  { %v673_v20 = vadd.f32 %v5397_v37, %v672_v18  ;;  %v7646_v18 = vpack.c.bf16 %v7609_v13, %v7605_v12 }
 0x4b9   :  { %v700_v39 = vmul.f32 0.044715, %v678_v19  ;;  %v696_v50 = vmul.f32 0.7978846, %v678_v19 }
 0x4ba   :  { %v699_v32 = vmul.f32 0.044715, %v673_v20  ;;  %v5864_v21 = vpop.f32.mrb[6].mxu0  ;;  %v695_v27 = vmul.f32 0.7978846, %v673_v20  ;;  %v691_v56 = vmul.f32 0.5, %v673_v20 }
 0x4bb   :  { %v688_v22 = vadd.f32 %v5864_v21, %v5397_v37  ;;  %v682_v23 = vpop.f32.mrb[7].mxu0  ;;  %v704_v33 = vmul.f32 %v700_v39, %v678_v19 }
 0x4bc   :  { %v703_v24 = vmul.f32 %v699_v32, %v673_v20  ;;  %v683_v25 = vadd.f32 %v5397_v37, %v682_v23  ;;  %v692_v37 = vmul.f32 0.5, %v678_v19  ;;  %v7652_v20 = vld [vmem:[%s9578_s2 + $0x8] sm:$0xff]  ;;  %v815_v32 = vstv %s814_s13  ;;  %v7657_v19 = vld [vmem:[%s9578_s2] sm:$0xff] }
 0x4bd   :  { %v702_v26 = vmul.f32 0.044715, %v688_v22  ;;  %v698_v43 = vmul.f32 0.7978846, %v688_v22  ;;  %v708_v48 = vadd.f32 1.0, %v704_v33  ;;  %v694_v57 = vmul.f32 0.5, %v688_v22 }
 0x4be   :  { %v707_v29 = vadd.f32 1.0, %v703_v24  ;;  %v701_v30 = vmul.f32 0.044715, %v683_v25  ;;  %v697_v45 = vmul.f32 0.7978846, %v683_v25  ;;  %v693_v0 = vmul.f32 0.5, %v683_v25 }
 0x4bf   :  { %v706_v31 = vmul.f32 %v702_v26, %v688_v22  ;;  %v712_v51 = vmul.f32 %v708_v48, %v696_v50  ;;  %vm819_vm6 = vcmp.gt.f32.partialorder %v7652_v20, 0.0  ;;  %vm818_vm7 = vcmp.gt.f32.partialorder %v7657_v19, 0.0 }
 0x4c0   :  { %v711_v36 = vmul.f32 %v707_v29, %v695_v27  ;;  %v705_v38 = vmul.f32 %v701_v30, %v683_v25 }
 0x4c1   :  { %v710_v44 = vadd.f32 1.0, %v706_v31 }
 0x4c2   :  { %7042 = vtanh.f32 %v711_v36  ;;  %v709_v46 = vadd.f32 1.0, %v705_v38 }
 0x4c3   :  { %v714_v47 = vmul.f32 %v710_v44, %v698_v43 }
 0x4c4   :  { %v713_v49 = vmul.f32 %v709_v46, %v697_v45 }
 0x4c5   :  { %7044 = vtanh.f32 %v714_v47 }
 0x4c6   :  { %7046 = vtanh.f32 %v713_v49 }
 0x4c7   :  { %7048 = vtanh.f32 %v712_v51 }
 0x4cc   :  { %v7043_v54 = vpop.eup %7042 }
 0x4cd   :  { %v719_v58 = vadd.f32 1.0, %v7043_v54 }
 0x4cf   :  { %v7045_v59 = vpop.eup %7044  ;;  %v723_v55 = vmul.f32 %v719_v58, %v691_v56 }
 0x4d0   :  { %v7047_v60 = vpop.eup %7046  ;;  %v722_v61 = vadd.f32 1.0, %v7045_v59 }
 0x4d1   :  { %5869 = vmatprep.mubr.msk.f32.mxu1 %vm182_vm2, %v723_v55  ;;  %v721_v1 = vadd.f32 1.0, %v7047_v60  ;;  %v7049_v11 = vpop.eup %7048 }
 0x4d2   :  { %v726_v5 = vmul.f32 %v722_v61, %v694_v57  ;;  %v720_v15 = vadd.f32 1.0, %v7049_v11 }
 0x4d3   :  { %v725_v10 = vmul.f32 %v721_v1, %v693_v0 }
 0x4d4   :  { %v724_v17 = vmul.f32 %v720_v15, %v692_v37 }
 0x4d5   :  { %v6362_v4 = vpack.c.bf16 %v726_v5, %v725_v10 }
 0x4d7   :  { %6364 = vmatprep.subr.msk.bf16.mxu1 %vm7633_vm5, %v6362_v4 }
 0x4d8   :  { %6367 = vmatpush3.bf16.xpose.msk.msra.mxu1 %vm7633_vm5, %v6362_v4 }
 0x4d9   :  { %6369 = vmatprep.subr.bf16.mxu1 %v6368_v14 }
 0x4df   :  { %5870 = vmatmul.mubr.msk.f32.vlgmr.msra.gmra.mrb[4].mxu1 %vm182_vm2, %v724_v17 }
 0x4e0   :  { %6371 = vmatpush3.bf16.msra.mxu1 %v6368_v14 }
 0x4e1   :  { %6373 = vmatprep.subr.bf16.mxu1 %v7646_v18 }
 0x5b2   :  { %v5871_v21 = vpop.f32.mrb[4].mxu1 }
 0x5b3   :  { %v817_v22 = vmul.f32 %v5871_v21, %v815_v32  ;;  %v805_v23 = vpop.f32.mrb[5].mxu1 }
 0x5b4   :  { %v816_v39 = vmul.f32 %v815_v32, %v805_v23 }
 0x5b5   :  { %v821_v24 = vsel %vm819_vm6, %v817_v22, -10000000.0 }
 0x5b6   :  { %v820_v25 = vsel %vm818_vm7, %v816_v39, -10000000.0  ;;  %v824_v26 = vsel %vm822_vm8, %v821_v24, -inf }
 0x5b7   :  { %852 = vmax.xlane.f32.xlu1 %v824_v26  ;;  %v823_v27 = vsel %vm822_vm8, %v820_v25, -inf }
 0x5b8   :  { %850 = vmax.xlane.f32.xlu0 %v823_v27  ;;  %v825_v29 = vmax.f32 %v823_v27, %v824_v26 }
 0x5ba   :  { %v826_v30 = vrot.slane %v825_v29, 4 }
 0x5bc   :  { %v827_v31 = vmax.f32 %v825_v29, %v826_v30  ;;  %v1084_v30 = vld [vmem:[%s9581_s5 + $0x100] sm:$0xff] }
 0x5be   :  { %v828_v33 = vrot.slane %v827_v31, 2 }
 0x5c0   :  { %v829_v36 = vmax.f32 %v827_v31, %v828_v33  ;;  %v1085_v31 = vld [vmem:[%s9581_s5 + $0x108] sm:$0xff]  ;;  %v1086_v33 = vld [vmem:[%s9581_s5 + $0x110] sm:$0xff] }
 0x5c2   :  { %v830_v38 = vrot.slane %v829_v36, 1 }
 0x5c4   :  { %v831_v43 = vmax.f32 %v829_v36, %v830_v38  ;;  %v6376_v36 = vpack.c.bf16 %v1085_v31, %v1084_v30  ;;  %v1250_v38 = vld [vmem:[%s9581_s5 + $0x180] sm:$0xff]  ;;  %v1263_v30 = vld [vmem:[%s9581_s5 + $0x1e8] sm:$0xff] }
 0x5c6   :  { %v832_v44 = vsub.f32 %v820_v25, %v831_v43  ;;  %v833_v45 = vsub.f32 %v821_v24, %v831_v43  ;;  %v1251_v43 = vld [vmem:[%s9581_s5 + $0x188] sm:$0xff]  ;;  %6377 = vmatprep.subr.bf16.mxu0 %v6376_v36 }
 0x5c7   :  { %6379 = vmatpush3.bf16.msra.mxu0 %v6376_v36  ;;  %v1417_v36 = vld [vmem:[%s9581_s5 + $0x208] sm:$0xff] }
 0x5c8   :  { %v834_v46 = vmul.f32 1.442695, %v832_v44  ;;  %v836_v47 = vmul.f32 1.442695, %v833_v45  ;;  %v6408_v45 = vpack.c.bf16 %v1251_v43, %v1250_v38  ;;  %v1264_v38 = vld [vmem:[%s9581_s5 + $0x1f0] sm:$0xff]  ;;  %v1265_v43 = vld [vmem:[%s9581_s5 + $0x1f8] sm:$0xff] }
 0x5ca   :  { %7050 = vpow2.f32 %v834_v46  ;;  %v1088_v46 = vld [vmem:[%s9581_s5 + $0x120] sm:$0xff] }
 0x5cb   :  { %7052 = vpow2.f32 %v836_v47  ;;  %v1089_v47 = vld [vmem:[%s9581_s5 + $0x128] sm:$0xff] }
 0x5d4   :  { %v7051_v48 = vpop.eup %7050 }
 0x5d5   :  { %v7053_v49 = vpop.eup %7052  ;;  %v838_v50 = vsel %vm822_vm8, %v7051_v48, 0.0 }
 0x5d6   :  { %v839_v51 = vsel %vm822_vm8, %v7053_v49, 0.0 }
 0x5d7   :  { %v840_v54 = vadd.f32 %v839_v51, %v838_v50  ;;  %v1254_v51 = vld [vmem:[%s9581_s5 + $0x1a0] sm:$0xff] }
 0x5d9   :  { %v841_v56 = vrot.slane %v840_v54, 4 }
 0x5db   :  { %v842_v58 = vadd.f32 %v841_v56, %v840_v54  ;;  %v1255_v54 = vld [vmem:[%s9581_s5 + $0x1a8] sm:$0xff]  ;;  %v6384_v56 = vpack.c.bf16 %v1089_v47, %v1088_v46 }
 0x5dd   :  { %v843_v59 = vrot.slane %v842_v58, 2 }
 0x5df   :  { %v844_v55 = vadd.f32 %v843_v59, %v842_v58  ;;  %v1090_v58 = vld [vmem:[%s9581_s5 + $0x130] sm:$0xff]  ;;  %v1091_v59 = vld [vmem:[%s9581_s5 + $0x138] sm:$0xff] }
 0x5e1   :  { %v845_v60 = vrot.slane %v844_v55, 1 }
 0x5e3   :  { %v846_v57 = vadd.f32 %v845_v60, %v844_v55  ;;  %v6416_v55 = vpack.c.bf16 %v1255_v54, %v1254_v51  ;;  %v1256_v60 = vld [vmem:[%s9581_s5 + $0x1b0] sm:$0xff] }
 0x5e5   :  { %7054 = vrcp.f32 %v846_v57  ;;  %v1257_v57 = vld [vmem:[%s9581_s5 + $0x1b8] sm:$0xff] }
 0x5ef   :  { %v7055_v61 = vpop.eup %7054 }
 0x5f0   :  { %v848_v0 = vmul.f32 %v7055_v61, %v7051_v48  ;;  %v849_v1 = vmul.f32 %v7055_v61, %v7053_v49  ;;  %v1252_v48 = vld [vmem:[%s9581_s5 + $0x190] sm:$0xff]  ;;  %v1253_v49 = vld [vmem:[%s9581_s5 + $0x198] sm:$0xff]  ;;  %v6388_v61 = vpack.c.bf16 %v1091_v59, %v1090_v58 }
 0x5f1   :  { %v6412_v50 = vpack.c.bf16 %v1253_v49, %v1252_v48 }
 0x5f2   :  { %951 = vxpose.xlu1.b32.start [1/2] (short) (narrow) %v848_v0, 16  ;;  %v1092_v0 = vld [vmem:[%s9581_s5 + $0x140] sm:$0xff] }
 0x5f6   :  { %952 = vxpose.xlu1.b32.end [2/2] (short) (narrow) %v849_v1, 16  ;;  %v1093_v1 = vld [vmem:[%s9581_s5 + $0x148] sm:$0xff] }
 0x644   :  { %v853_v5 = vpop.xlane.xlu1 %852 }
 0x645   :  { %v855_v10 = vsub.f32 %v821_v24, %v853_v5  ;;  %v851_v4 = vpop.xlane.xlu0 %850  ;;  %v6420_v5 = vpack.c.bf16 %v1257_v57, %v1256_v60 }
 0x646   :  { %v854_v11 = vsub.f32 %v820_v25, %v851_v4  ;;  %v1259_v4 = vld [vmem:[%s9581_s5 + $0x1c8] sm:$0xff] }
 0x647   :  { %v858_v14 = vmul.f32 1.442695, %v855_v10  ;;  %v1258_v10 = vld [vmem:[%s9581_s5 + $0x1c0] sm:$0xff] }
 0x648   :  { %v856_v15 = vmul.f32 1.442695, %v854_v11  ;;  %v6392_v11 = vpack.c.bf16 %v1093_v1, %v1092_v0 }
 0x64a   :  { %7056 = vpow2.f32 %v856_v15  ;;  %v1095_v15 = vld [vmem:[%s9581_s5 + $0x158] sm:$0xff] }
 0x64b   :  { %7058 = vpow2.f32 %v858_v14  ;;  %v1094_v14 = vld [vmem:[%s9581_s5 + $0x150] sm:$0xff] }
 0x654   :  { %v7057_v37 = vpop.eup %7056 }
 0x655   :  { %v860_v17 = vsel %vm822_vm8, %v7057_v37, 0.0  ;;  %v7059_v32 = vpop.eup %7058 }
 0x656   :  { %861 = vadd.xlane.f32.xlu0 %v860_v17  ;;  %v863_v21 = vsel %vm822_vm8, %v7059_v32, 0.0  ;;  %v1260_v17 = vld [vmem:[%s9581_s5 + $0x1d0] sm:$0xff] }
 0x65a   :  { %864 = vadd.xlane.f32.xlu0 %v863_v21  ;;  %v6396_v21 = vpack.c.bf16 %v1095_v15, %v1094_v14 }
 0x672   :  { %v967_v26 = vpop.trf.xlu1 }
 0x676   :  { %v968_v29 = vpop.trf.xlu1 }
 0x6e3   :  { %v862_v22 = vpop.xlane.xlu0 %861 }
 0x6e4   :  { %7060 = vrcp.f32 %v862_v22  ;;  %v1096_v22 = vld [vmem:[%s9581_s5 + $0x160] sm:$0xff] }
 0x6e7   :  { %v865_v23 = vpop.xlane.xlu0 %864 }
 0x6e8   :  { %7062 = vrcp.f32 %v865_v23  ;;  %v1097_v23 = vld [vmem:[%s9581_s5 + $0x168] sm:$0xff] }
 0x6ee   :  { %v7061_v39 = vpop.eup %7060 }
 0x6ef   :  { %v867_v24 = vmul.f32 %v7061_v39, %v7057_v37  ;;  %v6424_v37 = vpack.c.bf16 %v1259_v4, %v1258_v10  ;;  %v1418_v4 = vld [vmem:[%s9581_s5 + $0x210] sm:$0xff] }
 0x6f1   :  { %5876 = vmatprep.mubr.msk.f32.mxu1 %vm822_vm8, %v867_v24  ;;  %v6400_v24 = vpack.c.bf16 %v1097_v23, %v1096_v22  ;;  %v1420_v22 = vld [vmem:[%s9581_s5 + $0x220] sm:$0xff]  ;;  %v1421_v23 = vld [vmem:[%s9581_s5 + $0x228] sm:$0xff] }
 0x6f2   :  { %v7063_v25 = vpop.eup %7062 }
 0x6f3   :  { %v869_v27 = vmul.f32 %v7063_v25, %v7059_v32  ;;  %v1261_v32 = vld [vmem:[%s9581_s5 + $0x1d8] sm:$0xff] }
 0x6f4   :  { %v6428_v39 = vpack.c.bf16 %v1261_v32, %v1260_v17  ;;  %v1099_v25 = vld [vmem:[%s9581_s5 + $0x178] sm:$0xff] }
 0x6f5   :  { %5877 = vmatmul.mubr.msk.f32.vlgmr.msra.gmra.mrb[6].mxu1 %vm822_vm8, %v869_v27 }
 0x6f6   :  { %6375 = vmatpush3.bf16.msra.mxu1 %v7646_v18  ;;  %5883 = vmatprep.mubr.msk.f32.mxu1 %vm822_vm8, %v967_v26  ;;  %v1087_v18 = vld [vmem:[%s9581_s5 + $0x118] sm:$0xff]  ;;  %v1098_v26 = vld [vmem:[%s9581_s5 + $0x170] sm:$0xff] }
 0x6f7   :  { %v6380_v44 = vpack.c.bf16 %v1087_v18, %v1086_v33  ;;  %6409 = vmatprep.subr.bf16.mxu1 %v6408_v45  ;;  %v6404_v27 = vpack.c.bf16 %v1099_v25, %v1098_v26  ;;  %v1416_v33 = vld [vmem:[%s9581_s5 + $0x200] sm:$0xff] }
 0x6f8   :  { %v6440_v18 = vpack.c.bf16 %v1417_v36, %v1416_v33 }
 0x6f9   :  { %5884 = vmatmul.mubr.msk.f32.vlgmr.msra.gmra.mrb[8].mxu1 %vm822_vm8, %v968_v29  ;;  %6381 = vmatprep.subr.bf16.mxu0 %v6380_v44  ;;  %v1262_v29 = vld [vmem:[%s9581_s5 + $0x1e0] sm:$0xff] }
 0x6fa   :  { %6411 = vmatpush3.bf16.msra.mxu1 %v6408_v45  ;;  %6383 = vmatpush3.bf16.msra.mxu0 %v6380_v44  ;;  %v6432_v31 = vpack.c.bf16 %v1263_v30, %v1262_v29  ;;  %v6436_v44 = vpack.c.bf16 %v1265_v43, %v1264_v38  ;;  %v1422_v30 = vld [vmem:[%s9581_s5 + $0x230] sm:$0xff] }
 0x6fb   :  { %6413 = vmatprep.subr.bf16.mxu1 %v6412_v50  ;;  %6385 = vmatprep.subr.bf16.mxu0 %v6384_v56 }
 0x6fe   :  { %6415 = vmatpush3.bf16.msra.mxu1 %v6412_v50  ;;  %6387 = vmatpush3.bf16.msra.mxu0 %v6384_v56 }
 0x6ff   :  { %6417 = vmatprep.subr.bf16.mxu1 %v6416_v55  ;;  %6389 = vmatprep.subr.bf16.mxu0 %v6388_v61 }
 0x702   :  { %6419 = vmatpush3.bf16.msra.mxu1 %v6416_v55  ;;  %6391 = vmatpush3.bf16.msra.mxu0 %v6388_v61 }
 0x703   :  { %6421 = vmatprep.subr.bf16.mxu1 %v6420_v5  ;;  %6393 = vmatprep.subr.bf16.mxu0 %v6392_v11 }
 0x706   :  { %6423 = vmatpush3.bf16.msra.mxu1 %v6420_v5  ;;  %6395 = vmatpush3.bf16.msra.mxu0 %v6392_v11  ;;  %v1419_v11 = vld [vmem:[%s9581_s5 + $0x218] sm:$0xff] }
 0x707   :  { %6425 = vmatprep.subr.bf16.mxu1 %v6424_v37  ;;  %6397 = vmatprep.subr.bf16.mxu0 %v6396_v21  ;;  %v6444_v32 = vpack.c.bf16 %v1419_v11, %v1418_v4 }
 0x70a   :  { %6427 = vmatpush3.bf16.msra.mxu1 %v6424_v37  ;;  %6399 = vmatpush3.bf16.msra.mxu0 %v6396_v21 }
 0x70b   :  { %6429 = vmatprep.subr.bf16.mxu1 %v6428_v39  ;;  %6401 = vmatprep.subr.bf16.mxu0 %v6400_v24 }
 0x70e   :  { %6431 = vmatpush3.bf16.msra.mxu1 %v6428_v39  ;;  %6403 = vmatpush3.bf16.msra.mxu0 %v6400_v24 }
 0x70f   :  { %6405 = vmatprep.subr.bf16.mxu0 %v6404_v27  ;;  %6433 = vmatprep.subr.bf16.mxu1 %v6432_v31 }
 0x712   :  { %6407 = vmatpush3.bf16.msra.mxu0 %v6404_v27  ;;  %6435 = vmatpush3.bf16.msra.mxu1 %v6432_v31  ;;  %v6448_v27 = vpack.c.bf16 %v1421_v23, %v1420_v22  ;;  %v1423_v31 = vld [vmem:[%s9581_s5 + $0x238] sm:$0xff]  ;;  %v5411_v22 = vld [vmem:[%s9582_s6 + $0x4] ss:$0 sm:$0xff] }
 0x713   :  { %6441 = vmatprep.subr.bf16.mxu0 %v6440_v18  ;;  %6437 = vmatprep.subr.bf16.mxu1 %v6436_v44  ;;  %v6452_v43 = vpack.c.bf16 %v1423_v31, %v1422_v30 }
 0x716   :  { %6439 = vmatpush3.bf16.msra.mxu1 %v6436_v44 }
 0x7c8   :  { %v5878_v45 = vpop.f32.mrb[6].mxu1 }
 0x7c9   :  { %v1227_v46 = vsub.f32 %v7609_v13, %v5878_v45  ;;  %v1393_v47 = vmul.f32 %v5878_v45, %v7609_v13  ;;  %v942_v48 = vpop.f32.mrb[7].mxu1 }
 0x7ca   :  { %v6996_v49 = vpack.i.bf16 %v5878_v45, %v942_v48  ;;  %v1226_v50 = vsub.f32 %v7605_v12, %v942_v48  ;;  %v1392_v51 = vmul.f32 %v942_v48, %v7605_v12  ;;  %v1424_v45 = vld [vmem:[%s9581_s5 + $0x240] sm:$0xff] }
 0x7cc   :  { %6997 = vrot.lane.b32.xlu0 %v6996_v49, %s7263_s3  ;;  %v5885_v54 = vpop.f32.mrb[8].mxu1  ;;  %v7001_v56 = vpack.i.bf16 %v1227_v46, %v1226_v50  ;;  %v7011_v58 = vpack.i.bf16 %v1393_v47, %v1392_v51  ;;  %v1425_v46 = vld [vmem:[%s9581_s5 + $0x248] sm:$0xff]  ;;  %v1426_v51 = vld [vmem:[%s9581_s5 + $0x250] sm:$0xff] }
 0x7cd   :  { %v1229_v59 = vsub.f32 %v7621_v28, %v5885_v54  ;;  %v1395_v55 = vmul.f32 %v5885_v54, %v7621_v28  ;;  %v1055_v60 = vpop.f32.mrb[9].mxu1  ;;  %v6456_v49 = vpack.c.bf16 %v1425_v46, %v1424_v45 }
 0x7ce   :  { %v7006_v57 = vpack.i.bf16 %v5885_v54, %v1055_v60  ;;  %v1228_v61 = vsub.f32 %v7617_v16, %v1055_v60  ;;  %v1394_v0 = vmul.f32 %v1055_v60, %v7617_v16  ;;  %v1427_v54 = vld [vmem:[%s9581_s5 + $0x258] sm:$0xff]  ;;  %v1428_v60 = vld [vmem:[%s9581_s5 + $0x260] sm:$0xff] }
 0x7d0   :  { %7002 = vrot.lane.b32.xlu0 %v7001_v56, %s7263_s3  ;;  %v7016_v1 = vpack.i.bf16 %v1229_v59, %v1228_v61  ;;  %v7021_v5 = vpack.i.bf16 %v1395_v55, %v1394_v0  ;;  %v6460_v55 = vpack.c.bf16 %v1427_v54, %v1426_v51  ;;  %v1430_v0 = vld [vmem:[%s9581_s5 + $0x270] sm:$0xff] }
 0x7d4   :  { %7007 = vrot.lane.b32.xlu0 %v7006_v57, %s7263_s3  ;;  %v1429_v57 = vld [vmem:[%s9581_s5 + $0x268] sm:$0xff] }
 0x7d5   :  { %v6464_v61 = vpack.c.bf16 %v1429_v57, %v1428_v60 }
 0x7d8   :  { %7012 = vrot.lane.b32.xlu0 %v7011_v58, %s7263_s3 }
 0x7dc   :  { %7017 = vrot.lane.b32.xlu0 %v7016_v1, %s7263_s3  ;;  %v1431_v1 = vld [vmem:[%s9581_s5 + $0x278] sm:$0xff] }
 0x7e0   :  { %7022 = vrot.lane.b32.xlu0 %v7021_v5, %s7263_s3  ;;  %v6468_v5 = vpack.c.bf16 %v1431_v1, %v1430_v0 }
 0x83e   :  { %v6998_v10 = vpop.permute.xlu0 %6997 }
 0x83f   :  { %v7000_v14 = vunpack.i.h.bf16 %v6998_v10  ;;  %v6999_v15 = vunpack.i.l.bf16 %v6998_v10 }
 0x841   :  { %v1080_v37 = vsel %vm187_vm3, %v7605_v12, %v6999_v15  ;;  %v1081_v17 = vsel %vm187_vm3, %v7609_v13, %v7000_v14 }
 0x842   :  { %5918 = vmatprep.mubr.f32.mxu0 %v1080_v37  ;;  %v7003_v21 = vpop.permute.xlu0 %7002 }
 0x843   :  { %v7005_v39 = vunpack.i.h.bf16 %v7003_v21  ;;  %v7004_v24 = vunpack.i.l.bf16 %v7003_v21  ;;  %5919 = vmatmul.mubr.f32.vlgmr.msra.gmra.mrb[8].mxu0 %v1081_v17 }
 0x844   :  { %6443 = vmatpush3.bf16.msra.mxu0 %v6440_v18 }
 0x845   :  { %v1246_v26 = vsel %vm187_vm3, %v7605_v12, %v7004_v24  ;;  %6445 = vmatprep.subr.bf16.mxu0 %v6444_v32  ;;  %v1247_v25 = vsel %vm187_vm3, %v7609_v13, %v7005_v39 }
 0x846   :  { %5956 = vmatprep.mubr.f32.mxu1 %v1246_v26  ;;  %v7008_v29 = vpop.permute.xlu0 %7007 }
 0x847   :  { %v7010_v33 = vunpack.i.h.bf16 %v7008_v29  ;;  %v7009_v36 = vunpack.i.l.bf16 %v7008_v29  ;;  %5957 = vmatmul.mubr.f32.vlgmr.msra.gmra.mrb[10].mxu1 %v1247_v25 }
 0x848   :  { %6447 = vmatpush3.bf16.msra.mxu0 %v6444_v32 }
 0x849   :  { %6449 = vmatprep.subr.bf16.mxu0 %v6448_v27  ;;  %v1082_v18 = vsel %vm187_vm3, %v7617_v16, %v7009_v36  ;;  %v1083_v38 = vsel %vm187_vm3, %v7621_v28, %v7010_v33 }
 0x84a   :  { %v7013_v44 = vpop.permute.xlu0 %7012  ;;  %5921 = vmatprep.mubr.f32.mxu0 %v1082_v18 }
 0x84b   :  { %v7014_v47 = vunpack.i.l.bf16 %v7013_v44  ;;  %5922 = vmatmul.mubr.f32.gmra.mrb[10].mxu0 %v1083_v38  ;;  %v7015_v4 = vunpack.i.h.bf16 %v7013_v44 }
 0x84c   :  { %6451 = vmatpush3.bf16.msra.mxu0 %v6448_v27 }
 0x84d   :  { %6453 = vmatprep.subr.bf16.mxu0 %v6452_v43  ;;  %v1412_v48 = vsel %vm187_vm3, %v7605_v12, %v7014_v47  ;;  %v1413_v15 = vsel %vm187_vm3, %v7609_v13, %v7015_v4  ;;  %v1598_v47 = vld [vmem:[%s9581_s5 + $0x280] sm:$0xff] }
 0x84e   :  { %5994 = vmatprep.mubr.f32.mxu0 %v1412_v48  ;;  %v7018_v50 = vpop.permute.xlu0 %7017  ;;  %v1599_v48 = vld [vmem:[%s9581_s5 + $0x288] sm:$0xff]  ;;  %v5412_v4 = vld [vmem:[%s9582_s6 + $0x5] ss:$0 sm:$0xff] }
 0x84f   :  { %v7020_v56 = vunpack.i.h.bf16 %v7018_v50  ;;  %v7019_v58 = vunpack.i.l.bf16 %v7018_v50  ;;  %v6472_v54 = vpack.c.bf16 %v1599_v48, %v1598_v47 }
 0x850   :  { %6455 = vmatpush3.bf16.msra.mxu0 %v6452_v43 }
 0x851   :  { %6457 = vmatprep.subr.bf16.mxu0 %v6456_v49  ;;  %v1248_v59 = vsel %vm187_vm3, %v7617_v16, %v7019_v58  ;;  %v1249_v12 = vsel %vm187_vm3, %v7621_v28, %v7020_v56  ;;  %v1601_v56 = vld [vmem:[%s9581_s5 + $0x298] sm:$0xff]  ;;  %6473 = vmatprep.subr.bf16.mxu1 %v6472_v54 }
 0x852   :  { %5959 = vmatprep.mubr.f32.mxu1 %v1248_v59  ;;  %v7023_v10 = vpop.permute.xlu0 %7022  ;;  %6475 = vmatpush3.bf16.msra.mxu1 %v6472_v54 }
 0x853   :  { %5960 = vmatmul.mubr.f32.gmra.mrb[12].mxu1 %v1249_v12  ;;  %v7024_v11 = vunpack.i.l.bf16 %v7023_v10  ;;  %v7025_v14 = vunpack.i.h.bf16 %v7023_v10 }
 0x854   :  { %6459 = vmatpush3.bf16.msra.mxu0 %v6456_v49  ;;  %v1600_v49 = vld [vmem:[%s9581_s5 + $0x290] sm:$0xff] }
 0x855   :  { %6461 = vmatprep.subr.bf16.mxu0 %v6460_v55  ;;  %v1414_v37 = vsel %vm187_vm3, %v7617_v16, %v7024_v11  ;;  %v1415_v17 = vsel %vm187_vm3, %v7621_v28, %v7025_v14  ;;  %v6476_v58 = vpack.c.bf16 %v1601_v56, %v1600_v49 }
 0x857   :  { %6477 = vmatprep.subr.bf16.mxu1 %v6476_v58 }
 0x858   :  { %6463 = vmatpush3.bf16.msra.mxu0 %v6460_v55  ;;  %6479 = vmatpush3.bf16.msra.mxu1 %v6476_v58 }
 0x859   :  { %6465 = vmatprep.subr.bf16.mxu0 %v6464_v61 }
 0x85c   :  { %6467 = vmatpush3.bf16.msra.mxu0 %v6464_v61 }
 0x85d   :  { %6469 = vmatprep.subr.bf16.mxu0 %v6468_v5 }
 0x860   :  { %6471 = vmatpush3.bf16.msra.mxu0 %v6468_v5 }
 0x863   :  { %5995 = vmatmul.mubr.f32.vlgmr.msra.gmra.mrb[12].mxu0 %v1413_v15  ;;  %v1602_v15 = vld [vmem:[%s9581_s5 + $0x2a0] sm:$0xff] }
 0x864   :  { %5997 = vmatprep.mubr.f32.mxu0 %v1414_v37  ;;  %v1603_v37 = vld [vmem:[%s9581_s5 + $0x2a8] sm:$0xff] }
 0x867   :  { %5998 = vmatmul.mubr.f32.gmra.mrb[14].mxu0 %v1415_v17  ;;  %v1604_v17 = vld [vmem:[%s9581_s5 + $0x2b0] sm:$0xff] }
 0x916   :  { %v7858_v32 = vpop.f32.mrb[8].mxu0 }
 0x917   :  { %v7860_v21 = vpop.f32.mrb[9].mxu0 }
 0x91a   :  { %v5958_v23 = vpop.f32.mrb[10].mxu1 }
 0x91b   :  { %v1343_v39 = vadd.f32 %v5958_v23, %v5411_v22  ;;  %v1337_v13 = vpop.f32.mrb[11].mxu1  ;;  %v1605_v23 = vld [vmem:[%s9581_s5 + $0x2b8] sm:$0xff] }
 0x91c   :  { %v1338_v24 = vadd.f32 %v5411_v22, %v1337_v13 }
 0x91d   :  { %v1365_v26 = vmul.f32 0.044715, %v1343_v39  ;;  %v1361_v30 = vmul.f32 0.7978846, %v1343_v39  ;;  %v1357_v61 = vmul.f32 0.5, %v1343_v39 }
 0x91e   :  { %v1364_v25 = vmul.f32 0.044715, %v1338_v24  ;;  %v7865_v16 = vpop.f32.mrb[10].mxu0  ;;  %v1360_v33 = vmul.f32 0.7978846, %v1338_v24  ;;  %v1356_v14 = vmul.f32 0.5, %v1338_v24 }
 0x91f   :  { %v1369_v27 = vmul.f32 %v1365_v26, %v1343_v39  ;;  %v7867_v29 = vpop.f32.mrb[11].mxu0  ;;  %v1606_v26 = vld [vmem:[%s9581_s5 + $0x2c0] sm:$0xff] }
 0x920   :  { %v1368_v28 = vmul.f32 %v1364_v25, %v1338_v24  ;;  %v6484_v24 = vpack.c.bf16 %v1605_v23, %v1604_v17  ;;  %v1607_v25 = vld [vmem:[%s9581_s5 + $0x2c8] sm:$0xff] }
 0x921   :  { %v1373_v31 = vadd.f32 1.0, %v1369_v27 }
 0x922   :  { %v1372_v36 = vadd.f32 1.0, %v1368_v28 }
 0x923   :  { %v1377_v18 = vmul.f32 %v1373_v31, %v1361_v30 }
 0x924   :  { %v1376_v38 = vmul.f32 %v1372_v36, %v1360_v33  ;;  %v6488_v36 = vpack.c.bf16 %v1607_v25, %v1606_v26 }
 0x925   :  { %7064 = vtanh.f32 %v1377_v18  ;;  %v1608_v18 = vld [vmem:[%s9581_s5 + $0x2d0] sm:$0xff] }
 0x926   :  { %v5961_v43 = vpop.f32.mrb[12].mxu1  ;;  %7066 = vtanh.f32 %v1376_v38  ;;  %v1609_v38 = vld [vmem:[%s9581_s5 + $0x2d8] sm:$0xff] }
 0x927   :  { %v1347_v44 = vpop.f32.mrb[13].mxu1  ;;  %v7878_v50 = vadd.f32 %v5961_v43, %v5411_v22 }
 0x928   :  { %v1348_v45 = vadd.f32 %v5411_v22, %v1347_v44  ;;  %v6480_v22 = vpack.c.bf16 %v1603_v37, %v1602_v15 }
 0x929   :  { %v1367_v57 = vmul.f32 0.044715, %v7878_v50  ;;  %v1363_v43 = vmul.f32 0.7978846, %v7878_v50 }
 0x92a   :  { %v1366_v46 = vmul.f32 0.044715, %v1348_v45  ;;  %v1362_v59 = vmul.f32 0.7978846, %v1348_v45  ;;  %6481 = vmatprep.subr.bf16.mxu1 %v6480_v22 }
 0x92b   :  { %v1371_v11 = vmul.f32 %v1367_v57, %v7878_v50  ;;  %6483 = vmatpush3.bf16.msra.mxu1 %v6480_v22 }
 0x92c   :  { %v1370_v51 = vmul.f32 %v1366_v46, %v1348_v45  ;;  %6485 = vmatprep.subr.bf16.mxu1 %v6484_v24 }
 0x92d   :  { %v1375_v30 = vadd.f32 1.0, %v1371_v11 }
 0x92e   :  { %v1374_v12 = vadd.f32 1.0, %v1370_v51  ;;  %v1358_v51 = vmul.f32 0.5, %v1348_v45 }
 0x92f   :  { %v7065_v55 = vpop.eup %7064  ;;  %6487 = vmatpush3.bf16.msra.mxu1 %v6484_v24 }
 0x930   :  { %v7067_v60 = vpop.eup %7066  ;;  %v1385_v0 = vadd.f32 1.0, %v7065_v55  ;;  %v1378_v1 = vmul.f32 %v1374_v12, %v1362_v59  ;;  %v1379_v59 = vmul.f32 %v1375_v30, %v1363_v43  ;;  %v6492_v12 = vpack.c.bf16 %v1609_v38, %v1608_v18  ;;  %6489 = vmatprep.subr.bf16.mxu1 %v6488_v36 }
 0x931   :  { %v1384_v10 = vadd.f32 1.0, %v7067_v60 }
 0x932   :  { %v1389_v5 = vmul.f32 %v1385_v0, %v1357_v61  ;;  %7068 = vtanh.f32 %v1378_v1 }
 0x933   :  { %v1388_v13 = vmul.f32 %v1384_v10, %v1356_v14  ;;  %7070 = vtanh.f32 %v1379_v59  ;;  %6491 = vmatpush3.bf16.msra.mxu1 %v6488_v36  ;;  %v7238_v59 = vld [vmem:[%s9576_s0] sm:$0xff] }
 0x934   :  { %1564 = vrot.lane.b32.xlu0 %v1389_v5, %s7262_s12  ;;  %6493 = vmatprep.subr.bf16.mxu1 %v6492_v12 }
 0x936   :  { %v5996_v39 = vpop.f32.mrb[12].mxu0 }
 0x937   :  { %v1509_v27 = vadd.f32 %v5996_v39, %v5412_v4  ;;  %v1503_v28 = vpop.f32.mrb[13].mxu0  ;;  %6495 = vmatpush3.bf16.msra.mxu1 %v6492_v12  ;;  %v5410_v12 = vld [vmem:[%s9582_s6 + $0x3] ss:$0 sm:$0xff] }
 0x938   :  { %v1504_v31 = vadd.f32 %v5412_v4, %v1503_v28  ;;  %1562 = vrot.lane.b32.xlu0 %v1388_v13, %s7262_s12 }
 0x939   :  { %v1531_v33 = vmul.f32 0.044715, %v1509_v27  ;;  %v1527_v55 = vmul.f32 0.7978846, %v1509_v27  ;;  %v1523_v25 = vmul.f32 0.5, %v1509_v27 }
 0x93a   :  { %v1530_v44 = vmul.f32 0.044715, %v1504_v31  ;;  %v5999_v46 = vpop.f32.mrb[14].mxu0  ;;  %v1526_v0 = vmul.f32 0.7978846, %v1504_v31  ;;  %v1522_v30 = vmul.f32 0.5, %v1504_v31 }
 0x93b   :  { %v1535_v47 = vmul.f32 %v1531_v33, %v1509_v27  ;;  %v1519_v48 = vadd.f32 %v5999_v46, %v5412_v4  ;;  %v1513_v49 = vpop.f32.mrb[15].mxu0 }
 0x93c   :  { %v7069_v54 = vpop.eup %7068  ;;  %v1534_v56 = vmul.f32 %v1530_v44, %v1504_v31  ;;  %v1514_v58 = vadd.f32 %v5412_v4, %v1513_v49  ;;  %v1359_v44 = vmul.f32 0.5, %v7878_v50  ;;  %v7239_v50 = vld [vmem:[%s9576_s0 + $0x8] sm:$0xff] }
 0x93d   :  { %v1539_v60 = vadd.f32 1.0, %v1535_v47  ;;  %v1533_v57 = vmul.f32 0.044715, %v1519_v48  ;;  %v1386_v61 = vadd.f32 1.0, %v7069_v54  ;;  %v1529_v22 = vmul.f32 0.7978846, %v1519_v48  ;;  %v7071_v13 = vpop.eup %7070 }
 0x93e   :  { %v1538_v1 = vadd.f32 1.0, %v1534_v56  ;;  %v1532_v5 = vmul.f32 0.044715, %v1514_v58  ;;  %v1528_v4 = vmul.f32 0.7978846, %v1514_v58  ;;  %v1387_v38 = vadd.f32 1.0, %v7071_v13 }
 0x93f   :  { %v1537_v10 = vmul.f32 %v1533_v57, %v1519_v48  ;;  %v1390_v11 = vmul.f32 %v1386_v61, %v1358_v51  ;;  %v1543_v14 = vmul.f32 %v1539_v60, %v1527_v55  ;;  %v1524_v51 = vmul.f32 0.5, %v1514_v58 }
 0x940   :  { %v1536_v15 = vmul.f32 %v1532_v5, %v1514_v58  ;;  %v1542_v37 = vmul.f32 %v1538_v1, %v1526_v0  ;;  %v1391_v46 = vmul.f32 %v1387_v38, %v1359_v44  ;;  %v1525_v31 = vmul.f32 0.5, %v1519_v48  ;;  %v7240_v58 = vld [vmem:[%s9576_s0 + $0x10] sm:$0xff]  ;;  %v7241_v48 = vld [vmem:[%s9576_s0 + $0x18] sm:$0xff] }
 0x941   :  { %1566 = vrot.lane.b32.xlu0 %v1390_v11, %s7262_s12  ;;  %7072 = vtanh.f32 %v1543_v14  ;;  %v1541_v45 = vadd.f32 1.0, %v1537_v10  ;;  %v1172_v55 = vadd.f32 %v5410_v12, %v7860_v21  ;;  %v1177_v60 = vadd.f32 %v7858_v32, %v5410_v12 }
 0x942   :  { %v1540_v17 = vadd.f32 1.0, %v1536_v15  ;;  %7074 = vtanh.f32 %v1542_v37  ;;  %v1182_v1 = vadd.f32 %v5410_v12, %v7867_v29  ;;  %v1187_v11 = vadd.f32 %v7865_v16, %v5410_v12 }
 0x943   :  { %v1545_v39 = vmul.f32 %v1541_v45, %v1529_v22  ;;  %v1198_v57 = vmul.f32 0.044715, %v1172_v55  ;;  %v1199_v61 = vmul.f32 0.044715, %v1177_v60  ;;  %v1194_v37 = vmul.f32 0.7978846, %v1172_v55 }
 0x944   :  { %v1544_v23 = vmul.f32 %v1540_v17, %v1528_v4  ;;  %v1200_v14 = vmul.f32 0.044715, %v1182_v1  ;;  %v1195_v45 = vmul.f32 0.7978846, %v1177_v60  ;;  %v1201_v17 = vmul.f32 0.044715, %v1187_v11 }
 0x945   :  { %v1202_v0 = vmul.f32 %v1198_v57, %v1172_v55  ;;  %v1203_v5 = vmul.f32 %v1199_v61, %v1177_v60  ;;  %v1196_v32 = vmul.f32 0.7978846, %v1182_v1  ;;  %v1193_v57 = vmul.f32 0.5, %v1187_v11 }
 0x946   :  { %7076 = vtanh.f32 %v1544_v23  ;;  %v1204_v22 = vmul.f32 %v1200_v14, %v1182_v1  ;;  %v1205_v21 = vmul.f32 %v1201_v17, %v1187_v11  ;;  %v1819_v17 = vld [vmem:[%s9581_s5 + $0x2f8] sm:$0xff] }
 0x947   :  { %7078 = vtanh.f32 %v1545_v39  ;;  %v1206_v10 = vadd.f32 1.0, %v1202_v0  ;;  %v1207_v15 = vadd.f32 1.0, %v1203_v5 }
 0x948   :  { %v1208_v39 = vadd.f32 1.0, %v1204_v22  ;;  %v1209_v13 = vadd.f32 1.0, %v1205_v21  ;;  %v1821_v21 = vld [vmem:[%s9581_s5 + $0x308] sm:$0xff] }
 0x949   :  { %v1210_v4 = vmul.f32 %v1206_v10, %v1194_v37  ;;  %v1211_v23 = vmul.f32 %v1207_v15, %v1195_v45  ;;  %v1818_v37 = vld [vmem:[%s9581_s5 + $0x2f0] sm:$0xff]  ;;  %v7264_v45 = vmov 0.0|0.0  }
 0x94a   :  { %6496 = vmatprep.subr.bf16.mxu1 %v7264_v45  ;;  %v6500_v22 = vpack.c.bf16 %v1819_v17, %v1818_v37 }
 0x94b   :  { %v7073_v24 = vpop.eup %7072  ;;  %7080 = vtanh.f32 %v1210_v4 }
 0x94c   :  { %v7075_v26 = vpop.eup %7074  ;;  %v1551_v28 = vadd.f32 1.0, %v7073_v24  ;;  %7082 = vtanh.f32 %v1211_v23  ;;  %v1212_v24 = vmul.f32 %v1208_v39, %v1196_v32  ;;  %v1820_v23 = vld [vmem:[%s9581_s5 + $0x300] sm:$0xff]  ;;  %v1822_v32 = vld [vmem:[%s9581_s5 + $0x310] sm:$0xff] }
 0x94d   :  { %v1550_v33 = vadd.f32 1.0, %v7075_v26  ;;  %v1197_v26 = vmul.f32 0.7978846, %v1187_v11  ;;  %v1817_v11 = vld [vmem:[%s9581_s5 + $0x2e8] sm:$0xff]  ;;  %v6503_v39 = vpack.c.bf16 %v1821_v21, %v1820_v23 }
 0x94e   :  { %v1555_v36 = vmul.f32 %v1551_v28, %v1523_v25  ;;  %7084 = vtanh.f32 %v1212_v24 }
 0x94f   :  { %v1554_v18 = vmul.f32 %v1550_v33, %v1522_v30  ;;  %v1213_v25 = vmul.f32 %v1209_v13, %v1197_v26  ;;  %v1823_v13 = vld [vmem:[%s9581_s5 + $0x318] sm:$0xff]  ;;  %v1825_v26 = vld [vmem:[%s9581_s5 + $0x328] sm:$0xff] }
 0x950   :  { %v7077_v43 = vpop.eup %7076  ;;  %1580 = vrot.lane.b32.xlu1 %v1555_v36, %s7263_s3  ;;  %v6506_v24 = vpack.c.bf16 %v1823_v13, %v1822_v32 }
 0x951   :  { %1578 = vrot.lane.b32.xlu0 %v1554_v18, %s7263_s3  ;;  %v1552_v47 = vadd.f32 1.0, %v7077_v43  ;;  %v7079_v49 = vpop.eup %7078  ;;  %7086 = vtanh.f32 %v1213_v25  ;;  %v1190_v18 = vmul.f32 0.5, %v1172_v55  ;;  %v1191_v43 = vmul.f32 0.5, %v1177_v60 }
 0x952   :  { %v1553_v54 = vadd.f32 1.0, %v7079_v49 }
 0x953   :  { %v1556_v27 = vmul.f32 %v1552_v47, %v1524_v51 }
 0x954   :  { %v1557_v56 = vmul.f32 %v1553_v54, %v1525_v31 }
 0x955   :  { %1568 = vrot.lane.b32.xlu0 %v1391_v46, %s7262_s12  ;;  %v7081_v16 = vpop.eup %7080 }
 0x956   :  { %v7083_v28 = vpop.eup %7082  ;;  %v1218_v33 = vadd.f32 1.0, %v7081_v16  ;;  %v1826_v16 = vld [vmem:[%s9581_s5 + $0x330] sm:$0xff] }
 0x957   :  { %v1219_v36 = vadd.f32 1.0, %v7083_v28  ;;  %v1827_v28 = vld [vmem:[%s9581_s5 + $0x338] sm:$0xff] }
 0x958   :  { %v1222_v44 = vmul.f32 %v1218_v33, %v1190_v18  ;;  %v7085_v46 = vpop.eup %7084  ;;  %v1828_v33 = vld [vmem:[%s9581_s5 + $0x340] sm:$0xff] }
 0x959   :  { %1582 = vrot.lane.b32.xlu0 %v1556_v27, %s7263_s3  ;;  %v1223_v47 = vmul.f32 %v1219_v36, %v1191_v43  ;;  %v1829_v36 = vld [vmem:[%s9581_s5 + $0x348] sm:$0xff]  ;;  %v1831_v43 = vld [vmem:[%s9581_s5 + $0x358] sm:$0xff] }
 0x95a   :  { %v6515_v18 = vpack.c.bf16 %v1829_v36, %v1828_v33 }
 0x95d   :  { %1584 = vrot.lane.b32.xlu0 %v1557_v56, %s7263_s3  ;;  %v1220_v56 = vadd.f32 1.0, %v7085_v46  ;;  %v1832_v46 = vld [vmem:[%s9581_s5 + $0x360] sm:$0xff] }
 0x961   :  { %1752 = vrot.lane.b32.xlu0 %v7238_v59, %s7262_s12 }
 0x965   :  { %1754 = vrot.lane.b32.xlu0 %v7239_v50, %s7262_s12  ;;  %v7087_v50 = vpop.eup %7086 }
 0x966   :  { %v1221_v55 = vadd.f32 1.0, %v7087_v50  ;;  %v1838_v50 = vld [vmem:[%s9581_s5 + $0x390] sm:$0xff] }
 0x968   :  { %v1225_v5 = vmul.f32 %v1221_v55, %v1193_v57 }
 0x969   :  { %1756 = vrot.lane.b32.xlu0 %v7240_v58, %s7262_s12  ;;  %v1192_v58 = vmul.f32 0.5, %v1182_v1  ;;  %v1816_v1 = vld [vmem:[%s9581_s5 + $0x2e0] sm:$0xff] }
 0x96a   :  { %v6497_v4 = vpack.c.bf16 %v1817_v11, %v1816_v1 }
 0x96b   :  { %v1224_v12 = vmul.f32 %v1220_v56, %v1192_v58  ;;  %v1837_v56 = vld [vmem:[%s9581_s5 + $0x388] sm:$0xff]  ;;  %v1839_v58 = vld [vmem:[%s9581_s5 + $0x398] sm:$0xff] }
 0x96d   :  { %1758 = vrot.lane.b32.xlu0 %v7241_v48, %s7262_s12 }
 0x9a6   :  { %v1565_v29 = vpop.permute.xlu0 %1564 }
 0x9a7   :  { %v1591_v54 = vsel %vm182_vm2, %v1223_v47, %v1565_v29  ;;  %v1824_v29 = vld [vmem:[%s9581_s5 + $0x320] sm:$0xff]  ;;  %v1833_v47 = vld [vmem:[%s9581_s5 + $0x368] sm:$0xff] }
 0x9a8   :  { %v6509_v25 = vpack.c.bf16 %v1825_v26, %v1824_v29 }
 0x9aa   :  { %v1563_v30 = vpop.permute.xlu0 %1562 }
 0x9ab   :  { %v1590_v51 = vsel %vm182_vm2, %v1222_v44, %v1563_v30  ;;  %v6512_v30 = vpack.c.bf16 %v1827_v28, %v1826_v16 }
 0x9b3   :  { %v1567_v38 = vpop.permute.xlu0 %1566 }
 0x9b4   :  { %v1592_v60 = vsel %vm182_vm2, %v1224_v12, %v1567_v38  ;;  %v1830_v38 = vld [vmem:[%s9581_s5 + $0x350] sm:$0xff]  ;;  %v5413_v12 = vld [vmem:[%s9582_s6 + $0x6] ss:$0 sm:$0xff] }
 0x9b5   :  { %v6518_v44 = vpack.c.bf16 %v1831_v43, %v1830_v38 }
 0x9c2   :  { %v1581_v49 = vpop.permute.xlu1 %1580 }
 0x9c3   :  { %v1579_v27 = vpop.permute.xlu0 %1578  ;;  %v1595_v59 = vsel %vm187_vm3, %v1591_v54, %v1581_v49  ;;  %v6521_v49 = vpack.c.bf16 %v1833_v47, %v1832_v46 }
 0x9c4   :  { %v1594_v31 = vsel %vm187_vm3, %v1590_v51, %v1579_v27  ;;  %v1834_v51 = vld [vmem:[%s9581_s5 + $0x370] sm:$0xff]  ;;  %v1835_v27 = vld [vmem:[%s9581_s5 + $0x378] sm:$0xff] }
 0x9c5   :  { %6024 = vmatprep.mubr.msk.f32.mxu1 %vm209_vm4, %v1594_v31  ;;  %v6524_v54 = vpack.c.bf16 %v1835_v27, %v1834_v51  ;;  %v1836_v31 = vld [vmem:[%s9581_s5 + $0x380] sm:$0xff] }
 0x9c6   :  { %6025 = vmatmul.mubr.msk.f32.vlgmr.msra.gmra.mrb[14].mxu1 %vm209_vm4, %v1595_v59  ;;  %v6527_v59 = vpack.c.bf16 %v1837_v56, %v1836_v31 }
 0x9c7   :  { %v1569_v48 = vpop.permute.xlu0 %1568  ;;  %6498 = vmatpush1.bf16.msra.mxu1 %v6497_v4 }
 0x9c8   :  { %v1593_v10 = vsel %vm182_vm2, %v1225_v5, %v1569_v48  ;;  %6499 = vmatprep.subr.bf16.mxu1 %v7264_v45  ;;  %v6530_v48 = vpack.c.bf16 %v1839_v58, %v1838_v50 }
 0x9cb   :  { %v1583_v61 = vpop.permute.xlu0 %1582  ;;  %6501 = vmatpush1.bf16.msra.mxu1 %v6500_v22 }
 0x9cc   :  { %v1596_v0 = vsel %vm187_vm3, %v1592_v60, %v1583_v61  ;;  %6502 = vmatprep.subr.bf16.mxu1 %v7264_v45 }
 0x9cd   :  { %6027 = vmatprep.mubr.msk.f32.mxu1 %vm209_vm4, %v1596_v0 }
 0x9cf   :  { %v1585_v14 = vpop.permute.xlu0 %1584  ;;  %6504 = vmatpush1.bf16.msra.mxu1 %v6503_v39 }
 0x9d0   :  { %v1597_v15 = vsel %vm187_vm3, %v1593_v10, %v1585_v14  ;;  %6505 = vmatprep.subr.bf16.mxu1 %v7264_v45 }
 0x9d1   :  { %6028 = vmatmul.mubr.msk.f32.gmra.mrb[16].mxu1 %vm209_vm4, %v1597_v15 }
 0x9d3   :  { %6507 = vmatpush1.bf16.msra.mxu1 %v6506_v24  ;;  %v8044_v26 = vpop.permute.xlu0 %1752 }
 0x9d4   :  { %6508 = vmatprep.subr.bf16.mxu1 %v7264_v45 }
 0x9d7   :  { %6510 = vmatpush1.bf16.msra.mxu1 %v6509_v25 }
 0x9d8   :  { %6511 = vmatprep.subr.bf16.mxu1 %v7264_v45 }
 0x9db   :  { %6513 = vmatpush1.bf16.msra.mxu1 %v6512_v30 }
 0x9dc   :  { %6514 = vmatprep.subr.bf16.mxu1 %v7264_v45 }
 0x9df   :  { %6516 = vmatpush1.bf16.msra.mxu1 %v6515_v18 }
 0x9e0   :  { %6517 = vmatprep.subr.bf16.mxu1 %v7264_v45 }
 0x9e3   :  { %6519 = vmatpush1.bf16.msra.mxu1 %v6518_v44 }
 0x9e4   :  { %6520 = vmatprep.subr.bf16.mxu1 %v7264_v45 }
 0x9e7   :  { %6522 = vmatpush1.bf16.msra.mxu1 %v6521_v49  ;;  %v8046_v49 = vpop.permute.xlu0 %1754 }
 0x9e8   :  { %6523 = vmatprep.subr.bf16.mxu1 %v7264_v45 }
 0x9eb   :  { %6525 = vmatpush1.bf16.msra.mxu1 %v6524_v54  ;;  %v8066_v50 = vpop.permute.xlu0 %1756 }
 0x9ec   :  { %6526 = vmatprep.subr.bf16.mxu1 %v7264_v45 }
 0x9ef   :  { %6528 = vmatpush1.bf16.msra.mxu1 %v6527_v59 }
 0x9f0   :  { %6529 = vmatprep.subr.bf16.mxu1 %v7264_v45 }
 0x9f3   :  { %6531 = vmatpush1.bf16.msra.mxu1 %v6530_v48 }
 0xa99   :  { %v6026_v55 = vpop.f32.mrb[14].mxu1 }
 0xa9a   :  { %v1699_v60 = vadd.f32 %v6026_v55, %v5413_v12  ;;  %v1693_v57 = vpop.f32.mrb[15].mxu1 }
 0xa9b   :  { %v1694_v61 = vadd.f32 %v5413_v12, %v1693_v57 }
 0xa9c   :  { %v1721_v0 = vmul.f32 0.044715, %v1699_v60  ;;  %v1717_v15 = vmul.f32 0.7978846, %v1699_v60  ;;  %v1713_v43 = vmul.f32 0.5, %v1699_v60 }
 0xa9d   :  { %v1720_v5 = vmul.f32 0.044715, %v1694_v61  ;;  %v1716_v11 = vmul.f32 0.7978846, %v1694_v61  ;;  %v1712_v46 = vmul.f32 0.5, %v1694_v61 }
 0xa9e   :  { %v1725_v10 = vmul.f32 %v1721_v0, %v1699_v60 }
 0xa9f   :  { %v1724_v14 = vmul.f32 %v1720_v5, %v1694_v61 }
 0xaa0   :  { %v1729_v1 = vadd.f32 1.0, %v1725_v10 }
 0xaa1   :  { %v1728_v37 = vadd.f32 1.0, %v1724_v14 }
 0xaa2   :  { %v1733_v4 = vmul.f32 %v1729_v1, %v1717_v15 }
 0xaa3   :  { %v1732_v17 = vmul.f32 %v1728_v37, %v1716_v11  ;;  %v8075_v11 = vpop.permute.xlu0 %1758 }
 0xaa4   :  { %v6029_v22 = vpop.f32.mrb[16].mxu1  ;;  %7088 = vtanh.f32 %v1733_v4 }
 0xaa5   :  { %v1709_v23 = vadd.f32 %v6029_v22, %v5413_v12  ;;  %v1703_v21 = vpop.f32.mrb[17].mxu1  ;;  %7090 = vtanh.f32 %v1732_v17 }
 0xaa6   :  { %v1704_v39 = vadd.f32 %v5413_v12, %v1703_v21 }
 0xaa7   :  { %v1723_v32 = vmul.f32 0.044715, %v1709_v23  ;;  %v1719_v25 = vmul.f32 0.7978846, %v1709_v23  ;;  %v1715_v10 = vmul.f32 0.5, %v1709_v23 }
 0xaa8   :  { %v1722_v13 = vmul.f32 0.044715, %v1704_v39  ;;  %v1718_v28 = vmul.f32 0.7978846, %v1704_v39  ;;  %v1714_v15 = vmul.f32 0.5, %v1704_v39 }
 0xaa9   :  { %v1727_v24 = vmul.f32 %v1723_v32, %v1709_v23 }
 0xaaa   :  { %v1726_v29 = vmul.f32 %v1722_v13, %v1704_v39 }
 0xaab   :  { %v1731_v16 = vadd.f32 1.0, %v1727_v24 }
 0xaac   :  { %v1730_v30 = vadd.f32 1.0, %v1726_v29 }
 0xaad   :  { %v1735_v33 = vmul.f32 %v1731_v16, %v1719_v25 }
 0xaae   :  { %v7089_v36 = vpop.eup %7088  ;;  %v1734_v18 = vmul.f32 %v1730_v30, %v1718_v28 }
 0xaaf   :  { %v7091_v38 = vpop.eup %7090  ;;  %v1741_v44 = vadd.f32 1.0, %v7089_v36  ;;  %7092 = vtanh.f32 %v1735_v33 }
 0xab0   :  { %v1740_v47 = vadd.f32 1.0, %v7091_v38  ;;  %7094 = vtanh.f32 %v1734_v18 }
 0xab1   :  { %v8048_v51 = vmul.f32 %v1741_v44, %v1713_v43 }
 0xab2   :  { %v8050_v27 = vmul.f32 %v1740_v47, %v1712_v46 }
 0xab3   :  { %v8055_v54 = vsel %vm182_vm2, %v8048_v51, %v8046_v49 }
 0xab4   :  { %v8060_v31 = vsel %vm182_vm2, %v8050_v27, %v8044_v26  ;;  %v1769_v56 = vmul.f32 %v8055_v54, %v7418_v42 }
 0xab5   :  { %v1768_v59 = vmul.f32 %v8060_v31, %v7397_v35 }
 0xab6   :  { %v1773_v58 = vrot.slane %v1769_v56, 7  ;;  %v1785_v48 = vrot.slane %v1769_v56, 1  ;;  %1802 = vrot.lane.b32.xlu0 %v1769_v56, %s7263_s3 }
 0xab7   :  { %v1772_v12 = vrot.slane %v1768_v59, 7  ;;  %v1784_v55 = vrot.slane %v1768_v59, 1  ;;  %1800 = vrot.lane.b32.xlu1 %v1768_v59, %s7263_s3 }
 0xab9   :  { %v7093_v60 = vpop.eup %7092  ;;  %v1790_v57 = vsel %vm121_vm0, %v1784_v55, %v1785_v48  ;;  %v1778_v61 = vsel %vm88_vm1, %v1772_v12, %v1773_v58 }
 0xaba   :  { %v7095_v0 = vpop.eup %7094  ;;  %v1792_v5 = vmul.f32 %v1790_v57, %v7430_v53  ;;  %v1743_v14 = vadd.f32 1.0, %v7093_v60  ;;  %v1781_v46 = vmul.f32 %v1778_v61, %v7463_v7  ;;  %v2046_v61 = vld [vmem:[%s9581_s5 + $0x3a0] sm:$0xff] }
 0xabb   :  { %v1742_v1 = vadd.f32 1.0, %v7095_v0  ;;  %v2047_v0 = vld [vmem:[%s9581_s5 + $0x3a8] sm:$0xff] }
 0xabc   :  { %5419 = vmatprep.mubr.msk.f32.mxu1 %vm187_vm3, %v1792_v5  ;;  %v8078_v37 = vmul.f32 %v1743_v14, %v1715_v10  ;;  %v6532_v5 = vpack.c.bf16 %v2047_v0, %v2046_v61  ;;  %v5418_v10 = vld [vmem:[%s9582_s6 + $0x7] ss:$0 sm:$0xff]  ;;  %v2051_v0 = vld [vmem:[%s9581_s5 + $0x3c8] sm:$0xff] }
 0xabd   :  { %v8080_v4 = vmul.f32 %v1742_v1, %v1714_v15  ;;  %v2050_v61 = vld [vmem:[%s9581_s5 + $0x3c0] sm:$0xff] }
 0xabe   :  { %v8085_v17 = vsel %vm182_vm2, %v8078_v37, %v8075_v11  ;;  %6533 = vmatprep.subr.bf16.mxu0 %v6532_v5 }
 0xabf   :  { %v8090_v22 = vsel %vm182_vm2, %v8080_v4, %v8066_v50  ;;  %v1771_v23 = vmul.f32 %v8085_v17, %v7416_v41  ;;  %6535 = vmatpush3.bf16.msra.mxu0 %v6532_v5  ;;  %v2052_v5 = vld [vmem:[%s9581_s5 + $0x3d0] sm:$0xff] }
 0xac0   :  { %v1770_v21 = vmul.f32 %v8090_v22, %v7395_v34 }
 0xac1   :  { %v1775_v39 = vrot.slane %v1771_v23, 7  ;;  %v1787_v32 = vrot.slane %v1771_v23, 1  ;;  %1806 = vrot.lane.b32.xlu0 %v1771_v23, %s7263_s3 }
 0xac2   :  { %v1774_v13 = vrot.slane %v1770_v21, 7  ;;  %v1786_v24 = vrot.slane %v1770_v21, 1  ;;  %1804 = vrot.lane.b32.xlu1 %v1770_v21, %s7263_s3 }
 0xac3   :  { %v1779_v29 = vsel %vm88_vm1, %v1775_v39, %v1772_v12  ;;  %v1791_v25 = vsel %vm121_vm0, %v1787_v32, %v1784_v55 }
 0xac4   :  { %v1789_v16 = vsel %vm121_vm0, %v1785_v48, %v1786_v24  ;;  %v1788_v28 = vsel %vm121_vm0, %v1786_v24, %v1787_v32  ;;  %v1777_v30 = vsel %vm88_vm1, %v1773_v58, %v1774_v13  ;;  %v1776_v33 = vsel %vm88_vm1, %v1774_v13, %v1775_v39 }
 0xac5   :  { %v1780_v36 = vmul.f32 %v1779_v29, %v7461_v6  ;;  %v1793_v43 = vmul.f32 %v1789_v16, %v7428_v52  ;;  %v1794_v56 = vmul.f32 %v1788_v28, %v7446_v62  ;;  %v1782_v59 = vmul.f32 %v1777_v30, %v7465_v8 }
 0xac6   :  { %v1795_v12 = vmul.f32 %v1791_v25, %v7453_v3  ;;  %v1783_v60 = vmul.f32 %v1776_v33, %v7467_v9 }
 0xb28   :  { %v1803_v44 = vpop.permute.xlu0 %1802 }
 0xb29   :  { %v1801_v18 = vpop.permute.xlu1 %1800  ;;  %v1813_v47 = vsel %vm187_vm3, %v1781_v46, %v1803_v44 }
 0xb2a   :  { %v1812_v38 = vsel %vm187_vm3, %v1780_v36, %v1801_v18 }
 0xb2b   :  { %1922 = vmatmul.mubr.f32.vlgmr.msra.gmra.mrb[18].mxu1 %v1812_v38 }
 0xb2c   :  { %5420 = vmatprep.mubr.msk.f32.mxu1 %vm187_vm3, %v1793_v43 }
 0xb2f   :  { %1927 = vmatmul.mubr.f32.gmra.mrb[20].mxu1 %v1813_v47  ;;  %v2048_v47 = vld [vmem:[%s9581_s5 + $0x3b0] sm:$0xff] }
 0xb30   :  { %5421 = vmatprep.mubr.msk.f32.mxu1 %vm187_vm3, %v1794_v56  ;;  %v2049_v56 = vld [vmem:[%s9581_s5 + $0x3b8] sm:$0xff] }
 0xb33   :  { %v1807_v55 = vpop.permute.xlu0 %1806 }
 0xb34   :  { %v1805_v58 = vpop.permute.xlu1 %1804  ;;  %v1815_v57 = vsel %vm187_vm3, %v1783_v60, %v1807_v55 }
 0xb35   :  { %v1814_v48 = vsel %vm187_vm3, %v1782_v59, %v1805_v58 }
 0xb36   :  { %1932 = vmatmul.mubr.f32.gmra.mrb[22].mxu1 %v1814_v48 }
 0xb37   :  { %5422 = vmatprep.mubr.msk.f32.mxu1 %vm187_vm3, %v1795_v12  ;;  %v6536_v12 = vpack.c.bf16 %v2049_v56, %v2048_v47  ;;  %v2057_v56 = vld [vmem:[%s9581_s5 + $0x3f8] sm:$0xff] }
 0xb39   :  { %6537 = vmatprep.subr.bf16.mxu0 %v6536_v12 }
 0xb3a   :  { %1937 = vmatmul.mubr.f32.gmra.mrb[24].mxu1 %v1815_v57  ;;  %6539 = vmatpush3.bf16.msra.mxu0 %v6536_v12 }
 0xbfe   :  { %v1923_v14 = vpop.f32.mrb[18].mxu1 }
 0xbff   :  { %v1924_v15 = vadd.f32 %v5418_v10, %v1923_v14  ;;  %v1925_v1 = vpop.f32.mrb[19].mxu1 }
 0xc00   :  { %v6540_v1 = vpack.c.bf16 %v2051_v0, %v2050_v61 }
 0xc01   :  { %v1950_v23 = vmul.f32 0.044715, %v1924_v15  ;;  %v1946_v24 = vmul.f32 0.7978846, %v1924_v15 }
 0xc02   :  { %v1928_v21 = vpop.f32.mrb[20].mxu1  ;;  %6541 = vmatprep.subr.bf16.mxu0 %v6540_v1 }
 0xc03   :  { %v1954_v39 = vmul.f32 %v1950_v23, %v1924_v15  ;;  %v1929_v32 = vadd.f32 %v5418_v10, %v1928_v21  ;;  %v1930_v13 = vpop.f32.mrb[21].mxu1  ;;  %v2053_v23 = vld [vmem:[%s9581_s5 + $0x3d8] sm:$0xff]  ;;  %6543 = vmatpush3.bf16.msra.mxu0 %v6540_v1 }
 0xc04   :  { %v6544_v13 = vpack.c.bf16 %v2053_v23, %v2052_v5 }
 0xc05   :  { %v1958_v29 = vadd.f32 1.0, %v1954_v39  ;;  %v1951_v25 = vmul.f32 0.044715, %v1929_v32  ;;  %v1947_v30 = vmul.f32 0.7978846, %v1929_v32  ;;  %v1942_v39 = vmul.f32 0.5, %v1924_v15 }
 0xc06   :  { %6545 = vmatprep.subr.bf16.mxu0 %v6544_v13  ;;  %v2054_v15 = vld [vmem:[%s9581_s5 + $0x3e0] sm:$0xff] }
 0xc07   :  { %v1962_v16 = vmul.f32 %v1958_v29, %v1946_v24  ;;  %v1955_v28 = vmul.f32 %v1951_v25, %v1929_v32  ;;  %6547 = vmatpush3.bf16.msra.mxu0 %v6544_v13 }
 0xc09   :  { %v1959_v33 = vadd.f32 1.0, %v1955_v28  ;;  %v1933_v36 = vpop.f32.mrb[22].mxu1  ;;  %7096 = vtanh.f32 %v1962_v16 }
 0xc0a   :  { %v1934_v18 = vadd.f32 %v5418_v10, %v1933_v36  ;;  %v1935_v38 = vpop.f32.mrb[23].mxu1  ;;  %v1943_v36 = vmul.f32 0.5, %v1929_v32  ;;  %v2056_v32 = vld [vmem:[%s9581_s5 + $0x3f0] sm:$0xff] }
 0xc0b   :  { %v1963_v43 = vmul.f32 %v1959_v33, %v1947_v30 }
 0xc0c   :  { %v1952_v44 = vmul.f32 0.044715, %v1934_v18  ;;  %v1948_v55 = vmul.f32 0.7978846, %v1934_v18  ;;  %v1944_v61 = vmul.f32 0.5, %v1934_v18 }
 0xc0d   :  { %v1938_v46 = vpop.f32.mrb[24].mxu1  ;;  %7098 = vtanh.f32 %v1963_v43  ;;  %v2055_v43 = vld [vmem:[%s9581_s5 + $0x3e8] sm:$0xff] }
 0xc0e   :  { %v1956_v59 = vmul.f32 %v1952_v44, %v1934_v18  ;;  %v1939_v58 = vadd.f32 %v5418_v10, %v1938_v46  ;;  %v1940_v48 = vpop.f32.mrb[25].mxu1  ;;  %v6548_v44 = vpack.c.bf16 %v2055_v43, %v2054_v15 }
 0xc10   :  { %v1960_v60 = vadd.f32 1.0, %v1956_v59  ;;  %v1953_v57 = vmul.f32 0.044715, %v1939_v58  ;;  %v1949_v24 = vmul.f32 0.7978846, %v1939_v58  ;;  %6549 = vmatprep.subr.bf16.mxu0 %v6548_v44  ;;  %v6552_v59 = vpack.c.bf16 %v2057_v56, %v2056_v32 }
 0xc11   :  { %6551 = vmatpush3.bf16.msra.mxu0 %v6548_v44 }
 0xc12   :  { %v1964_v10 = vmul.f32 %v1960_v60, %v1948_v55  ;;  %v1957_v14 = vmul.f32 %v1953_v57, %v1939_v58  ;;  %6553 = vmatprep.subr.bf16.mxu0 %v6552_v59 }
 0xc13   :  { %v7097_v21 = vpop.eup %7096 }
 0xc14   :  { %v1961_v29 = vadd.f32 1.0, %v1957_v14  ;;  %v1970_v25 = vadd.f32 1.0, %v7097_v21  ;;  %7100 = vtanh.f32 %v1964_v10  ;;  %v1945_v21 = vmul.f32 0.5, %v1939_v58 }
 0xc15   :  { %6555 = vmatpush3.bf16.msra.mxu0 %v6552_v59 }
 0xc16   :  { %v1965_v16 = vmul.f32 %v1961_v29, %v1949_v24  ;;  %v1974_v28 = vmul.f32 %v1970_v25, %v1942_v39 }
 0xc17   :  { %v7099_v30 = vpop.eup %7098 }
 0xc18   :  { %v1978_v33 = vmul.f32 %v1974_v28, %v7397_v35  ;;  %v1971_v38 = vadd.f32 1.0, %v7099_v30  ;;  %7102 = vtanh.f32 %v1965_v16 }
 0xc1a   :  { %2010 = vrot.lane.b32.xlu1 %v1978_v33, %s7262_s12  ;;  %v1975_v46 = vmul.f32 %v1971_v38, %v1943_v36  ;;  %v1982_v12 = vrot.slane %v1978_v33, 7  ;;  %v1994_v55 = vrot.slane %v1978_v33, 1 }
 0xc1c   :  { %v1979_v47 = vmul.f32 %v1975_v46, %v7418_v42 }
 0xc1e   :  { %v7101_v48 = vpop.eup %7100  ;;  %2012 = vrot.lane.b32.xlu0 %v1979_v47, %s7262_s12  ;;  %v1983_v60 = vrot.slane %v1979_v47, 7  ;;  %v1995_v57 = vrot.slane %v1979_v47, 1 }
 0xc1f   :  { %v1972_v0 = vadd.f32 1.0, %v7101_v48 }
 0xc20   :  { %v2000_v5 = vsel %vm121_vm0, %v1994_v55, %v1995_v57  ;;  %v1988_v10 = vsel %vm88_vm1, %v1982_v12, %v1983_v60 }
 0xc21   :  { %v1976_v14 = vmul.f32 %v1972_v0, %v1944_v61  ;;  %v2002_v29 = vmul.f32 %v2000_v5, %v7430_v53 }
 0xc22   :  { %v7103_v1 = vpop.eup %7102 }
 0xc23   :  { %v1980_v23 = vmul.f32 %v1976_v14, %v7395_v34  ;;  %v1973_v39 = vadd.f32 1.0, %v7103_v1 }
 0xc25   :  { %2014 = vrot.lane.b32.xlu1 %v1980_v23, %s7262_s12  ;;  %v1984_v13 = vrot.slane %v1980_v23, 7  ;;  %v1996_v24 = vrot.slane %v1980_v23, 1  ;;  %v1977_v18 = vmul.f32 %v1973_v39, %v1945_v21 }
 0xc27   :  { %v1981_v25 = vmul.f32 %v1977_v18, %v7416_v41  ;;  %v1999_v16 = vsel %vm121_vm0, %v1995_v57, %v1996_v24  ;;  %v1987_v28 = vsel %vm88_vm1, %v1983_v60, %v1984_v13  ;;  %v1991_v57 = vmul.f32 %v1988_v10, %v7463_v7  ;;  %v2216_v18 = vld [vmem:[%s9581_s5 + $0x400] sm:$0xff] }
 0xc28   :  { %v2003_v33 = vmul.f32 %v1999_v16, %v7428_v52  ;;  %v1992_v61 = vmul.f32 %v1987_v28, %v7465_v8  ;;  %v2219_v28 = vld [vmem:[%s9581_s5 + $0x418] sm:$0xff] }
 0xc29   :  { %2026 = vrot.lane.b32.xlu1 %v2002_v29, %s7263_s3  ;;  %2016 = vrot.lane.b32.xlu0 %v1981_v25, %s7262_s12  ;;  %v1985_v58 = vrot.slane %v1981_v25, 7  ;;  %v1997_v30 = vrot.slane %v1981_v25, 1  ;;  %v2217_v29 = vld [vmem:[%s9581_s5 + $0x408] sm:$0xff]  ;;  %v2218_v25 = vld [vmem:[%s9581_s5 + $0x410] sm:$0xff] }
 0xc2a   :  { %v6556_v16 = vpack.c.bf16 %v2217_v29, %v2216_v18 }
 0xc2b   :  { %v1998_v36 = vsel %vm121_vm0, %v1996_v24, %v1997_v30  ;;  %v2001_v38 = vsel %vm121_vm0, %v1997_v30, %v1994_v55  ;;  %v1989_v15 = vsel %vm88_vm1, %v1985_v58, %v1982_v12  ;;  %v1986_v43 = vsel %vm88_vm1, %v1984_v13, %v1985_v58  ;;  %v2220_v30 = vld [vmem:[%s9581_s5 + $0x420] sm:$0xff] }
 0xc2c   :  { %v2004_v44 = vmul.f32 %v1998_v36, %v7446_v62  ;;  %v2005_v46 = vmul.f32 %v2001_v38, %v7453_v3  ;;  %v1990_v59 = vmul.f32 %v1989_v15, %v7461_v6  ;;  %v1993_v21 = vmul.f32 %v1986_v43, %v7467_v9  ;;  %6557 = vmatprep.subr.bf16.mxu0 %v6556_v16  ;;  %v2222_v38 = vld [vmem:[%s9581_s5 + $0x430] sm:$0xff]  ;;  %v2223_v15 = vld [vmem:[%s9581_s5 + $0x438] sm:$0xff] }
 0xc2d   :  { %2028 = vrot.lane.b32.xlu0 %v2003_v33, %s7263_s3  ;;  %v6560_v58 = vpack.c.bf16 %v2219_v28, %v2218_v25  ;;  %v2221_v33 = vld [vmem:[%s9581_s5 + $0x428] sm:$0xff]  ;;  %v6568_v43 = vpack.c.bf16 %v2223_v15, %v2222_v38 }
 0xc2e   :  { %2030 = vrot.lane.b32.xlu1 %v2004_v44, %s7263_s3  ;;  %v6564_v36 = vpack.c.bf16 %v2221_v33, %v2220_v30  ;;  %v2224_v44 = vld [vmem:[%s9581_s5 + $0x440] sm:$0xff] }
 0xc31   :  { %2032 = vrot.lane.b32.xlu0 %v2005_v46, %s7263_s3  ;;  %v2225_v46 = vld [vmem:[%s9581_s5 + $0x448] sm:$0xff] }
 0xc8c   :  { %v2011_v47 = vpop.permute.xlu1 %2010 }
 0xc8d   :  { %v2038_v48 = vsel %vm182_vm2, %v1990_v59, %v2011_v47  ;;  %v6572_v47 = vpack.c.bf16 %v2225_v46, %v2224_v44 }
 0xc90   :  { %v2013_v32 = vpop.permute.xlu0 %2012 }
 0xc91   :  { %v2039_v0 = vsel %vm182_vm2, %v1991_v57, %v2013_v32  ;;  %v2226_v32 = vld [vmem:[%s9581_s5 + $0x450] sm:$0xff] }
 0xc97   :  { %v2015_v56 = vpop.permute.xlu1 %2014 }
 0xc98   :  { %v2040_v14 = vsel %vm182_vm2, %v1992_v61, %v2015_v56  ;;  %v2227_v56 = vld [vmem:[%s9581_s5 + $0x458] sm:$0xff] }
 0xc99   :  { %v6576_v59 = vpack.c.bf16 %v2227_v56, %v2226_v32 }
 0xc9b   :  { %v2027_v12 = vpop.permute.xlu1 %2026  ;;  %v2017_v55 = vpop.permute.xlu0 %2016 }
 0xc9c   :  { %v2042_v60 = vsel %vm187_vm3, %v2038_v48, %v2027_v12  ;;  %v2041_v10 = vsel %vm182_vm2, %v1993_v21, %v2017_v55  ;;  %v5423_v48 = vld [vmem:[%s9582_s6 + $0x8] ss:$0 sm:$0xff] }
 0xc9d   :  { %6054 = vmatprep.mubr.msk.f32.mxu0 %vm209_vm4, %v2042_v60 }
 0xc9f   :  { %v2029_v5 = vpop.permute.xlu0 %2028 }
 0xca0   :  { %v2043_v1 = vsel %vm187_vm3, %v2039_v0, %v2029_v5  ;;  %v2031_v23 = vpop.permute.xlu1 %2030 }
 0xca1   :  { %v2044_v39 = vsel %vm187_vm3, %v2040_v14, %v2031_v23  ;;  %6055 = vmatmul.mubr.msk.f32.vlgmr.msra.gmra.mrb[16].mxu0 %vm209_vm4, %v2043_v1 }
 0xca2   :  { %6057 = vmatprep.mubr.msk.f32.mxu0 %vm209_vm4, %v2044_v39  ;;  %6559 = vmatpush3.bf16.msra.mxu0 %v6556_v16 }
 0xca3   :  { %v2033_v13 = vpop.permute.xlu0 %2032  ;;  %6561 = vmatprep.subr.bf16.mxu0 %v6560_v58 }
 0xca4   :  { %v2045_v24 = vsel %vm187_vm3, %v2041_v10, %v2033_v13 }
 0xca5   :  { %6058 = vmatmul.mubr.msk.f32.gmra.mrb[18].mxu0 %vm209_vm4, %v2045_v24 }
 0xca6   :  { %6563 = vmatpush3.bf16.msra.mxu0 %v6560_v58 }
 0xca7   :  { %6565 = vmatprep.subr.bf16.mxu0 %v6564_v36 }
 0xcaa   :  { %6567 = vmatpush3.bf16.msra.mxu0 %v6564_v36 }
 0xcab   :  { %6569 = vmatprep.subr.bf16.mxu0 %v6568_v43 }
 0xcae   :  { %6571 = vmatpush3.bf16.msra.mxu0 %v6568_v43 }
 0xcaf   :  { %6573 = vmatprep.subr.bf16.mxu0 %v6572_v47 }
 0xcb2   :  { %6575 = vmatpush3.bf16.msra.mxu0 %v6572_v47 }
 0xcb3   :  { %6577 = vmatprep.subr.bf16.mxu0 %v6576_v59 }
 0xcb6   :  { %6579 = vmatpush3.bf16.msra.mxu0 %v6576_v59 }
 0xd74   :  { %v6056_v12 = vpop.f32.mrb[16].mxu0 }
 0xd75   :  { %v2147_v55 = vadd.f32 %v6056_v12, %v5423_v48  ;;  %v2141_v60 = vpop.f32.mrb[17].mxu0 }
 0xd76   :  { %v2142_v57 = vadd.f32 %v5423_v48, %v2141_v60 }
 0xd77   :  { %v2169_v61 = vmul.f32 0.044715, %v2147_v55  ;;  %v2165_v10 = vmul.f32 0.7978846, %v2147_v55  ;;  %v2161_v32 = vmul.f32 0.5, %v2147_v55 }
 0xd78   :  { %v2168_v0 = vmul.f32 0.044715, %v2142_v57  ;;  %v6059_v5 = vpop.f32.mrb[18].mxu0  ;;  %v2164_v18 = vmul.f32 0.7978846, %v2142_v57  ;;  %v2160_v59 = vmul.f32 0.5, %v2142_v57 }
 0xd79   :  { %v2173_v14 = vmul.f32 %v2169_v61, %v2147_v55  ;;  %v2157_v1 = vadd.f32 %v6059_v5, %v5423_v48  ;;  %v2151_v23 = vpop.f32.mrb[19].mxu0 }
 0xd7a   :  { %v2172_v21 = vmul.f32 %v2168_v0, %v2142_v57  ;;  %v2152_v39 = vadd.f32 %v5423_v48, %v2151_v23 }
 0xd7b   :  { %v2177_v13 = vadd.f32 1.0, %v2173_v14  ;;  %v2171_v24 = vmul.f32 0.044715, %v2157_v1  ;;  %v2167_v33 = vmul.f32 0.7978846, %v2157_v1  ;;  %v2163_v5 = vmul.f32 0.5, %v2157_v1 }
 0xd7c   :  { %v2176_v29 = vadd.f32 1.0, %v2172_v21  ;;  %v2170_v25 = vmul.f32 0.044715, %v2152_v39  ;;  %v2166_v38 = vmul.f32 0.7978846, %v2152_v39  ;;  %v2162_v23 = vmul.f32 0.5, %v2152_v39 }
 0xd7d   :  { %v2175_v16 = vmul.f32 %v2171_v24, %v2157_v1  ;;  %v2181_v28 = vmul.f32 %v2177_v13, %v2165_v10 }
 0xd7e   :  { %v2174_v58 = vmul.f32 %v2170_v25, %v2152_v39  ;;  %v2180_v30 = vmul.f32 %v2176_v29, %v2164_v18 }
 0xd7f   :  { %v2179_v36 = vadd.f32 1.0, %v2175_v16  ;;  %7104 = vtanh.f32 %v2181_v28 }
 0xd80   :  { %v2178_v15 = vadd.f32 1.0, %v2174_v58  ;;  %7106 = vtanh.f32 %v2180_v30 }
 0xd81   :  { %v2183_v43 = vmul.f32 %v2179_v36, %v2167_v33 }
 0xd82   :  { %v2182_v44 = vmul.f32 %v2178_v15, %v2166_v38 }
 0xd83   :  { %7108 = vtanh.f32 %v2183_v43 }
 0xd84   :  { %7110 = vtanh.f32 %v2182_v44 }
 0xd89   :  { %v7105_v46 = vpop.eup %7104 }
 0xd8a   :  { %v7107_v47 = vpop.eup %7106  ;;  %v2189_v56 = vadd.f32 1.0, %v7105_v46 }
 0xd8b   :  { %v2188_v48 = vadd.f32 1.0, %v7107_v47 }
 0xd8c   :  { %v2193_v12 = vmul.f32 %v2189_v56, %v2161_v32 }
 0xd8d   :  { %v7109_v60 = vpop.eup %7108  ;;  %v2192_v61 = vmul.f32 %v2188_v48, %v2160_v59 }
 0xd8e   :  { %v7111_v0 = vpop.eup %7110  ;;  %2202 = vrot.lane.b32.xlu0 %v2193_v12, %s7263_s3  ;;  %v2191_v14 = vadd.f32 1.0, %v7109_v60 }
 0xd8f   :  { %2200 = vrot.lane.b32.xlu1 %v2192_v61, %s7263_s3  ;;  %v2190_v21 = vadd.f32 1.0, %v7111_v0 }
 0xd90   :  { %v2195_v10 = vmul.f32 %v2191_v14, %v2163_v5 }
 0xd91   :  { %v2194_v13 = vmul.f32 %v2190_v21, %v2162_v23 }
 0xd92   :  { %2206 = vrot.lane.b32.xlu0 %v2195_v10, %s7263_s3 }
 0xd93   :  { %2204 = vrot.lane.b32.xlu1 %v2194_v13, %s7263_s3 }
 0xe00   :  { %v2203_v55 = vpop.permute.xlu0 %2202 }
 0xe01   :  { %v2201_v57 = vpop.permute.xlu1 %2200  ;;  %v8260_v1 = vsel %vm187_vm3, %v8055_v54, %v2203_v55 }
 0xe02   :  { %v8256_v24 = vsel %vm187_vm3, %v8060_v31, %v2201_v57 }
 0xe03   :  { %6084 = vmatprep.mubr.msk.f32.mxu0 %vm209_vm4, %v8256_v24 }
 0xe04   :  { %6085 = vmatmul.mubr.msk.f32.vlgmr.msra.gmra.mrb[20].mxu0 %vm209_vm4, %v8260_v1  ;;  %v2207_v39 = vpop.permute.xlu0 %2206 }
 0xe05   :  { %v8268_v18 = vsel %vm187_vm3, %v8085_v17, %v2207_v39  ;;  %v2205_v29 = vpop.permute.xlu1 %2204  ;;  %v5428_v17 = vld [vmem:[%s9582_s6 + $0x9] ss:$0 sm:$0xff] }
 0xe06   :  { %v8272_v31 = vsel %vm187_vm3, %v8090_v22, %v2205_v29 }
 0xe07   :  { %6087 = vmatprep.mubr.msk.f32.mxu0 %vm209_vm4, %v8272_v31  ;;  %v6586_v54 = vpack.c.bf16 %v8268_v18, %v8272_v31 }
 0xe08   :  { %6088 = vmatmul.mubr.msk.f32.gmra.mrb[22].mxu0 %vm209_vm4, %v8268_v18 }
 0xe09   :  { %6587 = vmatprep.subr.bf16.mxu1 %v6586_v54 }
 0xe0a   :  { %6589 = vmatpush3.bf16.msra.mxu1 %v6586_v54 }
 0xe0b   :  { %6594 = vmatprep.subr.bf16.mxu1 %v7264_v45 }
 0xed7   :  { %v6086_v25 = vpop.f32.mrb[20].mxu0 }
 0xed8   :  { %v2311_v22 = vpop.f32.mrb[21].mxu0  ;;  %v2317_v16 = vadd.f32 %v6086_v25, %v5428_v17 }
 0xed9   :  { %v2312_v28 = vadd.f32 %v5428_v17, %v2311_v22 }
 0xeda   :  { %v2339_v38 = vmul.f32 0.044715, %v2317_v16  ;;  %v2335_v10 = vmul.f32 0.7978846, %v2317_v16 }
 0xedb   :  { %v2338_v58 = vmul.f32 0.044715, %v2312_v28  ;;  %v6089_v30 = vpop.f32.mrb[22].mxu0  ;;  %v2334_v46 = vmul.f32 0.7978846, %v2312_v28  ;;  %v2330_v57 = vmul.f32 0.5, %v2312_v28 }
 0xedc   :  { %v2327_v33 = vadd.f32 %v6089_v30, %v5428_v17  ;;  %v2321_v36 = vpop.f32.mrb[23].mxu0  ;;  %v2343_v59 = vmul.f32 %v2339_v38, %v2317_v16 }
 0xedd   :  { %v2342_v15 = vmul.f32 %v2338_v58, %v2312_v28  ;;  %v2322_v43 = vadd.f32 %v5428_v17, %v2321_v36  ;;  %v6590_v28 = vpack.c.bf16 %v8260_v1, %v8256_v24 }
 0xede   :  { %v2341_v44 = vmul.f32 0.044715, %v2327_v33  ;;  %v2337_v60 = vmul.f32 0.7978846, %v2327_v33  ;;  %v2347_v23 = vadd.f32 1.0, %v2343_v59  ;;  %v2333_v25 = vmul.f32 0.5, %v2327_v33 }
 0xedf   :  { %v2346_v47 = vadd.f32 1.0, %v2342_v15  ;;  %v2340_v32 = vmul.f32 0.044715, %v2322_v43  ;;  %v2336_v0 = vmul.f32 0.7978846, %v2322_v43  ;;  %v2332_v58 = vmul.f32 0.5, %v2322_v43 }
 0xee0   :  { %v2345_v56 = vmul.f32 %v2341_v44, %v2327_v33  ;;  %v2351_v13 = vmul.f32 %v2347_v23, %v2335_v10  ;;  %v2331_v33 = vmul.f32 0.5, %v2317_v16 }
 0xee1   :  { %v2350_v48 = vmul.f32 %v2346_v47, %v2334_v46  ;;  %v2344_v12 = vmul.f32 %v2340_v32, %v2322_v43  ;;  %v2454_v47 = vstv %s5437_s10 }
 0xee2   :  { %v2349_v61 = vadd.f32 1.0, %v2345_v56 }
 0xee3   :  { %7112 = vtanh.f32 %v2350_v48  ;;  %v2348_v5 = vadd.f32 1.0, %v2344_v12 }
 0xee4   :  { %v2353_v14 = vmul.f32 %v2349_v61, %v2337_v60 }
 0xee5   :  { %v2352_v21 = vmul.f32 %v2348_v5, %v2336_v0 }
 0xee6   :  { %7114 = vtanh.f32 %v2353_v14 }
 0xee7   :  { %7116 = vtanh.f32 %v2352_v21 }
 0xee8   :  { %7118 = vtanh.f32 %v2351_v13 }
 0xeed   :  { %v7113_v55 = vpop.eup %7112 }
 0xeee   :  { %v2358_v39 = vadd.f32 1.0, %v7113_v55 }
 0xef0   :  { %v7115_v29 = vpop.eup %7114  ;;  %v2362_v54 = vmul.f32 %v2358_v39, %v2330_v57 }
 0xef1   :  { %v7117_v17 = vpop.eup %7116  ;;  %v2361_v22 = vadd.f32 1.0, %v7115_v29 }
 0xef2   :  { %6094 = vmatprep.mubr.msk.f32.mxu0 %vm182_vm2, %v2362_v54  ;;  %v2360_v30 = vadd.f32 1.0, %v7117_v17  ;;  %v7119_v44 = vpop.eup %7118 }
 0xef3   :  { %v2365_v36 = vmul.f32 %v2361_v22, %v2333_v25  ;;  %v2359_v46 = vadd.f32 1.0, %v7119_v44 }
 0xef4   :  { %v2364_v38 = vmul.f32 %v2360_v30, %v2332_v58 }
 0xef5   :  { %v2363_v43 = vmul.f32 %v2359_v46, %v2331_v33 }
 0xef6   :  { %v6580_v15 = vpack.c.bf16 %v2365_v36, %v2364_v38 }
 0xef8   :  { %6582 = vmatprep.subr.msk.bf16.mxu0 %vm7633_vm5, %v6580_v15 }
 0xef9   :  { %6585 = vmatpush3.bf16.xpose.msk.msra.mxu0 %vm7633_vm5, %v6580_v15 }
 0xefa   :  { %6591 = vmatprep.subr.bf16.mxu0 %v6590_v28 }
 0xf00   :  { %6095 = vmatmul.mubr.msk.f32.vlgmr.msra.gmra.mrb[24].mxu0 %vm182_vm2, %v2363_v43 }
 0xf01   :  { %6593 = vmatpush3.bf16.msra.mxu0 %v6590_v28 }
 0xf02   :  { %6630 = vmatprep.subr.bf16.mxu0 %v7264_v45 }
 0xfd3   :  { %v6096_v32 = vpop.f32.mrb[24].mxu0 }
 0xfd4   :  { %v2456_v56 = vmul.f32 %v6096_v32, %v2454_v47  ;;  %v2444_v59 = vpop.f32.mrb[25].mxu0 }
 0xfd5   :  { %v2455_v48 = vmul.f32 %v2454_v47, %v2444_v59 }
 0xfd6   :  { %v2458_v12 = vsel %vm819_vm6, %v2456_v56, -10000000.0 }
 0xfd7   :  { %v2457_v60 = vsel %vm818_vm7, %v2455_v48, -10000000.0  ;;  %v2460_v16 = vsel %vm822_vm8, %v2458_v12, -inf }
 0xfd8   :  { %2488 = vmax.xlane.f32.xlu0 %v2460_v16  ;;  %v2459_v61 = vsel %vm822_vm8, %v2457_v60, -inf }
 0xfd9   :  { %2486 = vmax.xlane.f32.xlu1 %v2459_v61  ;;  %v2461_v0 = vmax.f32 %v2459_v61, %v2460_v16 }
 0xfdb   :  { %v2462_v5 = vrot.slane %v2461_v0, 4 }
 0xfdd   :  { %v2463_v14 = vmax.f32 %v2461_v0, %v2462_v5 }
 0xfdf   :  { %v2464_v23 = vrot.slane %v2463_v14, 2 }
 0xfe1   :  { %v2465_v21 = vmax.f32 %v2463_v14, %v2464_v23 }
 0xfe3   :  { %v2466_v10 = vrot.slane %v2465_v21, 1 }
 0xfe5   :  { %v2467_v13 = vmax.f32 %v2465_v21, %v2466_v10 }
 0xfe7   :  { %v2468_v55 = vsub.f32 %v2457_v60, %v2467_v13  ;;  %v2469_v57 = vsub.f32 %v2458_v12, %v2467_v13 }
 0xfe9   :  { %v2470_v39 = vmul.f32 1.442695, %v2468_v55  ;;  %v2472_v29 = vmul.f32 1.442695, %v2469_v57 }
 0xfeb   :  { %7120 = vpow2.f32 %v2470_v39  ;;  %v2720_v39 = vld [vmem:[%s9581_s5 + $0x460] sm:$0xff] }
 0xfec   :  { %7122 = vpow2.f32 %v2472_v29  ;;  %v2721_v29 = vld [vmem:[%s9581_s5 + $0x468] sm:$0xff] }
 0xff5   :  { %v7121_v36 = vpop.eup %7120 }
 0xff6   :  { %v7123_v38 = vpop.eup %7122  ;;  %v2474_v46 = vsel %vm822_vm8, %v7121_v36, 0.0 }
 0xff7   :  { %v2475_v33 = vsel %vm822_vm8, %v7123_v38, 0.0 }
 0xff8   :  { %v2476_v47 = vadd.f32 %v2475_v33, %v2474_v46  ;;  %v2904_v33 = vld [vmem:[%s9581_s5 + $0x530] sm:$0xff] }
 0xffa   :  { %v2477_v32 = vrot.slane %v2476_v47, 4 }
 0xffc   :  { %v2478_v56 = vadd.f32 %v2477_v32, %v2476_v47 }
 0xffe   :  { %v2479_v59 = vrot.slane %v2478_v56, 2 }
0x1000   :  { %v2480_v48 = vadd.f32 %v2479_v59, %v2478_v56  ;;  %v2728_v56 = vld [vmem:[%s9581_s5 + $0x4a0] sm:$0xff]  ;;  %v2729_v59 = vld [vmem:[%s9581_s5 + $0x4a8] sm:$0xff] }
0x1065   :  { %v2489_v54 = vpop.xlane.xlu0 %2488 }
0x1066   :  { %v2491_v17 = vsub.f32 %v2458_v12, %v2489_v54  ;;  %v2487_v25 = vpop.xlane.xlu1 %2486  ;;  %v2481_v12 = vrot.slane %v2480_v48, 1  ;;  %v2722_v54 = vld [vmem:[%s9581_s5 + $0x470] sm:$0xff] }
0x1067   :  { %v2490_v22 = vsub.f32 %v2457_v60, %v2487_v25  ;;  %v2723_v25 = vld [vmem:[%s9581_s5 + $0x478] sm:$0xff] }
0x1068   :  { %v2494_v58 = vmul.f32 1.442695, %v2491_v17  ;;  %v2482_v60 = vadd.f32 %v2481_v12, %v2480_v48  ;;  %v6595_v17 = vpack.c.bf16 %v2721_v29, %v2720_v39  ;;  %v6607_v48 = vpack.c.bf16 %v2729_v59, %v2728_v56  ;;  %v2730_v12 = vld [vmem:[%s9581_s5 + $0x4b0] sm:$0xff]  ;;  %v2739_v39 = vld [vmem:[%s9581_s5 + $0x4f8] sm:$0xff] }
0x1069   :  { %v2492_v30 = vmul.f32 1.442695, %v2490_v22  ;;  %v6598_v22 = vpack.c.bf16 %v2723_v25, %v2722_v54  ;;  %v2740_v54 = vld [vmem:[%s9581_s5 + $0x500] sm:$0xff]  ;;  %v2913_v56 = vld [vmem:[%s9581_s5 + $0x578] sm:$0xff] }
0x106a   :  { %7124 = vpow2.f32 %v2494_v58  ;;  %v2724_v58 = vld [vmem:[%s9581_s5 + $0x480] sm:$0xff] }
0x106b   :  { %7126 = vpow2.f32 %v2492_v30  ;;  %v2725_v30 = vld [vmem:[%s9581_s5 + $0x488] sm:$0xff] }
0x106c   :  { %7128 = vrcp.f32 %v2482_v60  ;;  %v2731_v60 = vld [vmem:[%s9581_s5 + $0x4b8] sm:$0xff] }
0x1074   :  { %v7125_v15 = vpop.eup %7124 }
0x1075   :  { %v7127_v44 = vpop.eup %7126  ;;  %v2499_v28 = vsel %vm822_vm8, %v7125_v15, 0.0 }
0x1076   :  { %2500 = vadd.xlane.f32.xlu1 %v2499_v28  ;;  %v2496_v43 = vsel %vm822_vm8, %v7127_v44, 0.0  ;;  %v7129_v16 = vpop.eup %7128  ;;  %v2727_v28 = vld [vmem:[%s9581_s5 + $0x498] sm:$0xff] }
0x1077   :  { %2497 = vadd.xlane.f32.xlu0 %v2496_v43  ;;  %v2484_v61 = vmul.f32 %v7129_v16, %v7121_v36  ;;  %v2485_v0 = vmul.f32 %v7129_v16, %v7123_v38  ;;  %v2902_v36 = vld [vmem:[%s9581_s5 + $0x520] sm:$0xff]  ;;  %v6601_v38 = vpack.c.bf16 %v2725_v30, %v2724_v58  ;;  %v2905_v43 = vld [vmem:[%s9581_s5 + $0x538] sm:$0xff]  ;;  %v6610_v16 = vpack.c.bf16 %v2731_v60, %v2730_v12 }
0x1078   :  { %v6634_v47 = vpack.c.bf16 %v2905_v43, %v2904_v33  ;;  %v2743_v58 = vld [vmem:[%s9581_s5 + $0x518] sm:$0xff]  ;;  %v2910_v33 = vld [vmem:[%s9581_s5 + $0x560] sm:$0xff]  ;;  %v2911_v43 = vld [vmem:[%s9581_s5 + $0x568] sm:$0xff] }
0x1079   :  { %v2914_v60 = vld [vmem:[%s9581_s5 + $0x580] sm:$0xff] }
0x10a4   :  { %2587 = vxpose.xlu0.b32.start [1/2] (short) (narrow) %v2484_v61, 16  ;;  %v2732_v61 = vld [vmem:[%s9581_s5 + $0x4c0] sm:$0xff] }
0x10a8   :  { %2588 = vxpose.xlu0.b32.end [2/2] (short) (narrow) %v2485_v0, 16  ;;  %v2733_v0 = vld [vmem:[%s9581_s5 + $0x4c8] sm:$0xff] }
0x1103   :  { %v2501_v5 = vpop.xlane.xlu1 %2500 }
0x1104   :  { %7130 = vrcp.f32 %v2501_v5  ;;  %v2498_v14 = vpop.xlane.xlu0 %2497  ;;  %v6613_v5 = vpack.c.bf16 %v2733_v0, %v2732_v61  ;;  %v2916_v0 = vld [vmem:[%s9581_s5 + $0x590] sm:$0xff] }
0x1105   :  { %7132 = vrcp.f32 %v2498_v14  ;;  %v2734_v14 = vld [vmem:[%s9581_s5 + $0x4d0] sm:$0xff] }
0x110e   :  { %v7131_v23 = vpop.eup %7130 }
0x110f   :  { %v7133_v21 = vpop.eup %7132  ;;  %v2505_v13 = vmul.f32 %v7131_v23, %v7125_v15  ;;  %v2726_v15 = vld [vmem:[%s9581_s5 + $0x490] sm:$0xff]  ;;  %v2735_v23 = vld [vmem:[%s9581_s5 + $0x4d8] sm:$0xff] }
0x1110   :  { %v2503_v10 = vmul.f32 %v7133_v21, %v7127_v44  ;;  %v2903_v44 = vld [vmem:[%s9581_s5 + $0x528] sm:$0xff]  ;;  %v6604_v32 = vpack.c.bf16 %v2727_v28, %v2726_v15  ;;  %v6616_v21 = vpack.c.bf16 %v2735_v23, %v2734_v14  ;;  %v2909_v28 = vld [vmem:[%s9581_s5 + $0x558] sm:$0xff]  ;;  %v2918_v23 = vld [vmem:[%s9581_s5 + $0x5a0] sm:$0xff] }
0x1111   :  { %v6631_v46 = vpack.c.bf16 %v2903_v44, %v2902_v36  ;;  %v2906_v36 = vld [vmem:[%s9581_s5 + $0x540] sm:$0xff]  ;;  %v2908_v44 = vld [vmem:[%s9581_s5 + $0x550] sm:$0xff] }
0x1112   :  { %6101 = vmatprep.mubr.msk.f32.mxu1 %vm822_vm8, %v2503_v10  ;;  %v2736_v10 = vld [vmem:[%s9581_s5 + $0x4e0] sm:$0xff] }
0x1113   :  { %6102 = vmatmul.mubr.msk.f32.vlgmr.msra.gmra.mrb[26].mxu1 %vm822_vm8, %v2505_v13  ;;  %v2737_v13 = vld [vmem:[%s9581_s5 + $0x4e8] sm:$0xff] }
0x1114   :  { %6596 = vmatpush1.bf16.msra.mxu1 %v6595_v17  ;;  %v2741_v17 = vld [vmem:[%s9581_s5 + $0x508] sm:$0xff] }
0x1115   :  { %6597 = vmatprep.subr.bf16.mxu1 %v7264_v45  ;;  %v6625_v25 = vpack.c.bf16 %v2741_v17, %v2740_v54 }
0x1118   :  { %6599 = vmatpush1.bf16.msra.mxu1 %v6598_v22  ;;  %v2742_v22 = vld [vmem:[%s9581_s5 + $0x510] sm:$0xff] }
0x1119   :  { %6600 = vmatprep.subr.bf16.mxu1 %v7264_v45  ;;  %v6628_v30 = vpack.c.bf16 %v2743_v58, %v2742_v22  ;;  %v2924_v22 = vld [vmem:[%s9581_s5 + $0x5d0] sm:$0xff]  ;;  %v2925_v58 = vld [vmem:[%s9581_s5 + $0x5d8] sm:$0xff] }
0x111c   :  { %6602 = vmatpush1.bf16.msra.mxu1 %v6601_v38  ;;  %v2907_v38 = vld [vmem:[%s9581_s5 + $0x548] sm:$0xff] }
0x111d   :  { %6603 = vmatprep.subr.bf16.mxu1 %v7264_v45  ;;  %v6637_v15 = vpack.c.bf16 %v2907_v38, %v2906_v36  ;;  %v6664_v36 = vpack.c.bf16 %v2925_v58, %v2924_v22  ;;  %v3097_v22 = vld [vmem:[%s9581_s5 + $0x648] sm:$0xff] }
0x1120   :  { %6605 = vmatpush1.bf16.msra.mxu1 %v6604_v32  ;;  %v2912_v32 = vld [vmem:[%s9581_s5 + $0x570] sm:$0xff] }
0x1121   :  { %6606 = vmatprep.subr.bf16.mxu1 %v7264_v45 }
0x1124   :  { %v2603_v55 = vpop.trf.xlu0  ;;  %6608 = vmatpush1.bf16.msra.mxu1 %v6607_v48  ;;  %v6646_v48 = vpack.c.bf16 %v2913_v56, %v2912_v32  ;;  %v3085_v32 = vld [vmem:[%s9581_s5 + $0x5e8] sm:$0xff] }
0x1125   :  { %6108 = vmatprep.mubr.msk.f32.mxu0 %vm822_vm8, %v2603_v55  ;;  %6609 = vmatprep.subr.bf16.mxu1 %v7264_v45  ;;  %v6619_v55 = vpack.c.bf16 %v2737_v13, %v2736_v10  ;;  %v2920_v13 = vld [vmem:[%s9581_s5 + $0x5b0] sm:$0xff] }
0x1128   :  { %v2604_v57 = vpop.trf.xlu0  ;;  %6611 = vmatpush1.bf16.msra.mxu1 %v6610_v16  ;;  %v2915_v16 = vld [vmem:[%s9581_s5 + $0x588] sm:$0xff] }
0x1129   :  { %6109 = vmatmul.mubr.msk.f32.vlgmr.msra.gmra.mrb[26].mxu0 %vm822_vm8, %v2604_v57  ;;  %6612 = vmatprep.subr.bf16.mxu1 %v7264_v45  ;;  %v2738_v57 = vld [vmem:[%s9581_s5 + $0x4f0] sm:$0xff]  ;;  %v6649_v61 = vpack.c.bf16 %v2915_v16, %v2914_v60 }
0x112a   :  { %6632 = vmatpush1.bf16.msra.mxu0 %v6631_v46  ;;  %v6622_v29 = vpack.c.bf16 %v2739_v39, %v2738_v57  ;;  %v6640_v46 = vpack.c.bf16 %v2909_v28, %v2908_v44  ;;  %v2922_v39 = vld [vmem:[%s9581_s5 + $0x5c0] sm:$0xff] }
0x112b   :  { %6633 = vmatprep.subr.bf16.mxu0 %v7264_v45 }
0x112c   :  { %6614 = vmatpush1.bf16.msra.mxu1 %v6613_v5  ;;  %v2917_v5 = vld [vmem:[%s9581_s5 + $0x598] sm:$0xff] }
0x112d   :  { %6615 = vmatprep.subr.bf16.mxu1 %v7264_v45  ;;  %v6652_v14 = vpack.c.bf16 %v2917_v5, %v2916_v0  ;;  %v3088_v0 = vld [vmem:[%s9581_s5 + $0x600] sm:$0xff]  ;;  %v3089_v5 = vld [vmem:[%s9581_s5 + $0x608] sm:$0xff] }
0x112e   :  { %6635 = vmatpush1.bf16.msra.mxu0 %v6634_v47  ;;  %v6643_v47 = vpack.c.bf16 %v2911_v43, %v2910_v33 }
0x112f   :  { %6636 = vmatprep.subr.bf16.mxu0 %v7264_v45 }
0x1130   :  { %6617 = vmatpush1.bf16.msra.mxu1 %v6616_v21  ;;  %v2919_v21 = vld [vmem:[%s9581_s5 + $0x5a8] sm:$0xff] }
0x1131   :  { %6618 = vmatprep.subr.bf16.mxu1 %v7264_v45  ;;  %v6655_v10 = vpack.c.bf16 %v2919_v21, %v2918_v23  ;;  %v6673_v23 = vpack.c.bf16 %v3089_v5, %v3088_v0  ;;  %v3090_v21 = vld [vmem:[%s9581_s5 + $0x610] sm:$0xff] }
0x1132   :  { %6638 = vmatpush1.bf16.msra.mxu0 %v6637_v15 }
0x1133   :  { %6639 = vmatprep.subr.bf16.mxu0 %v7264_v45 }
0x1134   :  { %6620 = vmatpush1.bf16.msra.mxu1 %v6619_v55  ;;  %v2921_v55 = vld [vmem:[%s9581_s5 + $0x5b8] sm:$0xff] }
0x1135   :  { %6621 = vmatprep.subr.bf16.mxu1 %v7264_v45  ;;  %v6658_v57 = vpack.c.bf16 %v2921_v55, %v2920_v13  ;;  %v3092_v55 = vld [vmem:[%s9581_s5 + $0x620] sm:$0xff] }
0x1136   :  { %6641 = vmatpush1.bf16.msra.mxu0 %v6640_v46 }
0x1137   :  { %6642 = vmatprep.subr.bf16.mxu0 %v7264_v45 }
0x1138   :  { %6623 = vmatpush1.bf16.msra.mxu1 %v6622_v29  ;;  %v2923_v29 = vld [vmem:[%s9581_s5 + $0x5c8] sm:$0xff] }
0x1139   :  { %6624 = vmatprep.subr.bf16.mxu1 %v7264_v45  ;;  %v6661_v54 = vpack.c.bf16 %v2923_v29, %v2922_v39  ;;  %v3094_v29 = vld [vmem:[%s9581_s5 + $0x630] sm:$0xff] }
0x113a   :  { %6644 = vmatpush1.bf16.msra.mxu0 %v6643_v47  ;;  %v3084_v47 = vld [vmem:[%s9581_s5 + $0x5e0] sm:$0xff] }
0x113b   :  { %6645 = vmatprep.subr.bf16.mxu0 %v7264_v45  ;;  %v6667_v56 = vpack.c.bf16 %v3085_v32, %v3084_v47 }
0x113c   :  { %6626 = vmatpush1.bf16.msra.mxu1 %v6625_v25 }
0x113d   :  { %6627 = vmatprep.subr.bf16.mxu1 %v7264_v45 }
0x113e   :  { %6647 = vmatpush1.bf16.msra.mxu0 %v6646_v48  ;;  %v3086_v48 = vld [vmem:[%s9581_s5 + $0x5f0] sm:$0xff] }
0x113f   :  { %6648 = vmatprep.subr.bf16.mxu0 %v7264_v45 }
0x1140   :  { %6629 = vmatpush1.bf16.msra.mxu1 %v6628_v30 }
0x1141   :  { %6666 = vmatprep.subr.bf16.mxu1 %v7264_v45 }
0x1142   :  { %6650 = vmatpush1.bf16.msra.mxu0 %v6649_v61 }
0x1143   :  { %6651 = vmatprep.subr.bf16.mxu0 %v7264_v45 }
0x1146   :  { %6653 = vmatpush1.bf16.msra.mxu0 %v6652_v14 }
0x1147   :  { %6654 = vmatprep.subr.bf16.mxu0 %v7264_v45 }
0x114a   :  { %6656 = vmatpush1.bf16.msra.mxu0 %v6655_v10  ;;  %v3091_v10 = vld [vmem:[%s9581_s5 + $0x618] sm:$0xff] }
0x114b   :  { %6657 = vmatprep.subr.bf16.mxu0 %v7264_v45  ;;  %v6676_v13 = vpack.c.bf16 %v3091_v10, %v3090_v21 }
0x114e   :  { %6659 = vmatpush1.bf16.msra.mxu0 %v6658_v57  ;;  %v3093_v57 = vld [vmem:[%s9581_s5 + $0x628] sm:$0xff] }
0x114f   :  { %6660 = vmatprep.subr.bf16.mxu0 %v7264_v45  ;;  %v6679_v39 = vpack.c.bf16 %v3093_v57, %v3092_v55 }
0x1152   :  { %6662 = vmatpush1.bf16.msra.mxu0 %v6661_v54  ;;  %v3095_v54 = vld [vmem:[%s9581_s5 + $0x638] sm:$0xff] }
0x1153   :  { %6663 = vmatprep.subr.bf16.mxu0 %v7264_v45 }
0x1156   :  { %6665 = vmatpush1.bf16.msra.mxu0 %v6664_v36 }
0x11e6   :  { %v6103_v59 = vpop.f32.mrb[26].mxu1 }
0x11e7   :  { %v2578_v12 = vpop.f32.mrb[27].mxu1  ;;  %v2879_v38 = vsub.f32 %v8260_v1, %v6103_v59  ;;  %v3061_v15 = vmul.f32 %v6103_v59, %v8260_v1 }
0x11e8   :  { %2704 = vrot.lane.b32.xlu1 %v2578_v12, %s7265_s9  ;;  %v2878_v44 = vsub.f32 %v8256_v24, %v2578_v12  ;;  %v3060_v28 = vmul.f32 %v2578_v12, %v8256_v24  ;;  %v3087_v12 = vld [vmem:[%s9581_s5 + $0x5f8] sm:$0xff] }
0x11e9   :  { %v6670_v16 = vpack.c.bf16 %v3087_v12, %v3086_v48 }
0x11ec   :  { %2706 = vrot.lane.b32.xlu1 %v6103_v59, %s7265_s9 }
0x11fc   :  { %v6110_v17 = vpop.f32.mrb[26].mxu0 }
0x11fd   :  { %v2691_v25 = vpop.f32.mrb[27].mxu0  ;;  %v2881_v33 = vsub.f32 %v8268_v18, %v6110_v17  ;;  %v3063_v43 = vmul.f32 %v6110_v17, %v8268_v18 }
0x11fe   :  { %v3062_v30 = vmul.f32 %v2691_v25, %v8272_v31  ;;  %2708 = vrot.lane.b32.xlu1 %v2691_v25, %s7265_s9  ;;  %v2880_v46 = vsub.f32 %v8272_v31, %v2691_v25  ;;  %v3096_v25 = vld [vmem:[%s9581_s5 + $0x640] sm:$0xff] }
0x11ff   :  { %v6685_v36 = vpack.c.bf16 %v3097_v22, %v3096_v25 }
0x1200   :  { %3072 = vrot.lane.b32.xlu0 %v3062_v30, %s7265_s9 }
0x1202   :  { %2710 = vrot.lane.b32.xlu1 %v6110_v17, %s7265_s9  ;;  %v6682_v17 = vpack.c.bf16 %v3095_v54, %v3094_v29 }
0x1206   :  { %2888 = vrot.lane.b32.xlu1 %v2879_v38, %s7265_s9  ;;  %v3098_v38 = vld [vmem:[%s9581_s5 + $0x650] sm:$0xff] }
0x120a   :  { %3070 = vrot.lane.b32.xlu1 %v3061_v15, %s7265_s9  ;;  %v3099_v15 = vld [vmem:[%s9581_s5 + $0x658] sm:$0xff] }
0x120e   :  { %2886 = vrot.lane.b32.xlu1 %v2878_v44, %s7265_s9 }
0x1212   :  { %3068 = vrot.lane.b32.xlu1 %v3060_v28, %s7265_s9 }
0x1216   :  { %2890 = vrot.lane.b32.xlu1 %v2880_v46, %s7265_s9  ;;  %v6688_v46 = vpack.c.bf16 %v3099_v15, %v3098_v38 }
0x121a   :  { %2892 = vrot.lane.b32.xlu1 %v2881_v33, %s7265_s9  ;;  %v3100_v33 = vld [vmem:[%s9581_s5 + $0x660] sm:$0xff] }
0x121e   :  { %3074 = vrot.lane.b32.xlu1 %v3063_v43, %s7265_s9  ;;  %v3101_v43 = vld [vmem:[%s9581_s5 + $0x668] sm:$0xff] }
0x121f   :  { %v6691_v32 = vpack.c.bf16 %v3101_v43, %v3100_v33  ;;  %v5447_v43 = vld [vmem:[%s9582_s6 + $0xb] ss:$0 sm:$0xff] }
0x125a   :  { %v2705_v59 = vpop.permute.xlu1 %2704 }
0x125b   :  { %v2716_v60 = vsel %vm209_vm4, %v8256_v24, %v2705_v59  ;;  %5443 = vmatprep.mubr.msk.f32.mxu1 %vm187_vm3, %v2705_v59  ;;  %v3103_v59 = vld [vmem:[%s9581_s5 + $0x678] sm:$0xff] }
0x125c   :  { %2822 = vmatmul.mubr.f32.vlgmr.msra.gmra.mrb[28].mxu1 %v2716_v60  ;;  %v3104_v60 = vld [vmem:[%s9581_s5 + $0x680] sm:$0xff] }
0x125d   :  { %6668 = vmatpush1.bf16.msra.mxu1 %v6667_v56  ;;  %v3102_v56 = vld [vmem:[%s9581_s5 + $0x670] sm:$0xff] }
0x125e   :  { %v2707_v61 = vpop.permute.xlu1 %2706  ;;  %6669 = vmatprep.subr.bf16.mxu1 %v7264_v45  ;;  %v6694_v12 = vpack.c.bf16 %v3103_v59, %v3102_v56 }
0x125f   :  { %5444 = vmatprep.mubr.msk.f32.mxu1 %vm187_vm3, %v2707_v61  ;;  %v2717_v14 = vsel %vm209_vm4, %v8260_v1, %v2707_v61 }
0x1260   :  { %2827 = vmatmul.mubr.f32.gmra.mrb[30].mxu1 %v2717_v14  ;;  %v3106_v14 = vld [vmem:[%s9581_s5 + $0x690] sm:$0xff] }
0x1261   :  { %6671 = vmatpush1.bf16.msra.mxu1 %v6670_v16  ;;  %v3105_v16 = vld [vmem:[%s9581_s5 + $0x688] sm:$0xff] }
0x1262   :  { %6672 = vmatprep.subr.bf16.mxu1 %v7264_v45  ;;  %v6697_v5 = vpack.c.bf16 %v3105_v16, %v3104_v60 }
0x1265   :  { %6674 = vmatpush1.bf16.msra.mxu1 %v6673_v23  ;;  %v3107_v23 = vld [vmem:[%s9581_s5 + $0x698] sm:$0xff] }
0x1266   :  { %6675 = vmatprep.subr.bf16.mxu1 %v7264_v45 }
0x1269   :  { %6677 = vmatpush1.bf16.msra.mxu1 %v6676_v13  ;;  %v6700_v13 = vpack.c.bf16 %v3107_v23, %v3106_v14  ;;  %v5452_v23 = vld [vmem:[%s9582_s6 + $0xc] ss:$0 sm:$0xff] }
0x126a   :  { %6678 = vmatprep.subr.bf16.mxu1 %v7264_v45 }
0x126d   :  { %6680 = vmatpush1.bf16.msra.mxu1 %v6679_v39 }
0x126e   :  { %6681 = vmatprep.subr.bf16.mxu1 %v7264_v45 }
0x1270   :  { %v2709_v58 = vpop.permute.xlu1 %2708 }
0x1271   :  { %6683 = vmatpush1.bf16.msra.mxu1 %v6682_v17  ;;  %5445 = vmatprep.mubr.msk.f32.mxu1 %vm187_vm3, %v2709_v58  ;;  %v2718_v30 = vsel %vm209_vm4, %v8272_v31, %v2709_v58 }
0x1272   :  { %2832 = vmatmul.mubr.f32.gmra.mrb[32].mxu1 %v2718_v30  ;;  %6684 = vmatprep.subr.bf16.mxu1 %v7264_v45  ;;  %v3073_v25 = vpop.permute.xlu0 %3072  ;;  %v3282_v30 = vld [vmem:[%s9581_s5 + $0x6a0] sm:$0xff] }
0x1274   :  { %v2711_v44 = vpop.permute.xlu1 %2710 }
0x1275   :  { %6686 = vmatpush1.bf16.msra.mxu1 %v6685_v36  ;;  %5446 = vmatprep.mubr.msk.f32.mxu1 %vm187_vm3, %v2711_v44  ;;  %v2719_v28 = vsel %vm209_vm4, %v8268_v18, %v2711_v44 }
0x1276   :  { %2837 = vmatmul.mubr.f32.gmra.mrb[34].mxu1 %v2719_v28  ;;  %6687 = vmatprep.subr.bf16.mxu1 %v7264_v45 }
0x1278   :  { %v2889_v47 = vpop.permute.xlu1 %2888 }
0x1279   :  { %6689 = vmatpush1.bf16.msra.mxu1 %v6688_v46  ;;  %v2899_v10 = vsel %vm209_vm4, %v8260_v1, %v2889_v47 }
0x127a   :  { %6690 = vmatprep.subr.bf16.mxu1 %v7264_v45 }
0x127c   :  { %v3071_v48 = vpop.permute.xlu1 %3070 }
0x127d   :  { %6692 = vmatpush1.bf16.msra.mxu1 %v6691_v32  ;;  %v3081_v17 = vsel %vm209_vm4, %v8260_v1, %v3071_v48  ;;  %v3283_v1 = vld [vmem:[%s9581_s5 + $0x6a8] sm:$0xff] }
0x127e   :  { %6693 = vmatprep.subr.bf16.mxu1 %v7264_v45  ;;  %v6702_v36 = vpack.c.bf16 %v3283_v1, %v3282_v30 }
0x1280   :  { %v2887_v61 = vpop.permute.xlu1 %2886  ;;  %6703 = vmatprep.subr.bf16.mxu0 %v6702_v36 }
0x1281   :  { %6695 = vmatpush1.bf16.msra.mxu1 %v6694_v12  ;;  %v2898_v0 = vsel %vm209_vm4, %v8256_v24, %v2887_v61  ;;  %5448 = vmatprep.mubr.msk.f32.mxu0 %vm187_vm3, %v2887_v61 }
0x1282   :  { %3004 = vmatmul.mubr.f32.vlgmr.msra.gmra.mrb[28].mxu0 %v2898_v0  ;;  %6696 = vmatprep.subr.bf16.mxu1 %v7264_v45 }
0x1283   :  { %5449 = vmatprep.mubr.msk.f32.mxu0 %vm187_vm3, %v2889_v47  ;;  %6705 = vmatpush3.bf16.msra.mxu0 %v6702_v36 }
0x1284   :  { %v3069_v21 = vpop.permute.xlu1 %3068 }
0x1285   :  { %6698 = vmatpush1.bf16.msra.mxu1 %v6697_v5  ;;  %5453 = vmatprep.mubr.msk.f32.mxu1 %vm187_vm3, %v3069_v21  ;;  %v3080_v39 = vsel %vm209_vm4, %v8256_v24, %v3069_v21  ;;  %v3082_v24 = vsel %vm209_vm4, %v8272_v31, %v3073_v25 }
0x1286   :  { %3009 = vmatmul.mubr.f32.gmra.mrb[30].mxu0 %v2899_v10  ;;  %6699 = vmatprep.subr.bf16.mxu1 %v7264_v45 }
0x1288   :  { %v2891_v55 = vpop.permute.xlu1 %2890 }
0x1289   :  { %6701 = vmatpush1.bf16.msra.mxu1 %v6700_v13  ;;  %5450 = vmatprep.mubr.msk.f32.mxu0 %vm187_vm3, %v2891_v55  ;;  %v2900_v57 = vsel %vm209_vm4, %v8272_v31, %v2891_v55 }
0x128a   :  { %3014 = vmatmul.mubr.f32.gmra.mrb[32].mxu0 %v2900_v57 }
0x128c   :  { %3186 = vmatmul.mubr.f32.vlgmr.msra.gmra.mrb[36].mxu1 %v3080_v39  ;;  %v2893_v29 = vpop.permute.xlu1 %2892 }
0x128d   :  { %5454 = vmatprep.mubr.msk.f32.mxu1 %vm187_vm3, %v3071_v48  ;;  %5451 = vmatprep.mubr.msk.f32.mxu0 %vm187_vm3, %v2893_v29  ;;  %v2901_v54 = vsel %vm209_vm4, %v8268_v18, %v2893_v29 }
0x128e   :  { %3019 = vmatmul.mubr.f32.gmra.mrb[34].mxu0 %v2901_v54 }
0x1290   :  { %3191 = vmatmul.mubr.f32.gmra.mrb[38].mxu1 %v3081_v17  ;;  %v3075_v22 = vpop.permute.xlu1 %3074 }
0x1291   :  { %5455 = vmatprep.mubr.msk.f32.mxu1 %vm187_vm3, %v3073_v25  ;;  %v3083_v58 = vsel %vm209_vm4, %v8268_v18, %v3075_v22 }
0x1294   :  { %3196 = vmatmul.mubr.f32.gmra.mrb[40].mxu1 %v3082_v24 }
0x1295   :  { %5456 = vmatprep.mubr.msk.f32.mxu1 %vm187_vm3, %v3075_v22 }
0x1298   :  { %3201 = vmatmul.mubr.f32.gmra.mrb[42].mxu1 %v3083_v58 }
0x132f   :  { %v8619_v31 = vpop.f32.mrb[28].mxu1 }
0x1330   :  { %v2825_v38 = vpop.f32.mrb[29].mxu1 }
0x1333   :  { %v8621_v15 = vpop.f32.mrb[30].mxu1 }
0x1334   :  { %v2830_v44 = vpop.f32.mrb[31].mxu1 }
0x1335   :  { %v3284_v44 = vld [vmem:[%s9581_s5 + $0x6b0] sm:$0xff] }
0x1345   :  { %v8623_v28 = vpop.f32.mrb[32].mxu1 }
0x1346   :  { %v2835_v18 = vpop.f32.mrb[33].mxu1 }
0x1347   :  { %v3285_v18 = vld [vmem:[%s9581_s5 + $0x6b8] sm:$0xff] }
0x1349   :  { %v8625_v46 = vpop.f32.mrb[34].mxu1 }
0x134a   :  { %v2840_v33 = vpop.f32.mrb[35].mxu1 }
0x1355   :  { %v3005_v47 = vpop.f32.mrb[28].mxu0 }
0x1356   :  { %v3006_v32 = vadd.f32 %v5447_v43, %v3005_v47  ;;  %v3007_v56 = vpop.f32.mrb[29].mxu0 }
0x1358   :  { %v3032_v59 = vmul.f32 0.044715, %v3006_v32  ;;  %v3028_v61 = vmul.f32 0.7978846, %v3006_v32 }
0x1359   :  { %v3010_v48 = vpop.f32.mrb[30].mxu0 }
0x135a   :  { %v3036_v12 = vmul.f32 %v3032_v59, %v3006_v32  ;;  %v8630_v60 = vadd.f32 %v5447_v43, %v3010_v48  ;;  %v3012_v16 = vpop.f32.mrb[31].mxu0 }
0x135c   :  { %v3040_v0 = vadd.f32 1.0, %v3036_v12  ;;  %v3033_v5 = vmul.f32 0.044715, %v8630_v60  ;;  %v3029_v25 = vmul.f32 0.7978846, %v8630_v60  ;;  %v6706_v12 = vpack.c.bf16 %v3285_v18, %v3284_v44 }
0x135d   :  { %v3015_v14 = vpop.f32.mrb[32].mxu0 }
0x135e   :  { %v3037_v21 = vmul.f32 %v3033_v5, %v8630_v60  ;;  %v8637_v10 = vadd.f32 %v5447_v43, %v3015_v14  ;;  %v3017_v13 = vpop.f32.mrb[33].mxu0  ;;  %v3044_v55 = vmul.f32 %v3040_v0, %v3028_v61  ;;  %6707 = vmatprep.subr.bf16.mxu0 %v6706_v12 }
0x135f   :  { %v3187_v57 = vpop.f32.mrb[36].mxu1  ;;  %6709 = vmatpush3.bf16.msra.mxu0 %v6706_v12 }
0x1360   :  { %v3041_v39 = vadd.f32 1.0, %v3037_v21  ;;  %v3034_v29 = vmul.f32 0.044715, %v8637_v10  ;;  %v8640_v54 = vadd.f32 %v5452_v23, %v3187_v57  ;;  %v3189_v17 = vpop.f32.mrb[37].mxu1  ;;  %7134 = vtanh.f32 %v3044_v55 }
0x1361   :  { %v3020_v24 = vpop.f32.mrb[34].mxu0  ;;  %v3030_v33 = vmul.f32 0.7978846, %v8637_v10  ;;  %v3287_v17 = vld [vmem:[%s9581_s5 + $0x6c8] sm:$0xff] }
0x1362   :  { %v3038_v22 = vmul.f32 %v3034_v29, %v8637_v10  ;;  %v3214_v58 = vmul.f32 0.044715, %v8640_v54  ;;  %v8645_v30 = vadd.f32 %v5447_v43, %v3020_v24  ;;  %v3022_v1 = vpop.f32.mrb[35].mxu0  ;;  %v3045_v38 = vmul.f32 %v3041_v39, %v3029_v25  ;;  %v3286_v29 = vld [vmem:[%s9581_s5 + $0x6c0] sm:$0xff] }
0x1363   :  { %v3192_v36 = vpop.f32.mrb[38].mxu1  ;;  %v3210_v5 = vmul.f32 0.7978846, %v8640_v54  ;;  %v3024_v1 = vmul.f32 0.5, %v3006_v32 }
0x1364   :  { %v3042_v47 = vadd.f32 1.0, %v3038_v22  ;;  %v3218_v56 = vmul.f32 %v3214_v58, %v8640_v54  ;;  %v3035_v59 = vmul.f32 0.044715, %v8645_v30  ;;  %v3194_v43 = vpop.f32.mrb[39].mxu1  ;;  %v8656_v48 = vadd.f32 %v5452_v23, %v3192_v36 }
0x1365   :  { %7136 = vtanh.f32 %v3045_v38  ;;  %v3031_v13 = vmul.f32 0.7978846, %v8645_v30  ;;  %v6710_v22 = vpack.c.bf16 %v3287_v17, %v3286_v29  ;;  %v3025_v29 = vmul.f32 0.5, %v8630_v60  ;;  %v3293_v60 = vld [vmem:[%s9581_s5 + $0x6f8] sm:$0xff] }
0x1366   :  { %v3222_v16 = vadd.f32 1.0, %v3218_v56  ;;  %v3039_v61 = vmul.f32 %v3035_v59, %v8645_v30  ;;  %v3046_v0 = vmul.f32 %v3042_v47, %v3030_v33  ;;  %v3215_v14 = vmul.f32 0.044715, %v8656_v48  ;;  %v3288_v47 = vld [vmem:[%s9581_s5 + $0x6d0] sm:$0xff]  ;;  %v3289_v56 = vld [vmem:[%s9581_s5 + $0x6d8] sm:$0xff] }
0x1367   :  { %v3197_v21 = vpop.f32.mrb[40].mxu1  ;;  %v3211_v44 = vmul.f32 0.7978846, %v8656_v48  ;;  %6711 = vmatprep.subr.bf16.mxu0 %v6710_v22 }
0x1368   :  { %v3043_v55 = vadd.f32 1.0, %v3039_v61  ;;  %v8662_v57 = vadd.f32 %v5452_v23, %v3197_v21  ;;  %v3199_v39 = vpop.f32.mrb[41].mxu1  ;;  %7138 = vtanh.f32 %v3046_v0  ;;  %v3219_v25 = vmul.f32 %v3215_v14, %v8656_v48  ;;  %6713 = vmatpush3.bf16.msra.mxu0 %v6710_v22 }
0x1369   :  { %v3226_v24 = vmul.f32 %v3222_v16, %v3210_v5  ;;  %v6714_v61 = vpack.c.bf16 %v3289_v56, %v3288_v47 }
0x136a   :  { %v3216_v58 = vmul.f32 0.044715, %v8662_v57  ;;  %v3047_v36 = vmul.f32 %v3043_v55, %v3031_v13  ;;  %v7135_v38 = vpop.eup %7134  ;;  %v3223_v18 = vadd.f32 1.0, %v3219_v25  ;;  %v3212_v13 = vmul.f32 0.7978846, %v8662_v57  ;;  %v3291_v55 = vld [vmem:[%s9581_s5 + $0x6e8] sm:$0xff] }
0x136b   :  { %v3202_v33 = vpop.f32.mrb[42].mxu1  ;;  %v3052_v12 = vadd.f32 1.0, %v7135_v38  ;;  %6715 = vmatprep.subr.bf16.mxu0 %v6714_v61  ;;  %v3026_v38 = vmul.f32 0.5, %v8637_v10  ;;  %v3027_v10 = vmul.f32 0.5, %v8645_v30  ;;  %v3207_v30 = vmul.f32 0.5, %v8656_v48 }
0x136c   :  { %v3220_v59 = vmul.f32 %v3216_v58, %v8662_v57  ;;  %v8680_v43 = vadd.f32 %v5452_v23, %v3202_v33  ;;  %v3204_v32 = vpop.f32.mrb[43].mxu1  ;;  %7140 = vtanh.f32 %v3047_v36  ;;  %v3227_v16 = vmul.f32 %v3223_v18, %v3211_v44  ;;  %v3290_v23 = vld [vmem:[%s9581_s5 + $0x6e0] sm:$0xff]  ;;  %6717 = vmatpush3.bf16.msra.mxu0 %v6714_v61  ;;  %v3292_v18 = vld [vmem:[%s9581_s5 + $0x6f0] sm:$0xff]  ;;  %v5442_v48 = vld [vmem:[%s9582_s6 + $0xa] ss:$0 sm:$0xff] }
0x136d   :  { %7142 = vtanh.f32 %v3226_v24  ;;  %v3056_v14 = vmul.f32 %v3052_v12, %v3024_v1  ;;  %v6718_v25 = vpack.c.bf16 %v3291_v55, %v3290_v23  ;;  %v6722_v33 = vpack.c.bf16 %v3293_v60, %v3292_v18 }
0x136e   :  { %v3224_v0 = vadd.f32 1.0, %v3220_v59  ;;  %v3217_v5 = vmul.f32 0.044715, %v8680_v43  ;;  %7144 = vtanh.f32 %v3227_v16  ;;  %v3213_v36 = vmul.f32 0.7978846, %v8680_v43 }
0x136f   :  { %v7137_v21 = vpop.eup %7136  ;;  %3246 = vrot.lane.b32.xlu1 %v3056_v14, %s7262_s12  ;;  %6719 = vmatprep.subr.bf16.mxu0 %v6718_v25 }
0x1370   :  { %v3221_v39 = vmul.f32 %v3217_v5, %v8680_v43  ;;  %v3053_v17 = vadd.f32 1.0, %v7137_v21  ;;  %v3228_v24 = vmul.f32 %v3224_v0, %v3212_v13  ;;  %6721 = vmatpush3.bf16.msra.mxu0 %v6718_v25  ;;  %v3206_v5 = vmul.f32 0.5, %v8640_v54 }
0x1371   :  { %6723 = vmatprep.subr.bf16.mxu0 %v6722_v33  ;;  %v3209_v54 = vmul.f32 0.5, %v8680_v43  ;;  %v2839_v43 = vadd.f32 %v5442_v48, %v8625_v46 }
0x1372   :  { %v7139_v22 = vpop.eup %7138  ;;  %v3225_v58 = vadd.f32 1.0, %v3221_v39  ;;  %v3057_v1 = vmul.f32 %v3053_v17, %v3025_v29  ;;  %7146 = vtanh.f32 %v3228_v24  ;;  %v3208_v29 = vmul.f32 0.5, %v8662_v57 }
0x1373   :  { %v3054_v44 = vadd.f32 1.0, %v7139_v22  ;;  %v2824_v22 = vadd.f32 %v5442_v48, %v8619_v31 }
0x1374   :  { %3248 = vrot.lane.b32.xlu1 %v3057_v1, %s7262_s12  ;;  %v3229_v56 = vmul.f32 %v3225_v58, %v3213_v36  ;;  %6725 = vmatpush3.bf16.msra.mxu0 %v6722_v33  ;;  %v2829_v1 = vadd.f32 %v5442_v48, %v8621_v15 }
0x1375   :  { %v3058_v47 = vmul.f32 %v3054_v44, %v3026_v38  ;;  %6726 = vmatprep.subr.bf16.mxu0 %v7264_v45  ;;  %v2850_v58 = vmul.f32 0.044715, %v2824_v22  ;;  %v2834_v38 = vadd.f32 %v5442_v48, %v8623_v28  ;;  %v2846_v33 = vmul.f32 0.7978846, %v2824_v22 }
0x1376   :  { %v7141_v59 = vpop.eup %7140  ;;  %7148 = vtanh.f32 %v3229_v56  ;;  %v2851_v57 = vmul.f32 0.044715, %v2829_v1  ;;  %v2849_v28 = vmul.f32 0.7978846, %v2839_v43 }
0x1377   :  { %v7143_v32 = vpop.eup %7142  ;;  %v3055_v12 = vadd.f32 1.0, %v7141_v59  ;;  %v2854_v36 = vmul.f32 %v2850_v58, %v2824_v22  ;;  %v2852_v60 = vmul.f32 0.044715, %v2834_v38  ;;  %v2848_v15 = vmul.f32 0.7978846, %v2834_v38 }
0x1378   :  { %3250 = vrot.lane.b32.xlu1 %v3058_v47, %s7262_s12  ;;  %v3234_v61 = vadd.f32 1.0, %v7143_v32  ;;  %v7145_v0 = vpop.eup %7144  ;;  %v2855_v18 = vmul.f32 %v2851_v57, %v2829_v1  ;;  %v2853_v32 = vmul.f32 0.044715, %v2839_v43 }
0x1379   :  { %v3059_v16 = vmul.f32 %v3055_v12, %v3027_v10  ;;  %v3235_v21 = vadd.f32 1.0, %v7145_v0  ;;  %v2858_v44 = vadd.f32 1.0, %v2854_v36  ;;  %v2856_v59 = vmul.f32 %v2852_v60, %v2834_v38 }
0x137a   :  { %v3238_v14 = vmul.f32 %v3234_v61, %v3206_v5  ;;  %v2859_v56 = vadd.f32 1.0, %v2855_v18  ;;  %v2847_v10 = vmul.f32 0.7978846, %v2829_v1  ;;  %v2844_v60 = vmul.f32 0.5, %v2834_v38 }
0x137b   :  { %v3239_v23 = vmul.f32 %v3235_v21, %v3207_v30  ;;  %v2862_v47 = vmul.f32 %v2858_v44, %v2846_v33  ;;  %v2860_v31 = vadd.f32 1.0, %v2856_v59  ;;  %v2845_v59 = vmul.f32 0.5, %v2839_v43 }
0x137c   :  { %3252 = vrot.lane.b32.xlu1 %v3059_v16, %s7262_s12  ;;  %v7147_v13 = vpop.eup %7146  ;;  %v2863_v12 = vmul.f32 %v2859_v56, %v2847_v10  ;;  %v2857_v16 = vmul.f32 %v2853_v32, %v2839_v43  ;;  %v3493_v43 = vld [vmem:[%s9581_s5 + $0x708] sm:$0xff] }
0x137d   :  { %v3236_v55 = vadd.f32 1.0, %v7147_v13  ;;  %7150 = vtanh.f32 %v2862_v47  ;;  %v2864_v0 = vmul.f32 %v2860_v31, %v2848_v15  ;;  %v3492_v15 = vld [vmem:[%s9581_s5 + $0x700] sm:$0xff] }
0x137e   :  { %v2861_v5 = vadd.f32 1.0, %v2857_v16  ;;  %7152 = vtanh.f32 %v2863_v12 }
0x137f   :  { %v3240_v17 = vmul.f32 %v3236_v55, %v3208_v29  ;;  %7154 = vtanh.f32 %v2864_v0  ;;  %v2842_v55 = vmul.f32 0.5, %v2824_v22  ;;  %v6727_v0 = vpack.c.bf16 %v3493_v43, %v3492_v15 }
0x1380   :  { %3262 = vrot.lane.b32.xlu1 %v3238_v14, %s7263_s3  ;;  %v7149_v39 = vpop.eup %7148  ;;  %v2865_v21 = vmul.f32 %v2861_v5, %v2849_v28  ;;  %v3495_v5 = vld [vmem:[%s9581_s5 + $0x718] sm:$0xff] }
0x1381   :  { %v3237_v25 = vadd.f32 1.0, %v7149_v39 }
0x1382   :  { %7156 = vtanh.f32 %v2865_v21  ;;  %v3497_v21 = vld [vmem:[%s9581_s5 + $0x728] sm:$0xff] }
0x1383   :  { %v3241_v24 = vmul.f32 %v3237_v25, %v3209_v54 }
0x1384   :  { %3264 = vrot.lane.b32.xlu1 %v3239_v23, %s7263_s3 }
0x1387   :  { %v7151_v46 = vpop.eup %7150 }
0x1388   :  { %3266 = vrot.lane.b32.xlu1 %v3240_v17, %s7263_s3  ;;  %v2870_v30 = vadd.f32 1.0, %v7151_v46  ;;  %v7153_v23 = vpop.eup %7152 }
0x1389   :  { %v2871_v17 = vadd.f32 1.0, %v7153_v23  ;;  %v7155_v25 = vpop.eup %7154 }
0x138a   :  { %v2874_v29 = vmul.f32 %v2870_v30, %v2842_v55  ;;  %v2872_v57 = vadd.f32 1.0, %v7155_v25  ;;  %v3499_v30 = vld [vmem:[%s9581_s5 + $0x738] sm:$0xff]  ;;  %v3500_v55 = vld [vmem:[%s9581_s5 + $0x740] sm:$0xff] }
0x138b   :  { %v3503_v25 = vld [vmem:[%s9581_s5 + $0x758] sm:$0xff] }
0x138c   :  { %3268 = vrot.lane.b32.xlu1 %v3241_v24, %s7263_s3  ;;  %v2843_v24 = vmul.f32 0.5, %v2829_v1  ;;  %v7157_v44 = vpop.eup %7156  ;;  %v2876_v47 = vmul.f32 %v2872_v57, %v2844_v60  ;;  %v3507_v57 = vld [vmem:[%s9581_s5 + $0x778] sm:$0xff]  ;;  %v3509_v60 = vld [vmem:[%s9581_s5 + $0x788] sm:$0xff] }
0x138d   :  { %v2873_v56 = vadd.f32 1.0, %v7157_v44 }
0x138e   :  { %v2875_v36 = vmul.f32 %v2871_v17, %v2843_v24  ;;  %v3502_v17 = vld [vmem:[%s9581_s5 + $0x750] sm:$0xff]  ;;  %v3504_v24 = vld [vmem:[%s9581_s5 + $0x760] sm:$0xff] }
0x138f   :  { %v2877_v12 = vmul.f32 %v2873_v56, %v2845_v59  ;;  %v3513_v59 = vld [vmem:[%s9581_s5 + $0x7a8] sm:$0xff] }
0x13e1   :  { %v3247_v61 = vpop.permute.xlu1 %3246 }
0x13e2   :  { %v3274_v54 = vsel %vm182_vm2, %v2874_v29, %v3247_v61  ;;  %v3494_v61 = vld [vmem:[%s9581_s5 + $0x710] sm:$0xff] }
0x13e3   :  { %v6730_v28 = vpack.c.bf16 %v3495_v5, %v3494_v61 }
0x13e6   :  { %v3249_v14 = vpop.permute.xlu1 %3248 }
0x13e7   :  { %v3275_v18 = vsel %vm182_vm2, %v2875_v36, %v3249_v14  ;;  %v3496_v14 = vld [vmem:[%s9581_s5 + $0x720] sm:$0xff]  ;;  %v3506_v36 = vld [vmem:[%s9581_s5 + $0x770] sm:$0xff] }
0x13e8   :  { %v6733_v46 = vpack.c.bf16 %v3497_v21, %v3496_v14  ;;  %v6748_v44 = vpack.c.bf16 %v3507_v57, %v3506_v36 }
0x13ea   :  { %v3251_v13 = vpop.permute.xlu1 %3250 }
0x13eb   :  { %v3276_v1 = vsel %vm182_vm2, %v2876_v47, %v3251_v13  ;;  %v3498_v13 = vld [vmem:[%s9581_s5 + $0x730] sm:$0xff]  ;;  %v3511_v47 = vld [vmem:[%s9581_s5 + $0x798] sm:$0xff] }
0x13ec   :  { %v6736_v23 = vpack.c.bf16 %v3499_v30, %v3498_v13 }
0x13ee   :  { %v3253_v39 = vpop.permute.xlu1 %3252 }
0x13ef   :  { %v3277_v31 = vsel %vm182_vm2, %v2877_v12, %v3253_v39  ;;  %v3501_v39 = vld [vmem:[%s9581_s5 + $0x748] sm:$0xff]  ;;  %v3515_v12 = vld [vmem:[%s9581_s5 + $0x7b8] sm:$0xff] }
0x13f0   :  { %v6739_v29 = vpack.c.bf16 %v3501_v39, %v3500_v55 }
0x13f2   :  { %v3263_v48 = vpop.permute.xlu1 %3262 }
0x13f3   :  { %v3278_v58 = vsel %vm187_vm3, %v3274_v54, %v3263_v48  ;;  %v6742_v54 = vpack.c.bf16 %v3503_v25, %v3502_v17  ;;  %v3505_v48 = vld [vmem:[%s9581_s5 + $0x768] sm:$0xff] }
0x13f4   :  { %6135 = vmatprep.mubr.msk.f32.mxu0 %vm209_vm4, %v3278_v58  ;;  %v6745_v58 = vpack.c.bf16 %v3505_v48, %v3504_v24 }
0x13f6   :  { %v3265_v33 = vpop.permute.xlu1 %3264 }
0x13f7   :  { %v3279_v22 = vsel %vm187_vm3, %v3275_v18, %v3265_v33  ;;  %v3508_v18 = vld [vmem:[%s9581_s5 + $0x780] sm:$0xff] }
0x13f8   :  { %6136 = vmatmul.mubr.msk.f32.vlgmr.msra.gmra.mrb[36].mxu0 %vm209_vm4, %v3279_v22  ;;  %v6751_v33 = vpack.c.bf16 %v3509_v60, %v3508_v18  ;;  %v3510_v22 = vld [vmem:[%s9581_s5 + $0x790] sm:$0xff] }
0x13f9   :  { %6728 = vmatpush1.bf16.msra.mxu0 %v6727_v0  ;;  %v6754_v56 = vpack.c.bf16 %v3511_v47, %v3510_v22 }
0x13fa   :  { %v3267_v32 = vpop.permute.xlu1 %3266  ;;  %6729 = vmatprep.subr.bf16.mxu0 %v7264_v45 }
0x13fb   :  { %v3280_v10 = vsel %vm187_vm3, %v3276_v1, %v3267_v32  ;;  %v3512_v1 = vld [vmem:[%s9581_s5 + $0x7a0] sm:$0xff] }
0x13fc   :  { %6138 = vmatprep.mubr.msk.f32.mxu0 %vm209_vm4, %v3280_v10  ;;  %v6757_v32 = vpack.c.bf16 %v3513_v59, %v3512_v1  ;;  %v3514_v10 = vld [vmem:[%s9581_s5 + $0x7b0] sm:$0xff] }
0x13fd   :  { %6731 = vmatpush1.bf16.msra.mxu0 %v6730_v28 }
0x13fe   :  { %v3269_v16 = vpop.permute.xlu1 %3268  ;;  %6732 = vmatprep.subr.bf16.mxu0 %v7264_v45 }
0x13ff   :  { %v3281_v38 = vsel %vm187_vm3, %v3277_v31, %v3269_v16  ;;  %v6760_v31 = vpack.c.bf16 %v3515_v12, %v3514_v10  ;;  %v5457_v16 = vld [vmem:[%s9582_s6 + $0xd] ss:$0 sm:$0xff] }
0x1400   :  { %6139 = vmatmul.mubr.msk.f32.gmra.mrb[38].mxu0 %vm209_vm4, %v3281_v38 }
0x1401   :  { %6734 = vmatpush1.bf16.msra.mxu0 %v6733_v46 }
0x1402   :  { %6735 = vmatprep.subr.bf16.mxu0 %v7264_v45 }
0x1405   :  { %6737 = vmatpush1.bf16.msra.mxu0 %v6736_v23 }
0x1406   :  { %6738 = vmatprep.subr.bf16.mxu0 %v7264_v45 }
0x1409   :  { %6740 = vmatpush1.bf16.msra.mxu0 %v6739_v29 }
0x140a   :  { %6741 = vmatprep.subr.bf16.mxu0 %v7264_v45 }
0x140d   :  { %6743 = vmatpush1.bf16.msra.mxu0 %v6742_v54 }
0x140e   :  { %6744 = vmatprep.subr.bf16.mxu0 %v7264_v45 }
0x1411   :  { %6746 = vmatpush1.bf16.msra.mxu0 %v6745_v58 }
0x1412   :  { %6747 = vmatprep.subr.bf16.mxu0 %v7264_v45 }
0x1415   :  { %6749 = vmatpush1.bf16.msra.mxu0 %v6748_v44 }
0x1416   :  { %6750 = vmatprep.subr.bf16.mxu0 %v7264_v45 }
0x1419   :  { %6752 = vmatpush1.bf16.msra.mxu0 %v6751_v33 }
0x141a   :  { %6753 = vmatprep.subr.bf16.mxu0 %v7264_v45 }
0x141d   :  { %6755 = vmatpush1.bf16.msra.mxu0 %v6754_v56 }
0x141e   :  { %6756 = vmatprep.subr.bf16.mxu0 %v7264_v45 }
0x1421   :  { %6758 = vmatpush1.bf16.msra.mxu0 %v6757_v32 }
0x1422   :  { %6759 = vmatprep.subr.bf16.mxu0 %v7264_v45 }
0x1425   :  { %6761 = vmatpush1.bf16.msra.mxu0 %v6760_v31 }
0x14cb   :  { %v6137_v38 = vpop.f32.mrb[36].mxu0 }
0x14cc   :  { %v3383_v15 = vadd.f32 %v6137_v38, %v5457_v16  ;;  %v3377_v43 = vpop.f32.mrb[37].mxu0 }
0x14cd   :  { %v3378_v61 = vadd.f32 %v5457_v16, %v3377_v43 }
0x14ce   :  { %v3405_v0 = vmul.f32 0.044715, %v3383_v15  ;;  %v3401_v21 = vmul.f32 0.7978846, %v3383_v15  ;;  %v3397_v56 = vmul.f32 0.5, %v3383_v15 }
0x14cf   :  { %v3404_v5 = vmul.f32 0.044715, %v3378_v61  ;;  %v3400_v13 = vmul.f32 0.7978846, %v3378_v61  ;;  %v3396_v59 = vmul.f32 0.5, %v3378_v61 }
0x14d0   :  { %v3409_v28 = vmul.f32 %v3405_v0, %v3383_v15 }
0x14d1   :  { %v3408_v14 = vmul.f32 %v3404_v5, %v3378_v61 }
0x14d2   :  { %v3413_v46 = vadd.f32 1.0, %v3409_v28 }
0x14d3   :  { %v3412_v30 = vadd.f32 1.0, %v3408_v14  ;;  %v6140_v23 = vpop.f32.mrb[38].mxu0 }
0x14d4   :  { %v3417_v55 = vmul.f32 %v3413_v46, %v3401_v21  ;;  %v3393_v39 = vadd.f32 %v6140_v23, %v5457_v16  ;;  %v3387_v29 = vpop.f32.mrb[39].mxu0 }
0x14d5   :  { %v3416_v17 = vmul.f32 %v3412_v30, %v3400_v13  ;;  %v3388_v25 = vadd.f32 %v5457_v16, %v3387_v29 }
0x14d6   :  { %7158 = vtanh.f32 %v3417_v55  ;;  %v3407_v54 = vmul.f32 0.044715, %v3393_v39  ;;  %v3403_v36 = vmul.f32 0.7978846, %v3393_v39  ;;  %v3399_v28 = vmul.f32 0.5, %v3393_v39 }
0x14d7   :  { %7160 = vtanh.f32 %v3416_v17  ;;  %v3406_v24 = vmul.f32 0.044715, %v3388_v25  ;;  %v3402_v44 = vmul.f32 0.7978846, %v3388_v25  ;;  %v3398_v15 = vmul.f32 0.5, %v3388_v25 }
0x14d8   :  { %v3411_v48 = vmul.f32 %v3407_v54, %v3393_v39 }
0x14d9   :  { %v3410_v58 = vmul.f32 %v3406_v24, %v3388_v25 }
0x14da   :  { %v3415_v57 = vadd.f32 1.0, %v3411_v48 }
0x14db   :  { %v3414_v18 = vadd.f32 1.0, %v3410_v58 }
0x14dc   :  { %v3419_v60 = vmul.f32 %v3415_v57, %v3403_v36 }
0x14dd   :  { %v3418_v33 = vmul.f32 %v3414_v18, %v3402_v44 }
0x14de   :  { %7162 = vtanh.f32 %v3419_v60 }
0x14df   :  { %7164 = vtanh.f32 %v3418_v33 }
0x14e0   :  { %v7159_v22 = vpop.eup %7158 }
0x14e1   :  { %v7161_v47 = vpop.eup %7160  ;;  %v3425_v1 = vadd.f32 1.0, %v7159_v22 }
0x14e2   :  { %v3424_v32 = vadd.f32 1.0, %v7161_v47 }
0x14e3   :  { %v3429_v10 = vmul.f32 %v3425_v1, %v3397_v56 }
0x14e4   :  { %v3428_v12 = vmul.f32 %v3424_v32, %v3396_v59 }
0x14e5   :  { %v3433_v31 = vadd.f32 %v3429_v10, %v8048_v51 }
0x14e6   :  { %v3432_v16 = vadd.f32 %v3428_v12, %v8050_v27 }
0x14e7   :  { %v3437_v38 = vmul.f32 0.70710677, %v3433_v31 }
0x14e8   :  { %v7163_v43 = vpop.eup %7162  ;;  %v3436_v0 = vmul.f32 0.70710677, %v3432_v16 }
0x14e9   :  { %v7165_v5 = vpop.eup %7164  ;;  %v3427_v14 = vadd.f32 1.0, %v7163_v43  ;;  %v8823_v21 = vsel %vm182_vm2, %v3437_v38, %v8046_v49 }
0x14ea   :  { %v3426_v46 = vadd.f32 1.0, %v7165_v5  ;;  %v3445_v61 = vmul.f32 %v8823_v21, %v7418_v42  ;;  %v8829_v51 = vsel %vm182_vm2, %v3436_v0, %v8044_v26 }
0x14eb   :  { %v3431_v27 = vmul.f32 %v3427_v14, %v3399_v28  ;;  %v3444_v13 = vmul.f32 %v8829_v51, %v7397_v35 }
0x14ec   :  { %v3430_v30 = vmul.f32 %v3426_v46, %v3398_v15  ;;  %3478 = vrot.lane.b32.xlu1 %v3445_v61, %s7263_s3  ;;  %v3461_v23 = vrot.slane %v3445_v61, 1  ;;  %v3449_v55 = vrot.slane %v3445_v61, 7  ;;  %v3722_v61 = vld [vmem:[%s9581_s5 + $0x7c0] sm:$0xff] }
0x14ed   :  { %v3435_v49 = vadd.f32 %v3431_v27, %v8078_v37  ;;  %3476 = vrot.lane.b32.xlu0 %v3444_v13, %s7263_s3  ;;  %v3460_v39 = vrot.slane %v3444_v13, 1  ;;  %v3448_v29 = vrot.slane %v3444_v13, 7  ;;  %v3723_v27 = vld [vmem:[%s9581_s5 + $0x7c8] sm:$0xff]  ;;  %v3724_v13 = vld [vmem:[%s9581_s5 + $0x7d0] sm:$0xff] }
0x14ee   :  { %v3434_v17 = vadd.f32 %v3430_v30, %v8080_v4  ;;  %v6762_v30 = vpack.c.bf16 %v3723_v27, %v3722_v61  ;;  %v3729_v61 = vld [vmem:[%s9581_s5 + $0x7f8] sm:$0xff] }
0x14ef   :  { %v3466_v26 = vsel %vm121_vm0, %v3460_v39, %v3461_v23  ;;  %v3439_v25 = vmul.f32 0.70710677, %v3435_v49  ;;  %v3454_v54 = vsel %vm88_vm1, %v3448_v29, %v3449_v55  ;;  %v5462_v49 = vld [vmem:[%s9582_s6 + $0xe] ss:$0 sm:$0xff] }
0x14f0   :  { %v3468_v24 = vmul.f32 %v3466_v26, %v7430_v53  ;;  %v3438_v48 = vmul.f32 0.70710677, %v3434_v17  ;;  %v3457_v31 = vmul.f32 %v3454_v54, %v7463_v7  ;;  %6763 = vmatprep.subr.bf16.mxu1 %v6762_v30 }
0x14f1   :  { %v8844_v58 = vsel %vm182_vm2, %v3439_v25, %v8075_v11  ;;  %6765 = vmatpush3.bf16.msra.mxu1 %v6762_v30 }
0x14f2   :  { %5463 = vmatprep.mubr.msk.f32.mxu0 %vm187_vm3, %v3468_v24  ;;  %v3447_v37 = vmul.f32 %v8844_v58, %v7416_v41  ;;  %v8851_v4 = vsel %vm182_vm2, %v3438_v48, %v8066_v50 }
0x14f3   :  { %v3446_v36 = vmul.f32 %v8851_v4, %v7395_v34 }
0x14f4   :  { %3482 = vrot.lane.b32.xlu1 %v3447_v37, %s7263_s3  ;;  %v3463_v57 = vrot.slane %v3447_v37, 1  ;;  %v3451_v44 = vrot.slane %v3447_v37, 7 }
0x14f5   :  { %3480 = vrot.lane.b32.xlu0 %v3446_v36, %s7263_s3  ;;  %v3462_v11 = vrot.slane %v3446_v36, 1  ;;  %v3450_v18 = vrot.slane %v3446_v36, 7 }
0x14f6   :  { %v3455_v60 = vsel %vm88_vm1, %v3451_v44, %v3448_v29  ;;  %v3467_v33 = vsel %vm121_vm0, %v3463_v57, %v3460_v39 }
0x14f7   :  { %v3465_v50 = vsel %vm121_vm0, %v3461_v23, %v3462_v11  ;;  %v3464_v22 = vsel %vm121_vm0, %v3462_v11, %v3463_v57  ;;  %v3453_v47 = vsel %vm88_vm1, %v3449_v55, %v3450_v18  ;;  %v3452_v56 = vsel %vm88_vm1, %v3450_v18, %v3451_v44  ;;  %v3725_v23 = vld [vmem:[%s9581_s5 + $0x7d8] sm:$0xff] }
0x14f8   :  { %v3456_v1 = vmul.f32 %v3455_v60, %v7461_v6  ;;  %v3469_v10 = vmul.f32 %v3465_v50, %v7428_v52  ;;  %v3470_v38 = vmul.f32 %v3464_v22, %v7446_v62  ;;  %v3458_v43 = vmul.f32 %v3453_v47, %v7465_v8 }
0x14f9   :  { %v3471_v28 = vmul.f32 %v3467_v33, %v7453_v3  ;;  %v3459_v15 = vmul.f32 %v3452_v56, %v7467_v9  ;;  %v6766_v55 = vpack.c.bf16 %v3725_v23, %v3724_v13 }
0x14fb   :  { %6767 = vmatprep.subr.bf16.mxu1 %v6766_v55 }
0x14fc   :  { %6769 = vmatpush3.bf16.msra.mxu1 %v6766_v55 }
0x155e   :  { %v3479_v12 = vpop.permute.xlu1 %3478 }
0x155f   :  { %v3477_v59 = vpop.permute.xlu0 %3476  ;;  %v3489_v16 = vsel %vm187_vm3, %v3457_v31, %v3479_v12  ;;  %v3726_v31 = vld [vmem:[%s9581_s5 + $0x7e0] sm:$0xff] }
0x1560   :  { %v3488_v32 = vsel %vm187_vm3, %v3456_v1, %v3477_v59 }
0x1561   :  { %3598 = vmatmul.mubr.f32.vlgmr.msra.gmra.mrb[40].mxu0 %v3488_v32 }
0x1562   :  { %5464 = vmatprep.mubr.msk.f32.mxu0 %vm187_vm3, %v3469_v10 }
0x1565   :  { %3603 = vmatmul.mubr.f32.gmra.mrb[42].mxu0 %v3489_v16 }
0x1566   :  { %5465 = vmatprep.mubr.msk.f32.mxu0 %vm187_vm3, %v3470_v38  ;;  %v3483_v14 = vpop.permute.xlu1 %3482 }
0x1567   :  { %v3481_v0 = vpop.permute.xlu0 %3480  ;;  %v3491_v46 = vsel %vm187_vm3, %v3459_v15, %v3483_v14 }
0x1568   :  { %v3490_v5 = vsel %vm187_vm3, %v3458_v43, %v3481_v0  ;;  %v3727_v43 = vld [vmem:[%s9581_s5 + $0x7e8] sm:$0xff] }
0x1569   :  { %3608 = vmatmul.mubr.f32.gmra.mrb[44].mxu0 %v3490_v5  ;;  %v6770_v5 = vpack.c.bf16 %v3727_v43, %v3726_v31 }
0x156a   :  { %5466 = vmatprep.mubr.msk.f32.mxu0 %vm187_vm3, %v3471_v28 }
0x156b   :  { %6771 = vmatprep.subr.bf16.mxu1 %v6770_v5 }
0x156c   :  { %6773 = vmatpush3.bf16.msra.mxu1 %v6770_v5 }
0x156d   :  { %3613 = vmatmul.mubr.f32.gmra.mrb[46].mxu0 %v3491_v46  ;;  %v3728_v46 = vld [vmem:[%s9581_s5 + $0x7f0] sm:$0xff] }
0x156e   :  { %v6774_v27 = vpack.c.bf16 %v3729_v61, %v3728_v46 }
0x1570   :  { %6775 = vmatprep.subr.bf16.mxu1 %v6774_v27 }
0x1571   :  { %6777 = vmatpush3.bf16.msra.mxu1 %v6774_v27 }
0x1634   :  { %v3599_v39 = vpop.f32.mrb[40].mxu0 }
0x1635   :  { %v3600_v29 = vadd.f32 %v5462_v49, %v3599_v39  ;;  %v3601_v17 = vpop.f32.mrb[41].mxu0  ;;  %v3731_v39 = vld [vmem:[%s9581_s5 + $0x808] sm:$0xff] }
0x1637   :  { %v3626_v26 = vmul.f32 0.044715, %v3600_v29  ;;  %v3622_v37 = vmul.f32 0.7978846, %v3600_v29  ;;  %v3618_v23 = vmul.f32 0.5, %v3600_v29 }
0x1638   :  { %v3604_v25 = vpop.f32.mrb[42].mxu0 }
0x1639   :  { %v3630_v54 = vmul.f32 %v3626_v26, %v3600_v29  ;;  %v3605_v24 = vadd.f32 %v5462_v49, %v3604_v25  ;;  %v3606_v48 = vpop.f32.mrb[43].mxu0  ;;  %v3732_v29 = vld [vmem:[%s9581_s5 + $0x810] sm:$0xff] }
0x163b   :  { %v3634_v36 = vadd.f32 1.0, %v3630_v54  ;;  %v3627_v57 = vmul.f32 0.044715, %v3605_v24  ;;  %v3623_v50 = vmul.f32 0.7978846, %v3605_v24  ;;  %v3619_v54 = vmul.f32 0.5, %v3605_v24 }
0x163c   :  { %v3609_v44 = vpop.f32.mrb[44].mxu0 }
0x163d   :  { %v3638_v11 = vmul.f32 %v3634_v36, %v3622_v37  ;;  %v3631_v18 = vmul.f32 %v3627_v57, %v3605_v24  ;;  %v3610_v60 = vadd.f32 %v5462_v49, %v3609_v44  ;;  %v3611_v33 = vpop.f32.mrb[45].mxu0  ;;  %v3733_v36 = vld [vmem:[%s9581_s5 + $0x818] sm:$0xff] }
0x163e   :  { %v6782_v44 = vpack.c.bf16 %v3733_v36, %v3732_v29  ;;  %v3892_v36 = vld [vmem:[%s9581_s5 + $0x820] sm:$0xff] }
0x163f   :  { %7166 = vtanh.f32 %v3638_v11  ;;  %v3635_v22 = vadd.f32 1.0, %v3631_v18  ;;  %v3628_v47 = vmul.f32 0.044715, %v3610_v60  ;;  %v3624_v16 = vmul.f32 0.7978846, %v3610_v60 }
0x1640   :  { %v3614_v56 = vpop.f32.mrb[46].mxu0 }
0x1641   :  { %v3639_v1 = vmul.f32 %v3635_v22, %v3623_v50  ;;  %v3615_v59 = vadd.f32 %v5462_v49, %v3614_v56  ;;  %v3616_v32 = vpop.f32.mrb[47].mxu0  ;;  %v3632_v10 = vmul.f32 %v3628_v47, %v3610_v60  ;;  %v3730_v49 = vld [vmem:[%s9581_s5 + $0x800] sm:$0xff] }
0x1642   :  { %v6778_v26 = vpack.c.bf16 %v3731_v39, %v3730_v49 }
0x1643   :  { %7168 = vtanh.f32 %v3639_v1  ;;  %v3629_v12 = vmul.f32 0.044715, %v3615_v59  ;;  %v3636_v38 = vadd.f32 1.0, %v3632_v10  ;;  %v3625_v14 = vmul.f32 0.7978846, %v3615_v59 }
0x1644   :  { %6779 = vmatprep.subr.bf16.mxu1 %v6778_v26  ;;  %v3621_v32 = vmul.f32 0.5, %v3615_v59 }
0x1645   :  { %v3633_v0 = vmul.f32 %v3629_v12, %v3615_v59  ;;  %v3640_v28 = vmul.f32 %v3636_v38, %v3624_v16  ;;  %6781 = vmatpush3.bf16.msra.mxu1 %v6778_v26 }
0x1646   :  { %6783 = vmatprep.subr.bf16.mxu1 %v6782_v44 }
0x1647   :  { %v3637_v15 = vadd.f32 1.0, %v3633_v0  ;;  %7170 = vtanh.f32 %v3640_v28 }
0x1649   :  { %v7167_v13 = vpop.eup %7166  ;;  %v3641_v30 = vmul.f32 %v3637_v15, %v3625_v14  ;;  %6785 = vmatpush3.bf16.msra.mxu1 %v6782_v44 }
0x164a   :  { %v3646_v55 = vadd.f32 1.0, %v7167_v13 }
0x164b   :  { %7172 = vtanh.f32 %v3641_v30 }
0x164c   :  { %v3650_v17 = vmul.f32 %v3646_v55, %v3618_v23 }
0x164d   :  { %v7169_v25 = vpop.eup %7168 }
0x164e   :  { %v3654_v48 = vmul.f32 %v3650_v17, %v7397_v35  ;;  %v3647_v37 = vadd.f32 1.0, %v7169_v25  ;;  %v3620_v35 = vmul.f32 0.5, %v3610_v60 }
0x1650   :  { %3686 = vrot.lane.b32.xlu0 %v3654_v48, %s7262_s12  ;;  %v3651_v57 = vmul.f32 %v3647_v37, %v3619_v54  ;;  %v3670_v33 = vrot.slane %v3654_v48, 1  ;;  %v3658_v22 = vrot.slane %v3654_v48, 7 }
0x1651   :  { %v7171_v11 = vpop.eup %7170 }
0x1652   :  { %v3655_v24 = vmul.f32 %v3651_v57, %v7418_v42  ;;  %v3648_v18 = vadd.f32 1.0, %v7171_v11  ;;  %v3894_v57 = vld [vmem:[%s9581_s5 + $0x830] sm:$0xff]  ;;  %v3895_v11 = vld [vmem:[%s9581_s5 + $0x838] sm:$0xff] }
0x1654   :  { %3688 = vrot.lane.b32.xlu1 %v3655_v24, %s7262_s12  ;;  %v3671_v50 = vrot.slane %v3655_v24, 1  ;;  %v3659_v47 = vrot.slane %v3655_v24, 7  ;;  %v3652_v1 = vmul.f32 %v3648_v18, %v3620_v35  ;;  %v6790_v24 = vpack.c.bf16 %v3895_v11, %v3894_v57  ;;  %v3896_v35 = vld [vmem:[%s9581_s5 + $0x840] sm:$0xff]  ;;  %v3897_v18 = vld [vmem:[%s9581_s5 + $0x848] sm:$0xff] }
0x1655   :  { %v7173_v56 = vpop.eup %7172 }
0x1656   :  { %v3676_v10 = vsel %vm121_vm0, %v3670_v33, %v3671_v50  ;;  %v3649_v12 = vadd.f32 1.0, %v7173_v56  ;;  %v3664_v42 = vsel %vm88_vm1, %v3658_v22, %v3659_v47  ;;  %v3656_v60 = vmul.f32 %v3652_v1, %v7395_v34  ;;  %v3900_v56 = vld [vmem:[%s9581_s5 + $0x860] sm:$0xff]  ;;  %v3901_v1 = vld [vmem:[%s9581_s5 + $0x868] sm:$0xff] }
0x1657   :  { %v3678_v0 = vmul.f32 %v3676_v10, %v7430_v53  ;;  %v3667_v39 = vmul.f32 %v3664_v42, %v7463_v7  ;;  %v3902_v10 = vld [vmem:[%s9581_s5 + $0x870] sm:$0xff] }
0x1658   :  { %v3653_v31 = vmul.f32 %v3649_v12, %v3621_v32  ;;  %3690 = vrot.lane.b32.xlu0 %v3656_v60, %s7262_s12  ;;  %v3672_v16 = vrot.slane %v3656_v60, 1  ;;  %v3660_v38 = vrot.slane %v3656_v60, 7  ;;  %v6802_v32 = vpack.c.bf16 %v3901_v1, %v3900_v56  ;;  %v3903_v12 = vld [vmem:[%s9581_s5 + $0x878] sm:$0xff]  ;;  %v5467_v60 = vld [vmem:[%s9582_s6 + $0xf] ss:$0 sm:$0xff] }
0x1659   :  { %v6806_v42 = vpack.c.bf16 %v3903_v12, %v3902_v10 }
0x165a   :  { %v3657_v43 = vmul.f32 %v3653_v31, %v7416_v41  ;;  %v3675_v59 = vsel %vm121_vm0, %v3671_v50, %v3672_v16  ;;  %v3663_v5 = vsel %vm88_vm1, %v3659_v47, %v3660_v38  ;;  %v3898_v50 = vld [vmem:[%s9581_s5 + $0x850] sm:$0xff] }
0x165b   :  { %v3679_v34 = vmul.f32 %v3675_v59, %v7428_v52  ;;  %v3668_v17 = vmul.f32 %v3663_v5, %v7465_v8 }
0x165c   :  { %3692 = vrot.lane.b32.xlu1 %v3657_v43, %s7262_s12  ;;  %v3673_v28 = vrot.slane %v3657_v43, 1  ;;  %v3661_v14 = vrot.slane %v3657_v43, 7  ;;  %3702 = vrot.lane.b32.xlu0 %v3678_v0, %s7263_s3 }
0x165e   :  { %v3674_v15 = vsel %vm121_vm0, %v3672_v16, %v3673_v28  ;;  %v3677_v41 = vsel %vm121_vm0, %v3673_v28, %v3670_v33  ;;  %v3665_v53 = vsel %vm88_vm1, %v3661_v14, %v3658_v22  ;;  %v3662_v46 = vsel %vm88_vm1, %v3660_v38, %v3661_v14  ;;  %v3899_v22 = vld [vmem:[%s9581_s5 + $0x858] sm:$0xff] }
0x165f   :  { %v3680_v61 = vmul.f32 %v3674_v15, %v7446_v62  ;;  %v3681_v52 = vmul.f32 %v3677_v41, %v7453_v3  ;;  %v3666_v23 = vmul.f32 %v3665_v53, %v7461_v6  ;;  %v3669_v48 = vmul.f32 %v3662_v46, %v7467_v9  ;;  %v3893_v9 = vld [vmem:[%s9581_s5 + $0x828] sm:$0xff] }
0x1660   :  { %3704 = vrot.lane.b32.xlu1 %v3679_v34, %s7263_s3  ;;  %v6786_v44 = vpack.c.bf16 %v3893_v9, %v3892_v36  ;;  %v6794_v33 = vpack.c.bf16 %v3897_v18, %v3896_v35  ;;  %v6798_v47 = vpack.c.bf16 %v3899_v22, %v3898_v50  ;;  %vm5170_vm1 = vcmask 1041409  }
0x1661   :  { %3706 = vrot.lane.b32.xlu0 %v3680_v61, %s7263_s3 }
0x1662   :  { %6787 = vmatprep.subr.bf16.mxu1 %v6786_v44 }
0x1664   :  { %3708 = vrot.lane.b32.xlu1 %v3681_v52, %s7263_s3 }
0x16c2   :  { %v3687_v27 = vpop.permute.xlu0 %3686 }
0x16c3   :  { %v3714_v49 = vsel %vm182_vm2, %v3666_v23, %v3687_v27 }
0x16c6   :  { %v3689_v13 = vpop.permute.xlu1 %3688 }
0x16c7   :  { %v3715_v3 = vsel %vm182_vm2, %v3667_v39, %v3689_v13 }
0x16ca   :  { %v3691_v30 = vpop.permute.xlu0 %3690 }
0x16cb   :  { %v3716_v25 = vsel %vm182_vm2, %v3668_v17, %v3691_v30 }
0x16ce   :  { %v3693_v55 = vpop.permute.xlu1 %3692  ;;  %v3703_v40 = vpop.permute.xlu0 %3702 }
0x16cf   :  { %v3718_v62 = vsel %vm187_vm3, %v3714_v49, %v3703_v40  ;;  %v3717_v7 = vsel %vm182_vm2, %v3669_v48, %v3693_v55 }
0x16d0   :  { %6165 = vmatprep.mubr.msk.f32.mxu1 %vm209_vm4, %v3718_v62 }
0x16d2   :  { %v3705_v26 = vpop.permute.xlu1 %3704 }
0x16d3   :  { %v3719_v54 = vsel %vm187_vm3, %v3715_v3, %v3705_v26  ;;  %v3707_v6 = vpop.permute.xlu0 %3706 }
0x16d4   :  { %v3720_v37 = vsel %vm187_vm3, %v3716_v25, %v3707_v6  ;;  %6166 = vmatmul.mubr.msk.f32.vlgmr.msra.gmra.mrb[44].mxu1 %vm209_vm4, %v3719_v54 }
0x16d5   :  { %6168 = vmatprep.mubr.msk.f32.mxu1 %vm209_vm4, %v3720_v37  ;;  %6789 = vmatpush3.bf16.msra.mxu1 %v6786_v44 }
0x16d6   :  { %v3709_v8 = vpop.permute.xlu1 %3708  ;;  %6791 = vmatprep.subr.bf16.mxu1 %v6790_v24 }
0x16d7   :  { %v3721_v29 = vsel %vm187_vm3, %v3717_v7, %v3709_v8 }
0x16d8   :  { %6169 = vmatmul.mubr.msk.f32.gmra.mrb[46].mxu1 %vm209_vm4, %v3721_v29 }
0x16d9   :  { %6793 = vmatpush3.bf16.msra.mxu1 %v6790_v24 }
0x16da   :  { %6795 = vmatprep.subr.bf16.mxu1 %v6794_v33 }
0x16dd   :  { %6797 = vmatpush3.bf16.msra.mxu1 %v6794_v33 }
0x16de   :  { %6799 = vmatprep.subr.bf16.mxu1 %v6798_v47 }
0x16e1   :  { %6801 = vmatpush3.bf16.msra.mxu1 %v6798_v47 }
0x16e2   :  { %6803 = vmatprep.subr.bf16.mxu1 %v6802_v32 }
0x16e5   :  { %6805 = vmatpush3.bf16.msra.mxu1 %v6802_v32 }
0x16e6   :  { %6807 = vmatprep.subr.bf16.mxu1 %v6806_v42 }
0x16e9   :  { %6809 = vmatpush3.bf16.msra.mxu1 %v6806_v42 }
0x16ea   :  { %6824 = vmatprep.subr.bf16.mxu1 %v7264_v45 }
0x17a7   :  { %v6167_v31 = vpop.f32.mrb[44].mxu1 }
0x17a8   :  { %v3823_v16 = vadd.f32 %v6167_v31, %v5467_v60  ;;  %v3817_v38 = vpop.f32.mrb[45].mxu1 }
0x17a9   :  { %v3818_v43 = vadd.f32 %v5467_v60, %v3817_v38 }
0x17aa   :  { %v3845_v0 = vmul.f32 0.044715, %v3823_v16  ;;  %v3841_v53 = vmul.f32 0.7978846, %v3823_v16  ;;  %v3837_v6 = vmul.f32 0.5, %v3823_v16 }
0x17ab   :  { %v3844_v59 = vmul.f32 0.044715, %v3818_v43  ;;  %v6170_v5 = vpop.f32.mrb[46].mxu1  ;;  %v3840_v52 = vmul.f32 0.7978846, %v3818_v43  ;;  %v3836_v37 = vmul.f32 0.5, %v3818_v43 }
0x17ac   :  { %v3849_v28 = vmul.f32 %v3845_v0, %v3823_v16  ;;  %v3833_v14 = vadd.f32 %v6170_v5, %v5467_v60  ;;  %v3827_v34 = vpop.f32.mrb[47].mxu1 }
0x17ad   :  { %v3848_v15 = vmul.f32 %v3844_v59, %v3818_v43  ;;  %v3828_v41 = vadd.f32 %v5467_v60, %v3827_v34 }
0x17ae   :  { %v3853_v46 = vadd.f32 1.0, %v3849_v28  ;;  %v3847_v61 = vmul.f32 0.044715, %v3833_v14  ;;  %v3843_v40 = vmul.f32 0.7978846, %v3833_v14  ;;  %v3839_v57 = vmul.f32 0.5, %v3833_v14 }
0x17af   :  { %v3852_v27 = vadd.f32 1.0, %v3848_v15  ;;  %v3846_v13 = vmul.f32 0.044715, %v3828_v41  ;;  %v3842_v62 = vmul.f32 0.7978846, %v3828_v41  ;;  %v3838_v11 = vmul.f32 0.5, %v3828_v41 }
0x17b0   :  { %v3857_v30 = vmul.f32 %v3853_v46, %v3841_v53  ;;  %v3851_v23 = vmul.f32 %v3847_v61, %v3833_v14 }
0x17b1   :  { %v3856_v55 = vmul.f32 %v3852_v27, %v3840_v52  ;;  %v3850_v49 = vmul.f32 %v3846_v13, %v3828_v41 }
0x17b2   :  { %7174 = vtanh.f32 %v3857_v30  ;;  %v3855_v39 = vadd.f32 1.0, %v3851_v23 }
0x17b3   :  { %7176 = vtanh.f32 %v3856_v55  ;;  %v3854_v17 = vadd.f32 1.0, %v3850_v49 }
0x17b4   :  { %v3859_v3 = vmul.f32 %v3855_v39, %v3843_v40 }
0x17b5   :  { %v3858_v26 = vmul.f32 %v3854_v17, %v3842_v62 }
0x17b6   :  { %7178 = vtanh.f32 %v3859_v3 }
0x17b7   :  { %7180 = vtanh.f32 %v3858_v26 }
0x17bc   :  { %v7175_v25 = vpop.eup %7174 }
0x17bd   :  { %v7177_v54 = vpop.eup %7176  ;;  %v3865_v48 = vadd.f32 1.0, %v7175_v25 }
0x17be   :  { %v3864_v7 = vadd.f32 1.0, %v7177_v54 }
0x17bf   :  { %v3869_v8 = vmul.f32 %v3865_v48, %v3837_v6 }
0x17c0   :  { %v7179_v29 = vpop.eup %7178  ;;  %v3868_v36 = vmul.f32 %v3864_v7, %v3836_v37 }
0x17c1   :  { %v7181_v9 = vpop.eup %7180  ;;  %3878 = vrot.lane.b32.xlu1 %v3869_v8, %s7263_s3  ;;  %v3867_v44 = vadd.f32 1.0, %v7179_v29 }
0x17c2   :  { %3876 = vrot.lane.b32.xlu0 %v3868_v36, %s7263_s3  ;;  %v3866_v24 = vadd.f32 1.0, %v7181_v9 }
0x17c3   :  { %v3871_v35 = vmul.f32 %v3867_v44, %v3839_v57 }
0x17c4   :  { %v3870_v18 = vmul.f32 %v3866_v24, %v3838_v11  ;;  %v4130_v24 = vstv %s5481_s23 }
0x17c5   :  { %3882 = vrot.lane.b32.xlu1 %v3871_v35, %s7263_s3 }
0x17c6   :  { %3880 = vrot.lane.b32.xlu0 %v3870_v18, %s7263_s3 }
0x1833   :  { %v3879_v33 = vpop.permute.xlu1 %3878 }
0x1834   :  { %v3877_v50 = vpop.permute.xlu0 %3876  ;;  %v9020_v47 = vsel %vm187_vm3, %v8823_v21, %v3879_v33  ;;  %v5472_v21 = vld [vmem:[%s9582_s6 + $0x10] ss:$0 sm:$0xff] }
0x1835   :  { %v9016_v22 = vsel %vm187_vm3, %v8829_v51, %v3877_v50 }
0x1836   :  { %6195 = vmatprep.mubr.msk.f32.mxu1 %vm209_vm4, %v9016_v22  ;;  %v9051_v11 = vpack.c.bf16 %v9020_v47, %v9016_v22 }
0x1837   :  { %6196 = vmatmul.mubr.msk.f32.vlgmr.msra.gmra.mrb[48].mxu1 %vm209_vm4, %v9020_v47  ;;  %v3883_v56 = vpop.permute.xlu1 %3882 }
0x1838   :  { %v3881_v1 = vpop.permute.xlu0 %3880  ;;  %v9032_v51 = vsel %vm187_vm3, %v8844_v58, %v3883_v56 }
0x1839   :  { %v9028_v32 = vsel %vm187_vm3, %v8851_v4, %v3881_v1 }
0x183a   :  { %6198 = vmatprep.mubr.msk.f32.mxu1 %vm209_vm4, %v9028_v32  ;;  %v6816_v36 = vpack.c.bf16 %v9032_v51, %v9028_v32 }
0x183b   :  { %6199 = vmatmul.mubr.msk.f32.gmra.mrb[50].mxu1 %vm209_vm4, %v9032_v51 }
0x190a   :  { %v6197_v10 = vpop.f32.mrb[48].mxu1 }
0x190b   :  { %v3987_v12 = vpop.f32.mrb[49].mxu1  ;;  %v3993_v42 = vadd.f32 %v6197_v10, %v5472_v21 }
0x190c   :  { %v3988_v60 = vadd.f32 %v5472_v21, %v3987_v12 }
0x190d   :  { %v4015_v58 = vmul.f32 0.044715, %v3993_v42  ;;  %v4011_v55 = vmul.f32 0.7978846, %v3993_v42  ;;  %v4007_v57 = vmul.f32 0.5, %v3993_v42 }
0x190e   :  { %v4014_v4 = vmul.f32 0.044715, %v3988_v60  ;;  %v6200_v31 = vpop.f32.mrb[50].mxu1  ;;  %v4010_v5 = vmul.f32 0.7978846, %v3988_v60  ;;  %v4006_v39 = vmul.f32 0.5, %v3988_v60 }
0x190f   :  { %v4003_v16 = vadd.f32 %v6200_v31, %v5472_v21  ;;  %v3997_v38 = vpop.f32.mrb[51].mxu1  ;;  %v4019_v15 = vmul.f32 %v4015_v58, %v3993_v42 }
0x1910   :  { %v4018_v43 = vmul.f32 %v4014_v4, %v3988_v60  ;;  %v3998_v0 = vadd.f32 %v5472_v21, %v3997_v38 }
0x1911   :  { %v4017_v59 = vmul.f32 0.044715, %v4003_v16  ;;  %v4013_v46 = vmul.f32 0.7978846, %v4003_v16  ;;  %v4023_v30 = vadd.f32 1.0, %v4019_v15  ;;  %v4009_v25 = vmul.f32 0.5, %v4003_v16 }
0x1912   :  { %v4022_v28 = vadd.f32 1.0, %v4018_v43  ;;  %v4016_v14 = vmul.f32 0.044715, %v3998_v0  ;;  %v4012_v52 = vmul.f32 0.7978846, %v3998_v0  ;;  %v4008_v6 = vmul.f32 0.5, %v3998_v0 }
0x1913   :  { %v4021_v34 = vmul.f32 %v4017_v59, %v4003_v16  ;;  %v4027_v49 = vmul.f32 %v4023_v30, %v4011_v55 }
0x1914   :  { %v4026_v41 = vmul.f32 %v4022_v28, %v4010_v5  ;;  %v4020_v53 = vmul.f32 %v4016_v14, %v3998_v0 }
0x1915   :  { %v4025_v61 = vadd.f32 1.0, %v4021_v34 }
0x1916   :  { %7182 = vtanh.f32 %v4026_v41  ;;  %v4024_v27 = vadd.f32 1.0, %v4020_v53 }
0x1917   :  { %v4029_v13 = vmul.f32 %v4025_v61, %v4013_v46 }
0x1918   :  { %v4028_v23 = vmul.f32 %v4024_v27, %v4012_v52 }
0x1919   :  { %7184 = vtanh.f32 %v4029_v13 }
0x191a   :  { %7186 = vtanh.f32 %v4028_v23 }
0x191b   :  { %7188 = vtanh.f32 %v4027_v49 }
0x1920   :  { %v7183_v40 = vpop.eup %7182 }
0x1921   :  { %v4034_v62 = vadd.f32 1.0, %v7183_v40 }
0x1923   :  { %v7185_v17 = vpop.eup %7184  ;;  %v4038_v3 = vmul.f32 %v4034_v62, %v4006_v39 }
0x1924   :  { %v7187_v26 = vpop.eup %7186  ;;  %v4037_v54 = vadd.f32 1.0, %v7185_v17 }
0x1925   :  { %6205 = vmatprep.mubr.msk.f32.mxu0 %vm182_vm2, %v4038_v3  ;;  %v4036_v48 = vadd.f32 1.0, %v7187_v26  ;;  %v7189_v29 = vpop.eup %7188 }
0x1926   :  { %v4041_v37 = vmul.f32 %v4037_v54, %v4009_v25  ;;  %v4035_v9 = vadd.f32 1.0, %v7189_v29  ;;  %v4396_v29 = vld [vmem:[%s9581_s5 + $0x880] sm:$0xff] }
0x1927   :  { %v4040_v7 = vmul.f32 %v4036_v48, %v4008_v6 }
0x1928   :  { %v4039_v44 = vmul.f32 %v4035_v9, %v4007_v57  ;;  %v4398_v9 = vld [vmem:[%s9581_s5 + $0x890] sm:$0xff] }
0x1929   :  { %v6810_v8 = vpack.c.bf16 %v4041_v37, %v4040_v7 }
0x192b   :  { %6812 = vmatprep.subr.msk.bf16.mxu0 %vm7633_vm5, %v6810_v8 }
0x192c   :  { %6815 = vmatpush3.bf16.xpose.msk.msra.mxu0 %vm7633_vm5, %v6810_v8  ;;  %vm7266_vm5 = vmmov 0  }
0x192d   :  { %6817 = vmatprep.subr.bf16.mxu0 %v6816_v36 }
0x1933   :  { %6206 = vmatmul.mubr.msk.f32.vlgmr.msra.gmra.mrb[48].mxu0 %vm182_vm2, %v4039_v44  ;;  %v4399_v44 = vld [vmem:[%s9581_s5 + $0x898] sm:$0xff] }
0x1934   :  { %6819 = vmatpush3.bf16.msra.mxu0 %v6816_v36  ;;  %v4397_v36 = vld [vmem:[%s9581_s5 + $0x888] sm:$0xff] }
0x1935   :  { %6821 = vmatprep.subr.bf16.mxu0 %v9051_v11  ;;  %v6825_v57 = vpack.c.bf16 %v4397_v36, %v4396_v29  ;;  %v4416_v36 = vld [vmem:[%s9581_s5 + $0x920] sm:$0xff] }
0x1937   :  { %6826 = vmatpush1.bf16.msra.mxu1 %v6825_v57 }
0x1938   :  { %6827 = vmatprep.subr.bf16.mxu1 %v7264_v45 }
0x1a06   :  { %v6207_v35 = vpop.f32.mrb[48].mxu0 }
0x1a07   :  { %v4132_v18 = vmul.f32 %v6207_v35, %v4130_v24  ;;  %v4120_v33 = vpop.f32.mrb[49].mxu0  ;;  %v6828_v35 = vpack.c.bf16 %v4399_v44, %v4398_v9  ;;  %v4417_v9 = vld [vmem:[%s9581_s5 + $0x928] sm:$0xff] }
0x1a08   :  { %v4131_v63 = vmul.f32 %v4130_v24, %v4120_v33  ;;  %v4579_v24 = vld [vmem:[%s9581_s5 + $0x948] sm:$0xff]  ;;  %v4580_v33 = vld [vmem:[%s9581_s5 + $0x950] sm:$0xff]  ;;  %v6855_v44 = vpack.c.bf16 %v4417_v9, %v4416_v36  ;;  %v4775_v36 = vld [vmem:[%s9581_s5 + $0xa78] sm:$0xff] }
0x1a09   :  { %v4134_v50 = vsel %vm819_vm6, %v4132_v18, -10000000.0  ;;  %6829 = vmatpush1.bf16.msra.mxu1 %v6828_v35 }
0x1a0a   :  { %v4133_v56 = vsel %vm818_vm7, %v4131_v63, -10000000.0  ;;  %v4136_v1 = vsel %vm822_vm8, %v4134_v50, -inf  ;;  %v4581_v63 = vld [vmem:[%s9581_s5 + $0x958] sm:$0xff]  ;;  %6830 = vmatprep.subr.bf16.mxu1 %v7264_v45 }
0x1a0b   :  { %4164 = vmax.xlane.f32.xlu1 %v4136_v1  ;;  %v4135_v21 = vsel %vm822_vm8, %v4133_v56, -inf }
0x1a0c   :  { %4162 = vmax.xlane.f32.xlu0 %v4135_v21  ;;  %v4137_v10 = vmax.f32 %v4135_v21, %v4136_v1  ;;  %v6864_v1 = vpack.c.bf16 %v4581_v63, %v4580_v33  ;;  %v4582_v21 = vld [vmem:[%s9581_s5 + $0x960] sm:$0xff]  ;;  %v4599_v33 = vld [vmem:[%s9581_s5 + $0x9e8] sm:$0xff] }
0x1a0e   :  { %v4138_v12 = vrot.slane %v4137_v10, 4 }
0x1a10   :  { %v4139_v42 = vmax.f32 %v4137_v10, %v4138_v12  ;;  %v4583_v10 = vld [vmem:[%s9581_s5 + $0x968] sm:$0xff] }
0x1a12   :  { %v4140_v60 = vrot.slane %v4139_v42, 2 }
0x1a14   :  { %v4141_v4 = vmax.f32 %v4139_v42, %v4140_v60  ;;  %v4402_v42 = vld [vmem:[%s9581_s5 + $0x8b0] sm:$0xff]  ;;  %v4403_v60 = vld [vmem:[%s9581_s5 + $0x8b8] sm:$0xff] }
0x1a16   :  { %v4142_v31 = vrot.slane %v4141_v4, 1 }
0x1a18   :  { %v4143_v16 = vmax.f32 %v4141_v4, %v4142_v31  ;;  %v6867_v4 = vpack.c.bf16 %v4583_v10, %v4582_v21  ;;  %v4584_v31 = vld [vmem:[%s9581_s5 + $0x970] sm:$0xff] }
0x1a1a   :  { %v4144_v38 = vsub.f32 %v4133_v56, %v4143_v16  ;;  %v4145_v58 = vsub.f32 %v4134_v50, %v4143_v16  ;;  %v4585_v16 = vld [vmem:[%s9581_s5 + $0x978] sm:$0xff] }
0x1a1c   :  { %v4146_v20 = vmul.f32 1.442695, %v4144_v38  ;;  %v4148_v43 = vmul.f32 1.442695, %v4145_v58  ;;  %v6834_v38 = vpack.c.bf16 %v4403_v60, %v4402_v42  ;;  %v4404_v58 = vld [vmem:[%s9581_s5 + $0x8c0] sm:$0xff] }
0x1a1e   :  { %7190 = vpow2.f32 %v4146_v20  ;;  %v4405_v20 = vld [vmem:[%s9581_s5 + $0x8c8] sm:$0xff] }
0x1a1f   :  { %7192 = vpow2.f32 %v4148_v43  ;;  %v6870_v43 = vpack.c.bf16 %v4585_v16, %v4584_v31 }
0x1a28   :  { %v7191_v19 = vpop.eup %7190 }
0x1a29   :  { %v7193_v0 = vpop.eup %7192  ;;  %v4150_v59 = vsel %vm822_vm8, %v7191_v19, 0.0 }
0x1a2a   :  { %v4151_v5 = vsel %vm822_vm8, %v7193_v0, 0.0 }
0x1a2b   :  { %v4152_v28 = vadd.f32 %v4151_v5, %v4150_v59  ;;  %v6837_v59 = vpack.c.bf16 %v4405_v20, %v4404_v58  ;;  %v4406_v5 = vld [vmem:[%s9581_s5 + $0x8d0] sm:$0xff] }
0x1a2d   :  { %v4153_v14 = vrot.slane %v4152_v28, 4 }
0x1a2f   :  { %v4154_v34 = vadd.f32 %v4153_v14, %v4152_v28  ;;  %v4407_v28 = vld [vmem:[%s9581_s5 + $0x8d8] sm:$0xff] }
0x1a31   :  { %v4155_v15 = vrot.slane %v4154_v34, 2 }
0x1a33   :  { %v4156_v41 = vadd.f32 %v4155_v15, %v4154_v34  ;;  %v4588_v34 = vld [vmem:[%s9581_s5 + $0x990] sm:$0xff]  ;;  %v4589_v15 = vld [vmem:[%s9581_s5 + $0x998] sm:$0xff] }
0x1a35   :  { %v4157_v53 = vrot.slane %v4156_v41, 1 }
0x1a37   :  { %v4158_v46 = vadd.f32 %v4157_v53, %v4156_v41  ;;  %v6840_v41 = vpack.c.bf16 %v4407_v28, %v4406_v5  ;;  %v4408_v53 = vld [vmem:[%s9581_s5 + $0x8e0] sm:$0xff]  ;;  %v4762_v28 = vld [vmem:[%s9581_s5 + $0xa10] sm:$0xff] }
0x1a39   :  { %7194 = vrcp.f32 %v4158_v46  ;;  %v4409_v46 = vld [vmem:[%s9581_s5 + $0x8e8] sm:$0xff] }
0x1a43   :  { %v7195_v61 = vpop.eup %7194 }
0x1a44   :  { %v4160_v52 = vmul.f32 %v7195_v61, %v7191_v19  ;;  %v4161_v27 = vmul.f32 %v7195_v61, %v7193_v0  ;;  %v4586_v19 = vld [vmem:[%s9581_s5 + $0x980] sm:$0xff]  ;;  %v4587_v0 = vld [vmem:[%s9581_s5 + $0x988] sm:$0xff]  ;;  %v6876_v61 = vpack.c.bf16 %v4589_v15, %v4588_v34 }
0x1a45   :  { %v6873_v14 = vpack.c.bf16 %v4587_v0, %v4586_v19  ;;  %v4760_v19 = vld [vmem:[%s9581_s5 + $0xa00] sm:$0xff]  ;;  %v4761_v0 = vld [vmem:[%s9581_s5 + $0xa08] sm:$0xff] }
0x1a46   :  { %4263 = vxpose.xlu1.b32.start [1/2] (short) (narrow) %v4160_v52, 16  ;;  %v4590_v52 = vld [vmem:[%s9581_s5 + $0x9a0] sm:$0xff] }
0x1a4a   :  { %4264 = vxpose.xlu1.b32.end [2/2] (short) (narrow) %v4161_v27, 16  ;;  %v4591_v27 = vld [vmem:[%s9581_s5 + $0x9a8] sm:$0xff] }
0x1a98   :  { %v4165_v13 = vpop.xlane.xlu1 %4164 }
0x1a99   :  { %v4167_v30 = vsub.f32 %v4134_v50, %v4165_v13  ;;  %v4163_v23 = vpop.xlane.xlu0 %4162  ;;  %v4400_v50 = vld [vmem:[%s9581_s5 + $0x8a0] sm:$0xff]  ;;  %v6843_v13 = vpack.c.bf16 %v4409_v46, %v4408_v53  ;;  %v4765_v46 = vld [vmem:[%s9581_s5 + $0xa28] sm:$0xff] }
0x1a9a   :  { %v4166_v55 = vsub.f32 %v4133_v56, %v4163_v23  ;;  %v4401_v56 = vld [vmem:[%s9581_s5 + $0x8a8] sm:$0xff]  ;;  %v4411_v23 = vld [vmem:[%s9581_s5 + $0x8f8] sm:$0xff]  ;;  %v4764_v53 = vld [vmem:[%s9581_s5 + $0xa20] sm:$0xff] }
0x1a9b   :  { %v4170_v49 = vmul.f32 1.442695, %v4167_v30  ;;  %v6831_v12 = vpack.c.bf16 %v4401_v56, %v4400_v50  ;;  %v4410_v30 = vld [vmem:[%s9581_s5 + $0x8f0] sm:$0xff]  ;;  %v4601_v56 = vld [vmem:[%s9581_s5 + $0x9f8] sm:$0xff] }
0x1a9c   :  { %v4168_v40 = vmul.f32 1.442695, %v4166_v55  ;;  %v6879_v55 = vpack.c.bf16 %v4591_v27, %v4590_v52  ;;  %v4600_v50 = vld [vmem:[%s9581_s5 + $0x9f0] sm:$0xff]  ;;  %v6903_v52 = vpack.c.bf16 %v4765_v46, %v4764_v53 }
0x1a9d   :  { %6832 = vmatpush1.bf16.msra.mxu1 %v6831_v12 }
0x1a9e   :  { %7196 = vpow2.f32 %v4168_v40  ;;  %6833 = vmatprep.subr.bf16.mxu1 %v7264_v45  ;;  %v4593_v40 = vld [vmem:[%s9581_s5 + $0x9b8] sm:$0xff] }
0x1a9f   :  { %7198 = vpow2.f32 %v4170_v49  ;;  %v4592_v49 = vld [vmem:[%s9581_s5 + $0x9b0] sm:$0xff] }
0x1aa1   :  { %6835 = vmatpush1.bf16.msra.mxu1 %v6834_v38 }
0x1aa2   :  { %6836 = vmatprep.subr.bf16.mxu1 %v7264_v45 }
0x1aa5   :  { %6838 = vmatpush1.bf16.msra.mxu1 %v6837_v59  ;;  %v6897_v59 = vpack.c.bf16 %v4761_v0, %v4760_v19 }
0x1aa6   :  { %6839 = vmatprep.subr.bf16.mxu1 %v7264_v45 }
0x1aa8   :  { %v7197_v39 = vpop.eup %7196 }
0x1aa9   :  { %v4172_v62 = vsel %vm822_vm8, %v7197_v39, 0.0  ;;  %v7199_v17 = vpop.eup %7198  ;;  %6841 = vmatpush1.bf16.msra.mxu1 %v6840_v41 }
0x1aaa   :  { %4173 = vadd.xlane.f32.xlu0 %v4172_v62  ;;  %v4175_v3 = vsel %vm822_vm8, %v7199_v17, 0.0  ;;  %6842 = vmatprep.subr.bf16.mxu1 %v7264_v45  ;;  %v4412_v62 = vld [vmem:[%s9581_s5 + $0x900] sm:$0xff] }
0x1aad   :  { %6844 = vmatpush1.bf16.msra.mxu1 %v6843_v13  ;;  %v4766_v13 = vld [vmem:[%s9581_s5 + $0xa30] sm:$0xff] }
0x1aae   :  { %4176 = vadd.xlane.f32.xlu0 %v4175_v3  ;;  %6845 = vmatprep.subr.bf16.mxu1 %v7264_v45  ;;  %v6882_v3 = vpack.c.bf16 %v4593_v40, %v4592_v49  ;;  %v4768_v40 = vld [vmem:[%s9581_s5 + $0xa40] sm:$0xff] }
0x1ac6   :  { %v4279_v48 = vpop.trf.xlu1 }
0x1aca   :  { %v4280_v8 = vpop.trf.xlu1 }
0x1b37   :  { %v4174_v26 = vpop.xlane.xlu0 %4173 }
0x1b38   :  { %7200 = vrcp.f32 %v4174_v26  ;;  %v4594_v26 = vld [vmem:[%s9581_s5 + $0x9c0] sm:$0xff] }
0x1b3b   :  { %v4177_v25 = vpop.xlane.xlu0 %4176 }
0x1b3c   :  { %7202 = vrcp.f32 %v4177_v25  ;;  %v4595_v25 = vld [vmem:[%s9581_s5 + $0x9c8] sm:$0xff] }
0x1b42   :  { %v7201_v54 = vpop.eup %7200 }
0x1b43   :  { %v4179_v6 = vmul.f32 %v7201_v54, %v7197_v39  ;;  %v6846_v39 = vpack.c.bf16 %v4411_v23, %v4410_v30  ;;  %v4767_v30 = vld [vmem:[%s9581_s5 + $0xa38] sm:$0xff] }
0x1b45   :  { %6212 = vmatprep.mubr.msk.f32.mxu0 %vm822_vm8, %v4179_v6  ;;  %6847 = vmatpush1.bf16.msra.mxu1 %v6846_v39  ;;  %v4414_v6 = vld [vmem:[%s9581_s5 + $0x910] sm:$0xff]  ;;  %v4769_v39 = vld [vmem:[%s9581_s5 + $0xa48] sm:$0xff] }
0x1b46   :  { %v7203_v37 = vpop.eup %7202  ;;  %6848 = vmatprep.subr.bf16.mxu1 %v7264_v45 }
0x1b47   :  { %v4181_v7 = vmul.f32 %v7203_v37, %v7199_v17  ;;  %v4413_v17 = vld [vmem:[%s9581_s5 + $0x908] sm:$0xff]  ;;  %v6885_v37 = vpack.c.bf16 %v4595_v25, %v4594_v26  ;;  %v4771_v26 = vld [vmem:[%s9581_s5 + $0xa58] sm:$0xff] }
0x1b48   :  { %v6849_v54 = vpack.c.bf16 %v4413_v17, %v4412_v62  ;;  %v6909_v62 = vpack.c.bf16 %v4769_v39, %v4768_v40 }
0x1b49   :  { %6213 = vmatmul.mubr.msk.f32.vlgmr.msra.gmra.mrb[50].mxu0 %vm822_vm8, %v4181_v7  ;;  %v4596_v7 = vld [vmem:[%s9581_s5 + $0x9d0] sm:$0xff] }
0x1b4a   :  { %6823 = vmatpush3.bf16.msra.mxu0 %v9051_v11  ;;  %6219 = vmatprep.mubr.msk.f32.mxu0 %vm822_vm8, %v4279_v48  ;;  %v4578_v11 = vld [vmem:[%s9581_s5 + $0x940] sm:$0xff]  ;;  %v4415_v48 = vld [vmem:[%s9581_s5 + $0x918] sm:$0xff] }
0x1b4b   :  { %6860 = vmatprep.subr.bf16.mxu0 %v7264_v45  ;;  %v6861_v18 = vpack.c.bf16 %v4579_v24, %v4578_v11  ;;  %6850 = vmatpush1.bf16.msra.mxu1 %v6849_v54  ;;  %v6852_v29 = vpack.c.bf16 %v4415_v48, %v4414_v6  ;;  %v4418_v11 = vld [vmem:[%s9581_s5 + $0x930] sm:$0xff]  ;;  %v4419_v24 = vld [vmem:[%s9581_s5 + $0x938] sm:$0xff]  ;;  %v4772_v6 = vld [vmem:[%s9581_s5 + $0xa60] sm:$0xff] }
0x1b4c   :  { %6851 = vmatprep.subr.bf16.mxu1 %v7264_v45  ;;  %v6858_v35 = vpack.c.bf16 %v4419_v24, %v4418_v11  ;;  %v4773_v48 = vld [vmem:[%s9581_s5 + $0xa68] sm:$0xff]  ;;  %v4776_v24 = vld [vmem:[%s9581_s5 + $0xa80] sm:$0xff] }
0x1b4d   :  { %6220 = vmatmul.mubr.msk.f32.vlgmr.msra.gmra.mrb[52].mxu0 %vm822_vm8, %v4280_v8  ;;  %v4597_v8 = vld [vmem:[%s9581_s5 + $0x9d8] sm:$0xff] }
0x1b4e   :  { %6862 = vmatpush1.bf16.msra.mxu0 %v6861_v18  ;;  %v6888_v57 = vpack.c.bf16 %v4597_v8, %v4596_v7  ;;  %v4598_v18 = vld [vmem:[%s9581_s5 + $0x9e0] sm:$0xff]  ;;  %v6915_v7 = vpack.c.bf16 %v4773_v48, %v4772_v6 }
0x1b4f   :  { %6863 = vmatprep.subr.bf16.mxu0 %v7264_v45  ;;  %6853 = vmatpush1.bf16.msra.mxu1 %v6852_v29  ;;  %v6891_v63 = vpack.c.bf16 %v4599_v33, %v4598_v18  ;;  %v4774_v29 = vld [vmem:[%s9581_s5 + $0xa70] sm:$0xff] }
0x1b50   :  { %6854 = vmatprep.subr.bf16.mxu1 %v7264_v45 }
0x1b52   :  { %6865 = vmatpush1.bf16.msra.mxu0 %v6864_v1  ;;  %v6894_v1 = vpack.c.bf16 %v4601_v56, %v4600_v50  ;;  %v4779_v50 = vld [vmem:[%s9581_s5 + $0xa98] sm:$0xff] }
0x1b53   :  { %6866 = vmatprep.subr.bf16.mxu0 %v7264_v45  ;;  %6856 = vmatpush1.bf16.msra.mxu1 %v6855_v44  ;;  %v6918_v44 = vpack.c.bf16 %v4775_v36, %v4774_v29 }
0x1b54   :  { %6857 = vmatprep.subr.bf16.mxu1 %v7264_v45 }
0x1b56   :  { %6868 = vmatpush1.bf16.msra.mxu0 %v6867_v4 }
0x1b57   :  { %6869 = vmatprep.subr.bf16.mxu0 %v7264_v45  ;;  %6859 = vmatpush1.bf16.msra.mxu1 %v6858_v35  ;;  %v4777_v35 = vld [vmem:[%s9581_s5 + $0xa88] sm:$0xff] }
0x1b58   :  { %6896 = vmatprep.subr.bf16.mxu1 %v7264_v45  ;;  %v6921_v18 = vpack.c.bf16 %v4777_v35, %v4776_v24 }
0x1b5a   :  { %6871 = vmatpush1.bf16.msra.mxu0 %v6870_v43 }
0x1b5b   :  { %6872 = vmatprep.subr.bf16.mxu0 %v7264_v45 }
0x1b5e   :  { %6874 = vmatpush1.bf16.msra.mxu0 %v6873_v14  ;;  %v4763_v14 = vld [vmem:[%s9581_s5 + $0xa18] sm:$0xff] }
0x1b5f   :  { %6875 = vmatprep.subr.bf16.mxu0 %v7264_v45  ;;  %v6900_v15 = vpack.c.bf16 %v4763_v14, %v4762_v28  ;;  %v5491_v28 = vld [vmem:[%s9582_s6 + $0x12] ss:$0 sm:$0xff] }
0x1b62   :  { %6877 = vmatpush1.bf16.msra.mxu0 %v6876_v61 }
0x1b63   :  { %6878 = vmatprep.subr.bf16.mxu0 %v7264_v45 }
0x1b66   :  { %6880 = vmatpush1.bf16.msra.mxu0 %v6879_v55  ;;  %v6906_v55 = vpack.c.bf16 %v4767_v30, %v4766_v13 }
0x1b67   :  { %6881 = vmatprep.subr.bf16.mxu0 %v7264_v45 }
0x1b6a   :  { %6883 = vmatpush1.bf16.msra.mxu0 %v6882_v3  ;;  %v4770_v3 = vld [vmem:[%s9581_s5 + $0xa50] sm:$0xff] }
0x1b6b   :  { %6884 = vmatprep.subr.bf16.mxu0 %v7264_v45  ;;  %v6912_v25 = vpack.c.bf16 %v4771_v26, %v4770_v3 }
0x1b6e   :  { %6886 = vmatpush1.bf16.msra.mxu0 %v6885_v37 }
0x1b6f   :  { %6887 = vmatprep.subr.bf16.mxu0 %v7264_v45 }
0x1b72   :  { %6889 = vmatpush1.bf16.msra.mxu0 %v6888_v57 }
0x1b73   :  { %6890 = vmatprep.subr.bf16.mxu0 %v7264_v45 }
0x1b76   :  { %6892 = vmatpush1.bf16.msra.mxu0 %v6891_v63  ;;  %v4778_v63 = vld [vmem:[%s9581_s5 + $0xa90] sm:$0xff] }
0x1b77   :  { %6893 = vmatprep.subr.bf16.mxu0 %v7264_v45 }
0x1b7a   :  { %6895 = vmatpush1.bf16.msra.mxu0 %v6894_v1  ;;  %v6924_v1 = vpack.c.bf16 %v4779_v50, %v4778_v63 }
0x1c1c   :  { %v6214_v21 = vpop.f32.mrb[50].mxu0 }
0x1c1d   :  { %v4254_v10 = vpop.f32.mrb[51].mxu0  ;;  %v4555_v16 = vsub.f32 %v9020_v47, %v6214_v21  ;;  %v4737_v38 = vmul.f32 %v6214_v21, %v9020_v47 }
0x1c1e   :  { %4380 = vrot.lane.b32.xlu0 %v4254_v10, %s7265_s9  ;;  %v4554_v4 = vsub.f32 %v9016_v22, %v4254_v10  ;;  %v4736_v31 = vmul.f32 %v4254_v10, %v9016_v22  ;;  %v4780_v10 = vld [vmem:[%s9581_s5 + $0xaa0] sm:$0xff] }
0x1c20   :  { %v6221_v12 = vpop.f32.mrb[52].mxu0 }
0x1c21   :  { %v4367_v42 = vpop.f32.mrb[53].mxu0  ;;  %v4557_v20 = vsub.f32 %v9032_v51, %v6221_v12  ;;  %v4739_v43 = vmul.f32 %v6221_v12, %v9032_v51 }
0x1c22   :  { %v4738_v60 = vmul.f32 %v4367_v42, %v9028_v32  ;;  %4382 = vrot.lane.b32.xlu0 %v6214_v21, %s7265_s9  ;;  %v4556_v58 = vsub.f32 %v9028_v32, %v4367_v42 }
0x1c24   :  { %4748 = vrot.lane.b32.xlu1 %v4738_v60, %s7265_s9 }
0x1c26   :  { %4562 = vrot.lane.b32.xlu0 %v4554_v4, %s7265_s9  ;;  %v4782_v4 = vld [vmem:[%s9581_s5 + $0xab0] sm:$0xff] }
0x1c2a   :  { %4744 = vrot.lane.b32.xlu0 %v4736_v31, %s7265_s9  ;;  %v4783_v31 = vld [vmem:[%s9581_s5 + $0xab8] sm:$0xff] }
0x1c2e   :  { %4386 = vrot.lane.b32.xlu0 %v6221_v12, %s7265_s9  ;;  %v4781_v12 = vld [vmem:[%s9581_s5 + $0xaa8] sm:$0xff] }
0x1c2f   :  { %v6927_v60 = vpack.c.bf16 %v4781_v12, %v4780_v10 }
0x1c32   :  { %4384 = vrot.lane.b32.xlu0 %v4367_v42, %s7265_s9 }
0x1c36   :  { %4564 = vrot.lane.b32.xlu0 %v4555_v16, %s7265_s9  ;;  %v6930_v16 = vpack.c.bf16 %v4783_v31, %v4782_v4 }
0x1c3a   :  { %4746 = vrot.lane.b32.xlu0 %v4737_v38, %s7265_s9 }
0x1c3e   :  { %4566 = vrot.lane.b32.xlu0 %v4556_v58, %s7265_s9 }
0x1c42   :  { %4568 = vrot.lane.b32.xlu0 %v4557_v20, %s7265_s9 }
0x1c46   :  { %4750 = vrot.lane.b32.xlu0 %v4739_v43, %s7265_s9 }
0x1c90   :  { %v4381_v5 = vpop.permute.xlu0 %4380 }
0x1c91   :  { %v4392_v34 = vsel %vm209_vm4, %v9016_v22, %v4381_v5  ;;  %5487 = vmatprep.mubr.msk.f32.mxu1 %vm187_vm3, %v4381_v5 }
0x1c92   :  { %4498 = vmatmul.mubr.f32.vlgmr.msra.gmra.mrb[52].mxu1 %v4392_v34 }
0x1c93   :  { %6898 = vmatpush1.bf16.msra.mxu1 %v6897_v59 }
0x1c94   :  { %v4383_v41 = vpop.permute.xlu0 %4382  ;;  %6899 = vmatprep.subr.bf16.mxu1 %v7264_v45 }
0x1c95   :  { %5488 = vmatprep.mubr.msk.f32.mxu1 %vm187_vm3, %v4383_v41  ;;  %v4393_v61 = vsel %vm209_vm4, %v9020_v47, %v4383_v41 }
0x1c96   :  { %4503 = vmatmul.mubr.f32.gmra.mrb[54].mxu1 %v4393_v61  ;;  %v4749_v20 = vpop.permute.xlu1 %4748 }
0x1c97   :  { %6901 = vmatpush1.bf16.msra.mxu1 %v6900_v15  ;;  %v4758_v43 = vsel %vm209_vm4, %v9028_v32, %v4749_v20 }
0x1c98   :  { %v4563_v27 = vpop.permute.xlu0 %4562  ;;  %6902 = vmatprep.subr.bf16.mxu1 %v7264_v45 }
0x1c99   :  { %v4574_v23 = vsel %vm209_vm4, %v9016_v22, %v4563_v27  ;;  %5492 = vmatprep.mubr.msk.f32.mxu0 %vm187_vm3, %v4563_v27 }
0x1c9a   :  { %4680 = vmatmul.mubr.f32.vlgmr.msra.gmra.mrb[54].mxu0 %v4574_v23 }
0x1c9b   :  { %6904 = vmatpush1.bf16.msra.mxu1 %v6903_v52 }
0x1c9c   :  { %v9292_v49 = vpop.permute.xlu0 %4744  ;;  %6905 = vmatprep.subr.bf16.mxu1 %v7264_v45 }
0x1c9d   :  { %v4756_v38 = vsel %vm209_vm4, %v9016_v22, %v9292_v49 }
0x1c9f   :  { %6907 = vmatpush1.bf16.msra.mxu1 %v6906_v55 }
0x1ca0   :  { %v4387_v17 = vpop.permute.xlu0 %4386  ;;  %6908 = vmatprep.subr.bf16.mxu1 %v7264_v45 }
0x1ca1   :  { %v4395_v9 = vsel %vm209_vm4, %v9032_v51, %v4387_v17 }
0x1ca3   :  { %6910 = vmatpush1.bf16.msra.mxu1 %v6909_v62 }
0x1ca4   :  { %v4385_v54 = vpop.permute.xlu0 %4384  ;;  %6911 = vmatprep.subr.bf16.mxu1 %v7264_v45 }
0x1ca5   :  { %5489 = vmatprep.mubr.msk.f32.mxu1 %vm187_vm3, %v4385_v54  ;;  %v4394_v37 = vsel %vm209_vm4, %v9028_v32, %v4385_v54 }
0x1ca6   :  { %4508 = vmatmul.mubr.f32.gmra.mrb[56].mxu1 %v4394_v37 }
0x1ca7   :  { %6913 = vmatpush1.bf16.msra.mxu1 %v6912_v25  ;;  %5490 = vmatprep.mubr.msk.f32.mxu1 %vm187_vm3, %v4387_v17 }
0x1ca8   :  { %v4565_v8 = vpop.permute.xlu0 %4564  ;;  %6914 = vmatprep.subr.bf16.mxu1 %v7264_v45 }
0x1ca9   :  { %5493 = vmatprep.mubr.msk.f32.mxu0 %vm187_vm3, %v4565_v8  ;;  %v4575_v57 = vsel %vm209_vm4, %v9020_v47, %v4565_v8 }
0x1caa   :  { %4513 = vmatmul.mubr.f32.gmra.mrb[58].mxu1 %v4395_v9  ;;  %4685 = vmatmul.mubr.f32.gmra.mrb[56].mxu0 %v4575_v57  ;;  %v4958_v57 = vld [vmem:[%s9581_s5 + $0xac0] sm:$0xff] }
0x1cab   :  { %6916 = vmatpush1.bf16.msra.mxu1 %v6915_v7  ;;  %5497 = vmatprep.mubr.msk.f32.mxu1 %vm187_vm3, %v9292_v49 }
0x1cac   :  { %v4747_v11 = vpop.permute.xlu0 %4746  ;;  %6917 = vmatprep.subr.bf16.mxu1 %v7264_v45 }
0x1cad   :  { %v4757_v58 = vsel %vm209_vm4, %v9020_v47, %v4747_v11 }
0x1caf   :  { %6919 = vmatpush1.bf16.msra.mxu1 %v6918_v44  ;;  %v4959_v44 = vld [vmem:[%s9581_s5 + $0xac8] sm:$0xff] }
0x1cb0   :  { %v4567_v33 = vpop.permute.xlu0 %4566  ;;  %6920 = vmatprep.subr.bf16.mxu1 %v7264_v45 }
0x1cb1   :  { %5494 = vmatprep.mubr.msk.f32.mxu0 %vm187_vm3, %v4567_v33  ;;  %v4576_v56 = vsel %vm209_vm4, %v9028_v32, %v4567_v33 }
0x1cb2   :  { %4690 = vmatmul.mubr.f32.gmra.mrb[58].mxu0 %v4576_v56 }
0x1cb3   :  { %6922 = vmatpush1.bf16.msra.mxu1 %v6921_v18  ;;  %v6932_v18 = vpack.c.bf16 %v4959_v44, %v4958_v57  ;;  %v4969_v57 = vld [vmem:[%s9581_s5 + $0xb18] sm:$0xff] }
0x1cb4   :  { %v4569_v21 = vpop.permute.xlu0 %4568  ;;  %6923 = vmatprep.subr.bf16.mxu1 %v7264_v45 }
0x1cb5   :  { %5495 = vmatprep.mubr.msk.f32.mxu0 %vm187_vm3, %v4569_v21  ;;  %v4577_v42 = vsel %vm209_vm4, %v9032_v51, %v4569_v21  ;;  %6933 = vmatprep.subr.bf16.mxu0 %v6932_v18  ;;  %v4961_v21 = vld [vmem:[%s9581_s5 + $0xad8] sm:$0xff] }
0x1cb6   :  { %4695 = vmatmul.mubr.f32.gmra.mrb[60].mxu0 %v4577_v42 }
0x1cb7   :  { %6925 = vmatpush1.bf16.msra.mxu1 %v6924_v1  ;;  %6935 = vmatpush3.bf16.msra.mxu0 %v6932_v18  ;;  %v4960_v1 = vld [vmem:[%s9581_s5 + $0xad0] sm:$0xff] }
0x1cb8   :  { %6926 = vmatprep.subr.bf16.mxu1 %v7264_v45  ;;  %v4751_v19 = vpop.permute.xlu0 %4750  ;;  %v6936_v12 = vpack.c.bf16 %v4961_v21, %v4960_v1 }
0x1cb9   :  { %v4759_v22 = vsel %vm209_vm4, %v9032_v51, %v4751_v19 }
0x1cba   :  { %6937 = vmatprep.subr.bf16.mxu0 %v6936_v12 }
0x1cbb   :  { %6928 = vmatpush1.bf16.msra.mxu1 %v6927_v60  ;;  %v5496_v60 = vld [vmem:[%s9582_s6 + $0x13] ss:$0 sm:$0xff]  ;;  %6939 = vmatpush3.bf16.msra.mxu0 %v6936_v12 }
0x1cbc   :  { %6929 = vmatprep.subr.bf16.mxu1 %v7264_v45 }
0x1cbf   :  { %6931 = vmatpush1.bf16.msra.mxu1 %v6930_v16 }
0x1cc0   :  { %6980 = vmatprep.subr.bf16.mxu1 %v7264_v45 }
0x1cc2   :  { %4862 = vmatmul.mubr.f32.vlgmr.msra.gmra.mrb[60].mxu1 %v4756_v38  ;;  %v4962_v38 = vld [vmem:[%s9581_s5 + $0xae0] sm:$0xff] }
0x1cc3   :  { %5498 = vmatprep.mubr.msk.f32.mxu1 %vm187_vm3, %v4747_v11 }
0x1cc6   :  { %4867 = vmatmul.mubr.f32.gmra.mrb[62].mxu1 %v4757_v58  ;;  %v4963_v58 = vld [vmem:[%s9581_s5 + $0xae8] sm:$0xff] }
0x1cc7   :  { %5499 = vmatprep.mubr.msk.f32.mxu1 %vm187_vm3, %v4749_v20 }
0x1cca   :  { %4872 = vmatmul.mubr.f32.gmra.mrb[64].mxu1 %v4758_v43 }
0x1ccb   :  { %5500 = vmatprep.mubr.msk.f32.mxu1 %vm187_vm3, %v4751_v19 }
0x1cce   :  { %4877 = vmatmul.mubr.f32.gmra.mrb[66].mxu1 %v4759_v22  ;;  %v6940_v22 = vpack.c.bf16 %v4963_v58, %v4962_v38 }
0x1cd0   :  { %6941 = vmatprep.subr.bf16.mxu0 %v6940_v22 }
0x1cd1   :  { %6943 = vmatpush3.bf16.msra.mxu0 %v6940_v22 }
0x1d65   :  { %v9381_v0 = vpop.f32.mrb[52].mxu1 }
0x1d66   :  { %v4501_v59 = vpop.f32.mrb[53].mxu1 }
0x1d67   :  { %v4964_v59 = vld [vmem:[%s9581_s5 + $0xaf0] sm:$0xff] }
0x1d69   :  { %v9383_v5 = vpop.f32.mrb[54].mxu1 }
0x1d6a   :  { %v4506_v47 = vpop.f32.mrb[55].mxu1 }
0x1d6b   :  { %v4965_v47 = vld [vmem:[%s9581_s5 + $0xaf8] sm:$0xff] }
0x1d6d   :  { %v4681_v14 = vpop.f32.mrb[54].mxu0 }
0x1d6e   :  { %v4682_v32 = vadd.f32 %v5491_v28, %v4681_v14  ;;  %v4683_v34 = vpop.f32.mrb[55].mxu0  ;;  %v4966_v14 = vld [vmem:[%s9581_s5 + $0xb00] sm:$0xff] }
0x1d70   :  { %v4708_v15 = vmul.f32 0.044715, %v4682_v32  ;;  %v4704_v53 = vmul.f32 0.7978846, %v4682_v32  ;;  %v4700_v39 = vmul.f32 0.5, %v4682_v32 }
0x1d72   :  { %v4712_v41 = vmul.f32 %v4708_v15, %v4682_v32  ;;  %v4967_v32 = vld [vmem:[%s9581_s5 + $0xb08] sm:$0xff] }
0x1d74   :  { %v4716_v46 = vadd.f32 1.0, %v4712_v41 }
0x1d76   :  { %v4720_v61 = vmul.f32 %v4716_v46, %v4704_v53 }
0x1d78   :  { %7204 = vtanh.f32 %v4720_v61 }
0x1d79   :  { %v9388_v51 = vpop.f32.mrb[56].mxu1 }
0x1d7a   :  { %v4511_v52 = vpop.f32.mrb[57].mxu1 }
0x1d7b   :  { %v6948_v52 = vpack.c.bf16 %v4967_v32, %v4966_v14 }
0x1d7d   :  { %v9390_v27 = vpop.f32.mrb[58].mxu1  ;;  %v4686_v13 = vpop.f32.mrb[56].mxu0 }
0x1d7e   :  { %v4687_v30 = vadd.f32 %v5491_v28, %v4686_v13  ;;  %v4516_v23 = vpop.f32.mrb[59].mxu1  ;;  %v4688_v55 = vpop.f32.mrb[57].mxu0 }
0x1d80   :  { %v4709_v49 = vmul.f32 0.044715, %v4687_v30  ;;  %v4705_v3 = vmul.f32 0.7978846, %v4687_v30  ;;  %v4701_v4 = vmul.f32 0.5, %v4687_v30 }
0x1d82   :  { %v7205_v40 = vpop.eup %7204  ;;  %v4713_v62 = vmul.f32 %v4709_v49, %v4687_v30 }
0x1d83   :  { %v4728_v17 = vadd.f32 1.0, %v7205_v40 }
0x1d84   :  { %v4717_v26 = vadd.f32 1.0, %v4713_v62 }
0x1d85   :  { %v4691_v25 = vpop.f32.mrb[58].mxu0  ;;  %v4732_v54 = vmul.f32 %v4728_v17, %v4700_v39 }
0x1d86   :  { %v4692_v6 = vadd.f32 %v5491_v28, %v4691_v25  ;;  %v4693_v48 = vpop.f32.mrb[59].mxu0  ;;  %v4721_v37 = vmul.f32 %v4717_v26, %v4705_v3 }
0x1d87   :  { %4922 = vrot.lane.b32.xlu0 %v4732_v54, %s7262_s12 }
0x1d88   :  { %v4710_v7 = vmul.f32 0.044715, %v4692_v6  ;;  %7206 = vtanh.f32 %v4721_v37  ;;  %v4706_v11 = vmul.f32 0.7978846, %v4692_v6  ;;  %v4702_v13 = vmul.f32 0.5, %v4692_v6 }
0x1d89   :  { %v4696_v8 = vpop.f32.mrb[60].mxu0 }
0x1d8a   :  { %v4714_v29 = vmul.f32 %v4710_v7, %v4692_v6  ;;  %v4697_v36 = vadd.f32 %v5491_v28, %v4696_v8  ;;  %v4698_v9 = vpop.f32.mrb[61].mxu0  ;;  %v6944_v28 = vpack.c.bf16 %v4965_v47, %v4964_v59  ;;  %v7242_v47 = vld [vmem:[%s9577_s1] sm:$0xff] }
0x1d8b   :  { %v4968_v9 = vld [vmem:[%s9581_s5 + $0xb10] sm:$0xff]  ;;  %vm5108_vm9 = vcmp.gt.f32.partialorder %v7242_v47, 0.0 }
0x1d8c   :  { %v4718_v24 = vadd.f32 1.0, %v4714_v29  ;;  %v4711_v35 = vmul.f32 0.044715, %v4697_v36  ;;  %v4707_v50 = vmul.f32 0.7978846, %v4697_v36  ;;  %6945 = vmatprep.subr.bf16.mxu0 %v6944_v28  ;;  %v4703_v54 = vmul.f32 0.5, %v4697_v36 }
0x1d8d   :  { %6947 = vmatpush3.bf16.msra.mxu0 %v6944_v28  ;;  %v5112_v32 = vsel %vm5108_vm9, 1, %v7261_v2 }
0x1d8e   :  { %v4722_v33 = vmul.f32 %v4718_v24, %v4706_v11  ;;  %v4715_v63 = vmul.f32 %v4711_v35, %v4697_v36  ;;  %6949 = vmatprep.subr.bf16.mxu0 %v6948_v52  ;;  %v6952_v24 = vpack.c.bf16 %v4969_v57, %v4968_v9 }
0x1d90   :  { %7208 = vtanh.f32 %v4722_v33  ;;  %v4719_v56 = vadd.f32 1.0, %v4715_v63 }
0x1d91   :  { %6951 = vmatpush3.bf16.msra.mxu0 %v6948_v52 }
0x1d92   :  { %v4723_v10 = vmul.f32 %v4719_v56, %v4707_v50  ;;  %v7207_v42 = vpop.eup %7206  ;;  %6953 = vmatprep.subr.bf16.mxu0 %v6952_v24 }
0x1d93   :  { %v4729_v31 = vadd.f32 1.0, %v7207_v42 }
0x1d94   :  { %7210 = vtanh.f32 %v4723_v10 }
0x1d95   :  { %v4863_v16 = vpop.f32.mrb[60].mxu1  ;;  %v4733_v19 = vmul.f32 %v4729_v31, %v4701_v4  ;;  %6955 = vmatpush3.bf16.msra.mxu0 %v6952_v24 }
0x1d96   :  { %v9414_v20 = vadd.f32 %v5496_v60, %v4863_v16  ;;  %v4865_v43 = vpop.f32.mrb[61].mxu1  ;;  %6956 = vmatprep.subr.bf16.mxu0 %v7264_v45 }
0x1d97   :  { %4924 = vrot.lane.b32.xlu0 %v4733_v19, %s7262_s12 }
0x1d98   :  { %v4890_v34 = vmul.f32 0.044715, %v9414_v20  ;;  %v4886_v23 = vmul.f32 0.7978846, %v9414_v20  ;;  %v4882_v42 = vmul.f32 0.5, %v9414_v20 }
0x1d99   :  { %v4868_v15 = vpop.f32.mrb[62].mxu1 }
0x1d9a   :  { %v7209_v41 = vpop.eup %7208  ;;  %v4894_v53 = vmul.f32 %v4890_v34, %v9414_v20  ;;  %v4869_v46 = vadd.f32 %v5496_v60, %v4868_v15  ;;  %v4870_v61 = vpop.f32.mrb[63].mxu1  ;;  %v7243_v34 = vld [vmem:[%s9577_s1 + $0x8] sm:$0xff] }
0x1d9b   :  { %v4730_v30 = vadd.f32 1.0, %v7209_v41  ;;  %vm5109_vm10 = vcmp.gt.f32.partialorder %v7243_v34, 0.0  ;;  %v7244_v41 = vld [vmem:[%s9577_s1 + $0x10] sm:$0xff]  ;;  %v7245_v61 = vld [vmem:[%s9577_s1 + $0x18] sm:$0xff] }
0x1d9c   :  { %v4898_v55 = vadd.f32 1.0, %v4894_v53  ;;  %v4891_v49 = vmul.f32 0.044715, %v4869_v46  ;;  %v4887_v6 = vmul.f32 0.7978846, %v4869_v46  ;;  %v4883_v16 = vmul.f32 0.5, %v4869_v46 }
0x1d9d   :  { %v4873_v40 = vpop.f32.mrb[64].mxu1  ;;  %v4734_v39 = vmul.f32 %v4730_v30, %v4702_v13  ;;  %vm5110_vm11 = vcmp.gt.f32.partialorder %v7244_v41, 0.0  ;;  %v5113_v53 = vsel %vm5109_vm10, 1, %v7261_v2  ;;  %vm5111_vm12 = vcmp.gt.f32.partialorder %v7245_v61, 0.0  ;;  %v5486_v13 = vld [vmem:[%s9582_s6 + $0x11] ss:$0 sm:$0xff] }
0x1d9e   :  { %v7211_v62 = vpop.eup %7210  ;;  %v4902_v17 = vmul.f32 %v4898_v55, %v4886_v23  ;;  %v4895_v3 = vmul.f32 %v4891_v49, %v4869_v46  ;;  %v4874_v26 = vadd.f32 %v5496_v60, %v4873_v40  ;;  %v4875_v25 = vpop.f32.mrb[65].mxu1  ;;  %v5114_v46 = vsel %vm5110_vm11, 1, %v7261_v2  ;;  %v5195_v41 = vld [vmem:[%s9581_s5 + $0xb28] sm:$0xff]  ;;  %v5197_v61 = vld [vmem:[%s9581_s5 + $0xb38] sm:$0xff] }
0x1d9f   :  { %4926 = vrot.lane.b32.xlu0 %v4734_v39, %s7262_s12  ;;  %v4731_v48 = vadd.f32 1.0, %v7211_v62  ;;  %v5115_v52 = vsel %vm5111_vm12, 1, %v7261_v2  ;;  %v4500_v30 = vadd.f32 %v5486_v13, %v9381_v0  ;;  %v4505_v55 = vadd.f32 %v5486_v13, %v9383_v5 }
0x1da0   :  { %7212 = vtanh.f32 %v4902_v17  ;;  %v4899_v37 = vadd.f32 1.0, %v4895_v3  ;;  %v4892_v7 = vmul.f32 0.044715, %v4874_v26  ;;  %v4888_v33 = vmul.f32 0.7978846, %v4874_v26 }
0x1da1   :  { %v4878_v8 = vpop.f32.mrb[66].mxu1  ;;  %v4735_v29 = vmul.f32 %v4731_v48, %v4703_v54  ;;  %v4884_v19 = vmul.f32 0.5, %v4874_v26  ;;  %v4526_v23 = vmul.f32 0.044715, %v4500_v30  ;;  %v4527_v40 = vmul.f32 0.044715, %v4505_v55 }
0x1da2   :  { %v4903_v44 = vmul.f32 %v4899_v37, %v4887_v6  ;;  %v4879_v36 = vadd.f32 %v5496_v60, %v4878_v8  ;;  %v4880_v11 = vpop.f32.mrb[67].mxu1  ;;  %v4896_v35 = vmul.f32 %v4892_v7, %v4874_v26  ;;  %v4510_v39 = vadd.f32 %v5486_v13, %v9388_v51 }
0x1da3   :  { %4928 = vrot.lane.b32.xlu0 %v4735_v29, %s7262_s12  ;;  %v4530_v49 = vmul.f32 %v4526_v23, %v4500_v30  ;;  %v4531_v17 = vmul.f32 %v4527_v40, %v4505_v55  ;;  %v4515_v3 = vadd.f32 %v5486_v13, %v9390_v27  ;;  %v4522_v2 = vmul.f32 0.7978846, %v4500_v30  ;;  %v5198_v13 = vld [vmem:[%s9581_s5 + $0xb40] sm:$0xff] }
0x1da4   :  { %7214 = vtanh.f32 %v4903_v44  ;;  %v4893_v18 = vmul.f32 0.044715, %v4879_v36  ;;  %v4900_v63 = vadd.f32 1.0, %v4896_v35  ;;  %v4889_v1 = vmul.f32 0.7978846, %v4879_v36 }
0x1da5   :  { %v4885_v28 = vmul.f32 0.5, %v4879_v36  ;;  %v4534_v62 = vadd.f32 1.0, %v4530_v49  ;;  %v4528_v26 = vmul.f32 0.044715, %v4510_v39  ;;  %v4535_v54 = vadd.f32 1.0, %v4531_v17  ;;  %v5201_v49 = vld [vmem:[%s9581_s5 + $0xb58] sm:$0xff] }
0x1da6   :  { %v4897_v50 = vmul.f32 %v4893_v18, %v4879_v36  ;;  %v4904_v56 = vmul.f32 %v4900_v63, %v4888_v33  ;;  %v4529_v48 = vmul.f32 0.044715, %v4515_v3  ;;  %v4523_v37 = vmul.f32 0.7978846, %v4505_v55 }
0x1da7   :  { %v4538_v25 = vmul.f32 %v4534_v62, %v4522_v2  ;;  %v4532_v6 = vmul.f32 %v4528_v26, %v4510_v39  ;;  %v4524_v29 = vmul.f32 0.7978846, %v4510_v39  ;;  %v4525_v44 = vmul.f32 0.7978846, %v4515_v3  ;;  %v5203_v62 = vld [vmem:[%s9581_s5 + $0xb68] sm:$0xff]  ;;  %v5205_v26 = vld [vmem:[%s9581_s5 + $0xb78] sm:$0xff] }
0x1da8   :  { %v4901_v21 = vadd.f32 1.0, %v4897_v50  ;;  %7216 = vtanh.f32 %v4904_v56  ;;  %v4539_v7 = vmul.f32 %v4535_v54, %v4523_v37  ;;  %v4533_v0 = vmul.f32 %v4529_v48, %v4515_v3  ;;  %v5207_v54 = vld [vmem:[%s9581_s5 + $0xb88] sm:$0xff] }
0x1da9   :  { %v4536_v8 = vadd.f32 1.0, %v4532_v6  ;;  %v4518_v18 = vmul.f32 0.5, %v4500_v30  ;;  %v5199_v30 = vld [vmem:[%s9581_s5 + $0xb48] sm:$0xff]  ;;  %v5501_v6 = vld [vmem:[%s9582_s6 + $0x14] ss:$0 sm:$0xff] }
0x1daa   :  { %v7213_v10 = vpop.eup %7212  ;;  %v4905_v12 = vmul.f32 %v4901_v21, %v4889_v1  ;;  %v4537_v9 = vadd.f32 1.0, %v4533_v0  ;;  %v4519_v21 = vmul.f32 0.5, %v4505_v55  ;;  %v6963_v23 = vpack.c.bf16 %v5199_v30, %v5198_v13  ;;  %v5200_v55 = vld [vmem:[%s9581_s5 + $0xb50] sm:$0xff] }
0x1dab   :  { %v4910_v60 = vadd.f32 1.0, %v7213_v10  ;;  %v4540_v51 = vmul.f32 %v4536_v8, %v4524_v29  ;;  %v6966_v40 = vpack.c.bf16 %v5201_v49, %v5200_v55 }
0x1dac   :  { %7218 = vtanh.f32 %v4905_v12  ;;  %v4541_v36 = vmul.f32 %v4537_v9, %v4525_v44 }
0x1dad   :  { %v4914_v4 = vmul.f32 %v4910_v60, %v4882_v42  ;;  %7220 = vtanh.f32 %v4538_v25  ;;  %v5206_v25 = vld [vmem:[%s9581_s5 + $0xb80] sm:$0xff] }
0x1dae   :  { %v7215_v31 = vpop.eup %7214  ;;  %7222 = vtanh.f32 %v4539_v7  ;;  %v6975_v48 = vpack.c.bf16 %v5207_v54, %v5206_v25 }
0x1daf   :  { %4938 = vrot.lane.b32.xlu0 %v4914_v4, %s7263_s3  ;;  %v4911_v38 = vadd.f32 1.0, %v7215_v31  ;;  %7224 = vtanh.f32 %v4540_v51 }
0x1db0   :  { %7226 = vtanh.f32 %v4541_v36 }
0x1db1   :  { %v4915_v58 = vmul.f32 %v4911_v38, %v4883_v16  ;;  %v4520_v38 = vmul.f32 0.5, %v4510_v39  ;;  %v5202_v39 = vld [vmem:[%s9581_s5 + $0xb60] sm:$0xff] }
0x1db2   :  { %v7217_v43 = vpop.eup %7216  ;;  %v6969_v17 = vpack.c.bf16 %v5203_v62, %v5202_v39 }
0x1db3   :  { %4940 = vrot.lane.b32.xlu0 %v4915_v58, %s7263_s3  ;;  %v4912_v22 = vadd.f32 1.0, %v7217_v43 }
0x1db5   :  { %v4916_v20 = vmul.f32 %v4912_v22, %v4884_v19  ;;  %v4521_v22 = vmul.f32 0.5, %v4515_v3  ;;  %v5204_v3 = vld [vmem:[%s9581_s5 + $0xb70] sm:$0xff] }
0x1db6   :  { %v7219_v59 = vpop.eup %7218  ;;  %v6972_v2 = vpack.c.bf16 %v5205_v26, %v5204_v3 }
0x1db7   :  { %v4913_v14 = vadd.f32 1.0, %v7219_v59  ;;  %4942 = vrot.lane.b32.xlu1 %v4916_v20, %s7263_s3  ;;  %v7221_v11 = vpop.eup %7220 }
0x1db8   :  { %v4546_v24 = vadd.f32 1.0, %v7221_v11  ;;  %v7223_v35 = vpop.eup %7222 }
0x1db9   :  { %v4917_v15 = vmul.f32 %v4913_v14, %v4885_v28  ;;  %v4547_v50 = vadd.f32 1.0, %v7223_v35  ;;  %v7225_v56 = vpop.eup %7224 }
0x1dba   :  { %v4550_v63 = vmul.f32 %v4546_v24, %v4518_v18  ;;  %v7227_v60 = vpop.eup %7226  ;;  %v4548_v4 = vadd.f32 1.0, %v7225_v56 }
0x1dbb   :  { %4944 = vrot.lane.b32.xlu0 %v4917_v15, %s7263_s3  ;;  %5117 = vperm.xlu1 %6995, %v5112_v32   ;;  %v4551_v42 = vmul.f32 %v4547_v50, %v4519_v21  ;;  %v4549_v43 = vadd.f32 1.0, %v7227_v60  ;;  %v5194_v15 = vld [vmem:[%s9581_s5 + $0xb20] sm:$0xff] }
0x1dbc   :  { %v4552_v19 = vmul.f32 %v4548_v4, %v4520_v38 }
0x1dbd   :  { %v4553_v20 = vmul.f32 %v4549_v43, %v4521_v22 }
0x1dbf   :  { %5120 = vperm.xlu0 %6994, %v5113_v53   ;;  %5123 = vperm.xlu1 %6995, %v5114_v46   ;;  %v5196_v53 = vld [vmem:[%s9581_s5 + $0xb30] sm:$0xff]  ;;  %v6957_v46 = vpack.c.bf16 %v5195_v41, %v5194_v15 }
0x1dc3   :  { %5126 = vperm.xlu0 %6994, %v5115_v52   ;;  %v6960_v52 = vpack.c.bf16 %v5197_v61, %v5196_v53 }
0x1df9   :  { %v4923_v5 = vpop.permute.xlu0 %4922 }
0x1dfa   :  { %v4950_v1 = vsel %vm182_vm2, %v4550_v63, %v4923_v5 }
0x1e09   :  { %v4925_v57 = vpop.permute.xlu0 %4924 }
0x1e0a   :  { %v4951_v31 = vsel %vm182_vm2, %v4551_v42, %v4925_v57 }
0x1e11   :  { %v4927_v27 = vpop.permute.xlu0 %4926 }
0x1e12   :  { %v4952_v59 = vsel %vm182_vm2, %v4552_v19, %v4927_v27 }
0x1e15   :  { %v4929_v33 = vpop.permute.xlu0 %4928 }
0x1e16   :  { %v4953_v14 = vsel %vm182_vm2, %v4553_v20, %v4929_v33 }
0x1e21   :  { %v4939_v10 = vpop.permute.xlu0 %4938 }
0x1e22   :  { %v4954_v12 = vsel %vm187_vm3, %v4950_v1, %v4939_v10 }
0x1e23   :  { %6246 = vmatprep.mubr.msk.f32.mxu0 %vm209_vm4, %v4954_v12 }
0x1e25   :  { %v4941_v16 = vpop.permute.xlu0 %4940 }
0x1e26   :  { %v4955_v58 = vsel %vm187_vm3, %v4951_v31, %v4941_v16 }
0x1e27   :  { %6247 = vmatmul.mubr.msk.f32.vlgmr.msra.gmra.mrb[62].mxu0 %vm209_vm4, %v4955_v58 }
0x1e28   :  { %6958 = vmatpush3.bf16.msra.mxu0 %v6957_v46 }
0x1e29   :  { %v4943_v47 = vpop.permute.xlu1 %4942  ;;  %6959 = vmatprep.subr.bf16.mxu0 %v7264_v45 }
0x1e2a   :  { %v4956_v28 = vsel %vm187_vm3, %v4952_v59, %v4943_v47 }
0x1e2b   :  { %6249 = vmatprep.mubr.msk.f32.mxu0 %vm209_vm4, %v4956_v28 }
0x1e2c   :  { %6961 = vmatpush3.bf16.msra.mxu0 %v6960_v52 }
0x1e2d   :  { %v4945_v32 = vpop.permute.xlu0 %4944  ;;  %6962 = vmatprep.subr.bf16.mxu0 %v7264_v45 }
0x1e2e   :  { %v4957_v34 = vsel %vm187_vm3, %v4953_v14, %v4945_v32 }
0x1e2f   :  { %6250 = vmatmul.mubr.msk.f32.gmra.mrb[64].mxu0 %vm209_vm4, %v4957_v34 }
0x1e30   :  { %6964 = vmatpush3.bf16.msra.mxu0 %v6963_v23 }
0x1e31   :  { %6965 = vmatprep.subr.bf16.mxu0 %v7264_v45 }
0x1e34   :  { %6967 = vmatpush3.bf16.msra.mxu0 %v6966_v40 }
0x1e35   :  { %6968 = vmatprep.subr.bf16.mxu0 %v7264_v45 }
0x1e38   :  { %6970 = vmatpush3.bf16.msra.mxu0 %v6969_v17 }
0x1e39   :  { %6971 = vmatprep.subr.bf16.mxu0 %v7264_v45 }
0x1e3a   :  { %v5118_v22 = vpop.permute.xlu1 %5117 }
0x1e3b   :  { %vm5128_vm14 = vcmp.eq.s32.totalorder %v5118_v22, 1 }
0x1e3c   :  { %6973 = vmatpush3.bf16.msra.mxu0 %v6972_v2 }
0x1e3d   :  { %6974 = vmatprep.subr.bf16.mxu0 %v7264_v45 }
0x1e3e   :  { %v5121_v58 = vpop.permute.xlu0 %5120  ;;  %v5124_v55 = vpop.permute.xlu1 %5123 }
0x1e3f   :  { %vm5129_vm13 = vcmp.eq.s32.totalorder %v5121_v58, 1  ;;  %vm5130_vm0 = vcmp.eq.s32.totalorder %v5124_v55, 1 }
0x1e40   :  { %6976 = vmatpush3.bf16.msra.mxu0 %v6975_v48 }
0x1e41   :  { %6977 = vmatprep.subr.bf16.mxu0 %v7264_v45 }
0x1e42   :  { %v5127_v52 = vpop.permute.xlu0 %5126 }
0x1e43   :  { %vm5131_vm15 = vcmp.eq.s32.totalorder %v5127_v52, 1 }
0x1efa   :  { %v6248_v37 = vpop.f32.mrb[62].mxu0 }
0x1efb   :  { %v5059_v7 = vadd.f32 %v6248_v37, %v5501_v6  ;;  %v5053_v0 = vpop.f32.mrb[63].mxu0 }
0x1efc   :  { %v5054_v8 = vadd.f32 %v5501_v6, %v5053_v0 }
0x1efd   :  { %v5081_v5 = vmul.f32 0.044715, %v5059_v7  ;;  %v5077_v57 = vmul.f32 0.7978846, %v5059_v7  ;;  %v5073_v43 = vmul.f32 0.5, %v5059_v7 }
0x1efe   :  { %v5080_v29 = vmul.f32 0.044715, %v5054_v8  ;;  %v5076_v36 = vmul.f32 0.7978846, %v5054_v8  ;;  %v5072_v59 = vmul.f32 0.5, %v5054_v8 }
0x1eff   :  { %v5085_v9 = vmul.f32 %v5081_v5, %v5059_v7 }
0x1f00   :  { %v5084_v51 = vmul.f32 %v5080_v29, %v5054_v8  ;;  %v5208_v29 = vld [vmem:[%s9581_s5 + $0xb90] sm:$0xff] }
0x1f01   :  { %v5089_v44 = vadd.f32 1.0, %v5085_v9  ;;  %v5209_v9 = vld [vmem:[%s9581_s5 + $0xb98] sm:$0xff] }
0x1f02   :  { %v5088_v27 = vadd.f32 1.0, %v5084_v51  ;;  %v6251_v11 = vpop.f32.mrb[64].mxu0 }
0x1f03   :  { %v5093_v24 = vmul.f32 %v5089_v44, %v5077_v57  ;;  %v5069_v35 = vadd.f32 %v6251_v11, %v5501_v6  ;;  %v5063_v18 = vpop.f32.mrb[65].mxu0  ;;  %v6978_v44 = vpack.c.bf16 %v5209_v9, %v5208_v29 }
0x1f04   :  { %v5092_v33 = vmul.f32 %v5088_v27, %v5076_v36  ;;  %v5064_v63 = vadd.f32 %v5501_v6, %v5063_v18 }
0x1f05   :  { %7228 = vtanh.f32 %v5093_v24  ;;  %v5083_v50 = vmul.f32 0.044715, %v5069_v35  ;;  %v5079_v10 = vmul.f32 0.7978846, %v5069_v35  ;;  %v5075_v30 = vmul.f32 0.5, %v5069_v35  ;;  %6979 = vmatpush3.bf16.msra.mxu0 %v6978_v44 }
0x1f06   :  { %7230 = vtanh.f32 %v5092_v33  ;;  %v5082_v56 = vmul.f32 0.044715, %v5064_v63  ;;  %v5078_v42 = vmul.f32 0.7978846, %v5064_v63  ;;  %v5074_v40 = vmul.f32 0.5, %v5064_v63 }
0x1f07   :  { %v5087_v1 = vmul.f32 %v5083_v50, %v5069_v35  ;;  %v7267_v33 = vmov 0.0  }
0x1f08   :  { %v5086_v21 = vmul.f32 %v5082_v56, %v5064_v63  ;;  %6284 = vmatprep.mubr.msk.f32.mxu0 %vm7266_vm5, %v7267_v33  ;;  %6295 = vmatprep.mubr.msk.f32.mxu1 %vm7266_vm5, %v7267_v33 }
0x1f09   :  { %v5091_v12 = vadd.f32 1.0, %v5087_v1 }
0x1f0a   :  { %v5090_v60 = vadd.f32 1.0, %v5086_v21 }
0x1f0b   :  { %v5095_v4 = vmul.f32 %v5091_v12, %v5079_v10 }
0x1f0c   :  { %v5094_v31 = vmul.f32 %v5090_v60, %v5078_v42 }
0x1f0d   :  { %7232 = vtanh.f32 %v5095_v4 }
0x1f0e   :  { %7234 = vtanh.f32 %v5094_v31 }
0x1f0f   :  { %v7229_v16 = vpop.eup %7228 }
0x1f10   :  { %v7231_v38 = vpop.eup %7230  ;;  %v5101_v19 = vadd.f32 1.0, %v7229_v16 }
0x1f11   :  { %v5100_v47 = vadd.f32 1.0, %v7231_v38 }
0x1f12   :  { %v5105_v20 = vmul.f32 %v5101_v19, %v5073_v43 }
0x1f13   :  { %v5104_v28 = vmul.f32 %v5100_v47, %v5072_v59  ;;  %v5294_v47 = vld [vmem:[%s9581_s5 + $0xba0] sm:$0xff] }
0x1f14   :  { %v5133_v14 = vsel %vm5129_vm13, %v5105_v20, -1e+30  ;;  %v5295_v20 = vld [vmem:[%s9581_s5 + $0xba8] sm:$0xff] }
0x1f15   :  { %v5143_v32 = vsel %vm182_vm2, %v5133_v14, -inf  ;;  %v5132_v34 = vsel %vm5128_vm14, %v5104_v28, -1e+30  ;;  %v6981_v28 = vpack.c.bf16 %v5295_v20, %v5294_v47  ;;  %v5296_v14 = vld [vmem:[%s9581_s5 + $0xbb0] sm:$0xff] }
0x1f16   :  { %v5144_v15 = vrot.slane %v5143_v32, 4  ;;  %v5136_v41 = vsel %vm182_vm2, %v5132_v34, -inf }
0x1f17   :  { %v7233_v53 = vpop.eup %7232  ;;  %v5137_v46 = vrot.slane %v5136_v41, 4  ;;  %6982 = vmatpush3.bf16.msra.mxu1 %v6981_v28 }
0x1f18   :  { %v7235_v61 = vpop.eup %7234  ;;  %v5145_v13 = vmax.f32 %v5143_v32, %v5144_v15  ;;  %v5103_v23 = vadd.f32 1.0, %v7233_v53  ;;  %6983 = vmatprep.subr.bf16.mxu1 %v7264_v45  ;;  %v5297_v32 = vld [vmem:[%s9581_s5 + $0xbb8] sm:$0xff]  ;;  %v5506_v15 = vld [vmem:[%s9582_s6 + $0x15] ss:$0 sm:$0xff] }
0x1f19   :  { %v5138_v49 = vmax.f32 %v5136_v41, %v5137_v46  ;;  %v5102_v39 = vadd.f32 1.0, %v7235_v61  ;;  %v6984_v34 = vpack.c.bf16 %v5297_v32, %v5296_v14 }
0x1f1a   :  { %v5107_v62 = vmul.f32 %v5103_v23, %v5075_v30  ;;  %v5146_v17 = vrot.slane %v5145_v13, 2 }
0x1f1b   :  { %v5106_v3 = vmul.f32 %v5102_v39, %v5074_v40  ;;  %v5139_v26 = vrot.slane %v5138_v49, 2  ;;  %6985 = vmatpush3.bf16.msra.mxu1 %v6984_v34  ;;  %v5507_v39 = vld [vmem:[%s9582_s6 + $0x16] ss:$0 sm:$0xff] }
0x1f1c   :  { %v5135_v2 = vsel %vm5131_vm15, %v5107_v62, -1e+30  ;;  %v5147_v25 = vmax.f32 %v5145_v13, %v5146_v17 }
0x1f1d   :  { %v5134_v54 = vsel %vm5130_vm0, %v5106_v3, -1e+30  ;;  %v5157_v48 = vsel %vm182_vm2, %v5135_v2, -inf  ;;  %v5140_v6 = vmax.f32 %v5138_v49, %v5139_v26 }
0x1f1e   :  { %v5150_v37 = vsel %vm182_vm2, %v5134_v54, -inf  ;;  %v5158_v7 = vrot.slane %v5157_v48, 4  ;;  %v5148_v0 = vrot.slane %v5147_v25, 1 }
0x1f1f   :  { %v5151_v8 = vrot.slane %v5150_v37, 4  ;;  %v5141_v5 = vrot.slane %v5140_v6, 1 }
0x1f20   :  { %v5159_v51 = vmax.f32 %v5157_v48, %v5158_v7  ;;  %v5149_v57 = vmax.f32 %v5147_v25, %v5148_v0 }
0x1f21   :  { %v5152_v36 = vmax.f32 %v5150_v37, %v5151_v8  ;;  %v5142_v27 = vmax.f32 %v5140_v6, %v5141_v5 }
0x1f22   :  { %v5160_v11 = vrot.slane %v5159_v51, 2 }
0x1f23   :  { %v5153_v24 = vrot.slane %v5152_v36, 2  ;;  %v5171_v35 = vsel %vm5170_vm1, %v5149_v57, %v5142_v27 }
0x1f24   :  { %v5161_v18 = vmax.f32 %v5159_v51, %v5160_v11 }
0x1f25   :  { %v5154_v63 = vmax.f32 %v5152_v36, %v5153_v24 }
0x1f26   :  { %v5162_v50 = vrot.slane %v5161_v18, 1 }
0x1f27   :  { %v5155_v56 = vrot.slane %v5154_v63, 1 }
0x1f28   :  { %v5163_v1 = vmax.f32 %v5161_v18, %v5162_v50 }
0x1f29   :  { %v5156_v21 = vmax.f32 %v5154_v63, %v5155_v56 }
0x1f2a   :  { %v5165_v10 = vsub.f32 %v5149_v57, %v5163_v1  ;;  %v5167_v12 = vmul.f32 %v5163_v1, %v5149_v57 }
0x1f2b   :  { %v5175_v42 = vsel %vm5170_vm1, %v5163_v1, %v5156_v21  ;;  %v5164_v60 = vsub.f32 %v5142_v27, %v5156_v21  ;;  %v5166_v4 = vmul.f32 %v5156_v21, %v5142_v27 }
0x1f2c   :  { %5176 = vrot.lane.b32.xlu1 %v5175_v42, %s7262_s12 }
0x1f2d   :  { %v5181_v31 = vsel %vm5170_vm1, %v5165_v10, %v5164_v60  ;;  %v5187_v16 = vsel %vm5170_vm1, %v5167_v12, %v5166_v4 }
0x1f2e   :  { %5182 = vrot.lane.b32.xlu0 %v5181_v31, %s7263_s3 }
0x1f30   :  { %5188 = vrot.lane.b32.xlu1 %v5187_v16, %s7265_s9 }
0x1f9e   :  { %v5177_v38 = vpop.permute.xlu1 %5176 }
0x1f9f   :  { %v5191_v58 = vsel %vm182_vm2, %v5171_v35, %v5177_v38 }
0x1fa0   :  { %v5183_v43 = vpop.permute.xlu0 %5182 }
0x1fa1   :  { %v5192_v19 = vsel %vm187_vm3, %v5191_v58, %v5183_v43  ;;  %vm5376_vm3 = vcmask 9216  }
0x1fa2   :  { %v5189_v22 = vpop.permute.xlu1 %5188 }
0x1fa3   :  { %v5193_v59 = vsel %vm209_vm4, %v5192_v19, %v5189_v22 }
0x1fa4   :  { %6285 = vmatmul.mubr.f32.vlgmr.msra.gmra.mrb[66].mxu0 %v5193_v59 }
0x2077   :  { %v5281_v41 = vpop.f32.mrb[66].mxu0 }
0x2078   :  { %v5282_v53 = vadd.f32 %v5506_v15, %v5281_v41  ;;  %v6286_v46 = vpop.f32.mrb[67].mxu0 }
0x207a   :  { %v5287_v61 = vmul.f32 0.044715, %v5282_v53  ;;  %v5286_v45 = vmul.f32 0.7978846, %v5282_v53  ;;  %v5285_v55 = vmul.f32 0.5, %v5282_v53 }
0x207c   :  { %v5288_v52 = vmul.f32 %v5287_v61, %v5282_v53 }
0x207e   :  { %v5289_v13 = vadd.f32 1.0, %v5288_v52 }
0x2080   :  { %v5290_v30 = vmul.f32 %v5289_v13, %v5286_v45 }
0x2082   :  { %7236 = vtanh.f32 %v5290_v30 }
0x208c   :  { %v7237_v23 = vpop.eup %7236 }
0x208d   :  { %v5292_v49 = vadd.f32 1.0, %v7237_v23 }
0x208f   :  { %v5293_v40 = vmul.f32 %v5292_v49, %v5285_v55 }
0x2091   :  { %6296 = vmatmul.mubr.msk.f32.vlgmr.msra.gmra.mrb[68].mxu1 %vm182_vm2, %v5293_v40 }
0x2164   :  { %v5372_v62 = vpop.f32.mrb[68].mxu1 }
0x2165   :  { %v5373_v17 = vadd.f32 %v5507_v39, %v5372_v62  ;;  %v6297_v3 = vpop.f32.mrb[69].mxu1 }
0x2167   :  { %5377 = vst.msk [vmem:[%s9583_s7] sm:$0x3] %vm5376_vm3, %v5373_v17 }
0x2168   :  { %5382 = vsyncpa [#allocation3], 1 }

</bundles_post_ra>
